<compile_context>
chip_gen: v5e
topology: v5e:2x2
jax: 0.10.0
libtpu: 0.0.40
codegen_flags: <defaults>
</compile_context>

<pallas_src>
import jax
import jax.numpy as jnp
from jax.experimental import pallas as pl
from jax.experimental.pallas import tpu as pltpu

HIDDEN = 512
K_PAD = 128          # aligned contraction width for the first layer


def _round_up(x, m):
    return ((x + m - 1) // m) * m


def _elementwise_dtype():
    """bf16 elementwise on bf16-native VPUs (v6e / v7x), f32 otherwise."""
    try:
        kind = jax.devices()[0].device_kind.lower()
    except Exception:
        return jnp.float32
    if ("v6" in kind) or ("v7" in kind) or ("7x" in kind):
        return jnp.bfloat16
    return jnp.float32


def discriminator_kernel(z_ref,
                         w1_ref, b1_ref,
                         w2_ref, b2_ref,
                         w3_ref, b3_ref,
                         w4_ref, b4_ref,
                         w5_ref, b5_ref,
                         out_ref,
                         zpad_ref):
    # z_ref: (tb, z_dim) bf16 at natural width.  Zero-pad the contraction dim
    # to K_PAD inside VMEM (no lane-inflated HBM copy of z).
    zd = z_ref.shape[-1]
    zpad_ref[...] = jnp.zeros_like(zpad_ref)
    zpad_ref[:, :zd] = z_ref[...]
    h = zpad_ref[...]                                   # (tb, K_PAD) bf16

    def dense_relu(h, w_ref, b_ref):
        # bf16 x bf16 MXU matmul with f32 accumulation; bias-add / ReLU in the
        # bias dtype (bf16 on v6e/v7x, f32 on v5e); result fed back as bf16.
        acc = jnp.dot(h, w_ref[...], preferred_element_type=jnp.float32)
        act = jnp.maximum(acc.astype(b_ref.dtype) + b_ref[...], 0.0)
        return act.astype(jnp.bfloat16)

    h = dense_relu(h, w1_ref, b1_ref)
    h = dense_relu(h, w2_ref, b2_ref)
    h = dense_relu(h, w3_ref, b3_ref)
    h = dense_relu(h, w4_ref, b4_ref)

    # Final 512 -> 1 layer: VPU multiply + f32 lane reduction instead of a
    # degenerate N=1 MXU matmul.
    logits = (jnp.sum(h.astype(jnp.float32) * w5_ref[...],
                      axis=-1, keepdims=True) + b5_ref[...])
    out_ref[...] = jax.nn.sigmoid(logits)


def make_kernel_params(params, z_dim, ew_dtype):
    """Convert f32 (in, out) weights into the kernel operand list.

    w1..w4 -> bf16 (halves weight footprint, bf16-native MXU); w1 rows
    zero-padded from z_dim to K_PAD; biases in the elementwise dtype;
    w5 reshaped to a (1, 512) f32 row for the VPU reduction path.
    """
    (w1, b1), (w2, b2), (w3, b3), (w4, b4), (w5, b5) = params
    w1p = jnp.zeros((K_PAD, HIDDEN), jnp.float32).at[:z_dim].set(w1)
    return [
        w1p.astype(jnp.bfloat16), b1.astype(ew_dtype),
        w2.astype(jnp.bfloat16), b2.astype(ew_dtype),
        w3.astype(jnp.bfloat16), b3.astype(ew_dtype),
        w4.astype(jnp.bfloat16), b4.astype(ew_dtype),
        w5.reshape(1, HIDDEN).astype(jnp.float32),
        b5.astype(jnp.float32),                         # (1, 1) f32
    ]


def discriminator_forward(z, params, *, tile_b=1024):
    """z: (B, z_dim) float32. params: list of (W, b) with W as (in, out) f32."""
    B, z_dim = z.shape
    assert z_dim <= K_PAD

    ew_dtype = _elementwise_dtype()
    flat = make_kernel_params(params, z_dim, ew_dtype)

    # Batch tile: big (amortizes per-step overhead + per-layer MXU weight
    # pushes), multiple of 16 (bf16 sublane), >= 2 grid steps when B allows it
    # (v7x megacore), and never pad the batch up to a multiple of tb.
    tb = min(tile_b, _round_up(pl.cdiv(B, 2), 16), _round_up(B, 8))
    tb = max(tb, 8)
    grid = (pl.cdiv(B, tb),)

    # z travels to HBM/VMEM as bf16 at its natural width.
    z_bf16 = z.astype(jnp.bfloat16)

    def resident(a):  # weights/biases: full block, same index every step
        return pl.BlockSpec(a.shape, lambda i: (0, 0))

    param_bytes = sum(int(a.size) * a.dtype.itemsize for a in flat)
    flops = 2 * B * (K_PAD * HIDDEN + 3 * HIDDEN * HIDDEN + HIDDEN)
    bytes_accessed = param_bytes + B * z_dim * 2 + B * 4

    # Right-sized scoped VMEM: double-buffered resident params + lane-padded
    # z/out blocks + zpad scratch + activation/accumulator headroom.
    vmem_bytes = int(2 * param_bytes
                     + 2 * tb * 128 * 2          # z blocks (lane-padded bf16)
                     + 2 * tb * 128 * 4          # out blocks (lane-padded f32)
                     + tb * K_PAD * 2            # zpad scratch
                     + 6 * tb * HIDDEN * 4       # activations / accumulators
                     + (2 << 20))                # slack
    vmem_limit = max(min(vmem_bytes, 48 << 20), 16 << 20)

    out = pl.pallas_call(
        discriminator_kernel,
        out_shape=jax.ShapeDtypeStruct((B, 1), jnp.float32),
        grid=grid,
        in_specs=[pl.BlockSpec((tb, z_dim), lambda i: (i, 0))]
                 + [resident(a) for a in flat],
        out_specs=pl.BlockSpec((tb, 1), lambda i: (i, 0)),
        scratch_shapes=[pltpu.VMEM((tb, K_PAD), jnp.bfloat16)],
        compiler_params=pltpu.CompilerParams(
            dimension_semantics=("parallel",),           # megacore on v7x
            vmem_limit_bytes=vmem_limit),
        cost_estimate=pl.CostEstimate(
            flops=flops, transcendentals=B, bytes_accessed=bytes_accessed),
    )(z_bf16, *flat)

    return out


def init_params(key, z_dim=10, hidden=HIDDEN):
    """kaiming_normal_ (fan_in, gain=sqrt(2)) weights, zero biases.

    PyTorch Linear weight is (out, in); kaiming fan_in = in_features, so
    std = sqrt(2 / in_features). Stored transposed as (in, out), f32.
    Biases are 2D (1, out) for TPU-friendly broadcasting.
    """
    dims = [(z_dim, hidden), (hidden, hidden), (hidden, hidden),
            (hidden, hidden), (hidden, 1)]
    params = []
    for (fan_in, fan_out) in dims:
        key, sub = jax.random.split(key)
        std = (2.0 / fan_in) ** 0.5
        w = jax.random.normal(sub, (fan_in, fan_out), dtype=jnp.float32) * std
        b = jnp.zeros((1, fan_out), dtype=jnp.float32)
        params.append((w, b))
    return params


def reference_forward_mixed(z, params, ew_dtype):
    """Pure-JAX reference mirroring the kernel's mixed-precision path."""
    h = z.astype(jnp.bfloat16)
    for (w, b) in params[:4]:
        acc = jnp.dot(h, w.astype(jnp.bfloat16),
                      preferred_element_type=jnp.float32)
        h = jnp.maximum(acc.astype(ew_dtype) + b.astype(ew_dtype),
                        0.0).astype(jnp.bfloat16)
    w5, b5 = params[4]
    logits = jnp.sum(h.astype(jnp.float32) * w5.reshape(1, -1),
                     axis=-1, keepdims=True) + b5
    return jax.nn.sigmoid(logits)


def reference_forward_f32(z, params):
    """Pure-JAX all-f32 reference (matches the original PyTorch math)."""
    h = z
    for (w, b) in params[:4]:
        h = jnp.maximum(h @ w + b, 0.0)
    w5, b5 = params[4]
    return jax.nn.sigmoid(h @ w5 + b5)


if __name__ == "__main__":
    key = jax.random.PRNGKey(0)
    k_in, k_params = jax.random.split(key)

    B, Z_DIM = 8, 10
    z = jax.random.normal(k_in, (B, Z_DIM), dtype=jnp.float32)
    params = init_params(k_params, z_dim=Z_DIM, hidden=HIDDEN)

    out = jax.block_until_ready(discriminator_forward(z, params))
    assert out.shape == (B, 1)

    # Tight check against a reference that mirrors the kernel's precision path.
    ref_mixed = reference_forward_mixed(z, params, _elementwise_dtype())
    assert jnp.allclose(out, ref_mixed, atol=2e-3, rtol=2e-3), (
        float(jnp.max(jnp.abs(out - ref_mixed))))

    # Loose check against the full-f32 PyTorch-equivalent math.
    ref_f32 = reference_forward_f32(z, params)
    assert jnp.allclose(out, ref_f32, atol=5e-2, rtol=5e-2), (
        float(jnp.max(jnp.abs(out - ref_f32))))

    print("KERNEL_OK")
</pallas_src>

<mosaic_0001>
module attributes {stable_mosaic.version = 11 : i64} {
  func.func @discriminator_kernel(%arg0: i32, %arg1: memref<8x10xbf16, #tpu.memory_space<vmem>>, %arg2: memref<128x512xbf16, #tpu.memory_space<vmem>>, %arg3: memref<1x512xf32, #tpu.memory_space<vmem>>, %arg4: memref<512x512xbf16, #tpu.memory_space<vmem>>, %arg5: memref<1x512xf32, #tpu.memory_space<vmem>>, %arg6: memref<512x512xbf16, #tpu.memory_space<vmem>>, %arg7: memref<1x512xf32, #tpu.memory_space<vmem>>, %arg8: memref<512x512xbf16, #tpu.memory_space<vmem>>, %arg9: memref<1x512xf32, #tpu.memory_space<vmem>>, %arg10: memref<1x512xf32, #tpu.memory_space<vmem>>, %arg11: memref<1x1xf32, #tpu.memory_space<vmem>>, %arg12: memref<8x1xf32, #tpu.memory_space<vmem>>, %arg13: memref<8x128xbf16, #tpu.memory_space<vmem>>) attributes {dimension_semantics = [#tpu.dimension_semantics<parallel>], iteration_bounds = array<i64: 1>, scalar_prefetch = 0 : i64, scratch_operands = 1 : i64, tpu.core_type = #tpu.core_type<tc>, window_params = [{transform_indices = @transform_0, window_bounds = array<i64: 8, 10>}, {pipeline_mode = #tpu.pipeline_mode<synchronous>, transform_indices = @transform_1, window_bounds = array<i64: 128, 512>}, {pipeline_mode = #tpu.pipeline_mode<synchronous>, transform_indices = @transform_2, window_bounds = array<i64: 1, 512>}, {pipeline_mode = #tpu.pipeline_mode<synchronous>, transform_indices = @transform_3, window_bounds = array<i64: 512, 512>}, {pipeline_mode = #tpu.pipeline_mode<synchronous>, transform_indices = @transform_4, window_bounds = array<i64: 1, 512>}, {pipeline_mode = #tpu.pipeline_mode<synchronous>, transform_indices = @transform_5, window_bounds = array<i64: 512, 512>}, {pipeline_mode = #tpu.pipeline_mode<synchronous>, transform_indices = @transform_6, window_bounds = array<i64: 1, 512>}, {pipeline_mode = #tpu.pipeline_mode<synchronous>, transform_indices = @transform_7, window_bounds = array<i64: 512, 512>}, {pipeline_mode = #tpu.pipeline_mode<synchronous>, transform_indices = @transform_8, window_bounds = array<i64: 1, 512>}, {pipeline_mode = #tpu.pipeline_mode<synchronous>, transform_indices = @transform_9, window_bounds = array<i64: 1, 512>}, {pipeline_mode = #tpu.pipeline_mode<synchronous>, transform_indices = @transform_10, window_bounds = array<i64: 1, 1>}, {transform_indices = @transform_11, window_bounds = array<i64: 8, 1>}]} {
    %cst = arith.constant 0.000000e+00 : bf16
    %0 = vector.broadcast %cst : bf16 to vector<8x128xbf16>
    %c0 = arith.constant 0 : index
    %c0_0 = arith.constant 0 : index
    %1 = vector.load %arg13[%c0, %c0_0] : memref<8x128xbf16, #tpu.memory_space<vmem>>, vector<8x128xbf16>
    tpu.vector_store %arg13[%c0, %c0_0], %0 {strides = array<i32>} : memref<8x128xbf16, #tpu.memory_space<vmem>>, vector<8x128xbf16>,
    %c0_1 = arith.constant 0 : index
    %c0_2 = arith.constant 0 : index
    %2 = vector.load %arg1[%c0_1, %c0_2] : memref<8x10xbf16, #tpu.memory_space<vmem>>, vector<8x10xbf16>
    %c0_3 = arith.constant 0 : index
    %c0_4 = arith.constant 0 : index
    %3 = vector.load %arg13[%c0_3, %c0_4] : memref<8x128xbf16, #tpu.memory_space<vmem>>, vector<8x10xbf16>
    tpu.vector_store %arg13[%c0_3, %c0_4], %2 {strides = array<i32>} : memref<8x128xbf16, #tpu.memory_space<vmem>>, vector<8x10xbf16>,
    %c0_5 = arith.constant 0 : index
    %c0_6 = arith.constant 0 : index
    %4 = vector.load %arg13[%c0_5, %c0_6] : memref<8x128xbf16, #tpu.memory_space<vmem>>, vector<8x128xbf16>
    %c0_7 = arith.constant 0 : index
    %c0_8 = arith.constant 0 : index
    %5 = vector.load %arg2[%c0_7, %c0_8] : memref<128x512xbf16, #tpu.memory_space<vmem>>, vector<128x512xbf16>
    %cst_9 = arith.constant dense<0.000000e+00> : vector<8x512xf32>
    %6 = tpu.matmul %4, %5, %cst_9 {dimension_numbers = #tpu.dot_dimension_numbers<[1], [0], [0], [1], [0, 0, 1, 1], [], []>} : vector<8x128xbf16>, vector<128x512xbf16>, vector<8x512xf32> -> vector<8x512xf32>
    %c0_10 = arith.constant 0 : index
    %c0_11 = arith.constant 0 : index
    %7 = vector.load %arg3[%c0_10, %c0_11] : memref<1x512xf32, #tpu.memory_space<vmem>>, vector<1x512xf32>
    %8 = vector.broadcast %7 : vector<1x512xf32> to vector<8x512xf32>
    %9 = arith.addf %6, %8 : vector<8x512xf32>
    %cst_12 = arith.constant 0.000000e+00 : f32
    %10 = vector.broadcast %cst_12 : f32 to vector<8x512xf32>
    %11 = arith.maximumf %9, %10 : vector<8x512xf32>
    %12 = arith.truncf %11 : vector<8x512xf32> to vector<8x512xbf16>
    %c0_13 = arith.constant 0 : index
    %c0_14 = arith.constant 0 : index
    %13 = vector.load %arg4[%c0_13, %c0_14] : memref<512x512xbf16, #tpu.memory_space<vmem>>, vector<512x512xbf16>
    %cst_15 = arith.constant dense<0.000000e+00> : vector<8x512xf32>
    %14 = tpu.matmul %12, %13, %cst_15 {dimension_numbers = #tpu.dot_dimension_numbers<[1], [0], [0], [1], [0, 0, 1, 1], [], []>} : vector<8x512xbf16>, vector<512x512xbf16>, vector<8x512xf32> -> vector<8x512xf32>
    %c0_16 = arith.constant 0 : index
    %c0_17 = arith.constant 0 : index
    %15 = vector.load %arg5[%c0_16, %c0_17] : memref<1x512xf32, #tpu.memory_space<vmem>>, vector<1x512xf32>
    %16 = vector.broadcast %15 : vector<1x512xf32> to vector<8x512xf32>
    %17 = arith.addf %14, %16 : vector<8x512xf32>
    %cst_18 = arith.constant 0.000000e+00 : f32
    %18 = vector.broadcast %cst_18 : f32 to vector<8x512xf32>
    %19 = arith.maximumf %17, %18 : vector<8x512xf32>
    %20 = arith.truncf %19 : vector<8x512xf32> to vector<8x512xbf16>
    %c0_19 = arith.constant 0 : index
    %c0_20 = arith.constant 0 : index
    %21 = vector.load %arg6[%c0_19, %c0_20] : memref<512x512xbf16, #tpu.memory_space<vmem>>, vector<512x512xbf16>
    %cst_21 = arith.constant dense<0.000000e+00> : vector<8x512xf32>
    %22 = tpu.matmul %20, %21, %cst_21 {dimension_numbers = #tpu.dot_dimension_numbers<[1], [0], [0], [1], [0, 0, 1, 1], [], []>} : vector<8x512xbf16>, vector<512x512xbf16>, vector<8x512xf32> -> vector<8x512xf32>
    %c0_22 = arith.constant 0 : index
    %c0_23 = arith.constant 0 : index
    %23 = vector.load %arg7[%c0_22, %c0_23] : memref<1x512xf32, #tpu.memory_space<vmem>>, vector<1x512xf32>
    %24 = vector.broadcast %23 : vector<1x512xf32> to vector<8x512xf32>
    %25 = arith.addf %22, %24 : vector<8x512xf32>
    %cst_24 = arith.constant 0.000000e+00 : f32
    %26 = vector.broadcast %cst_24 : f32 to vector<8x512xf32>
    %27 = arith.maximumf %25, %26 : vector<8x512xf32>
    %28 = arith.truncf %27 : vector<8x512xf32> to vector<8x512xbf16>
    %c0_25 = arith.constant 0 : index
    %c0_26 = arith.constant 0 : index
    %29 = vector.load %arg8[%c0_25, %c0_26] : memref<512x512xbf16, #tpu.memory_space<vmem>>, vector<512x512xbf16>
    %cst_27 = arith.constant dense<0.000000e+00> : vector<8x512xf32>
    %30 = tpu.matmul %28, %29, %cst_27 {dimension_numbers = #tpu.dot_dimension_numbers<[1], [0], [0], [1], [0, 0, 1, 1], [], []>} : vector<8x512xbf16>, vector<512x512xbf16>, vector<8x512xf32> -> vector<8x512xf32>
    %c0_28 = arith.constant 0 : index
    %c0_29 = arith.constant 0 : index
    %31 = vector.load %arg9[%c0_28, %c0_29] : memref<1x512xf32, #tpu.memory_space<vmem>>, vector<1x512xf32>
    %32 = vector.broadcast %31 : vector<1x512xf32> to vector<8x512xf32>
    %33 = arith.addf %30, %32 : vector<8x512xf32>
    %cst_30 = arith.constant 0.000000e+00 : f32
    %34 = vector.broadcast %cst_30 : f32 to vector<8x512xf32>
    %35 = arith.maximumf %33, %34 : vector<8x512xf32>
    %36 = arith.truncf %35 : vector<8x512xf32> to vector<8x512xbf16>
    %37 = arith.extf %36 : vector<8x512xbf16> to vector<8x512xf32>
    %c0_31 = arith.constant 0 : index
    %c0_32 = arith.constant 0 : index
    %38 = vector.load %arg10[%c0_31, %c0_32] : memref<1x512xf32, #tpu.memory_space<vmem>>, vector<1x512xf32>
    %39 = vector.broadcast %38 : vector<1x512xf32> to vector<8x512xf32>
    %40 = arith.mulf %37, %39 : vector<8x512xf32>
    %cst_33 = arith.constant dense<0.000000e+00> : vector<8xf32>
    %41 = vector.multi_reduction <add>, %40, %cst_33 [1] : vector<8x512xf32> to vector<8xf32>
    %42 = vector.shape_cast %41 : vector<8xf32> to vector<8x1xf32>
    %c0_34 = arith.constant 0 : index
    %c0_35 = arith.constant 0 : index
    %43 = vector.load %arg11[%c0_34, %c0_35] : memref<1x1xf32, #tpu.memory_space<vmem>>, vector<1x1xf32>
    %44 = vector.broadcast %43 : vector<1x1xf32> to vector<8x1xf32>
    %45 = arith.addf %42, %44 : vector<8x1xf32>
    %46 = arith.negf %45 : vector<8x1xf32>
    %47 = math.exp %46 : vector<8x1xf32>
    %cst_36 = arith.constant 1.000000e+00 : f32
    %48 = vector.broadcast %cst_36 : f32 to vector<8x1xf32>
    %49 = arith.addf %48, %47 : vector<8x1xf32>
    %50 = arith.divf %48, %49 : vector<8x1xf32>
    %c0_37 = arith.constant 0 : index
    %c0_38 = arith.constant 0 : index
    %51 = vector.load %arg12[%c0_37, %c0_38] : memref<8x1xf32, #tpu.memory_space<vmem>>, vector<8x1xf32>
    tpu.vector_store %arg12[%c0_37, %c0_38], %50 {strides = array<i32>} : memref<8x1xf32, #tpu.memory_space<vmem>>, vector<8x1xf32>,
    return
  }
  func.func @transform_0(%arg0: i32) -> (i32, i32) {
    %c0_i32 = arith.constant 0 : i32
    %c0_i32_0 = arith.constant 0 : i32
    return %arg0, %c0_i32 : i32, i32
  }
  func.func @transform_1(%arg0: i32) -> (i32, i32) {
    %c0_i32 = arith.constant 0 : i32
    %c0_i32_0 = arith.constant 0 : i32
    %c0_i32_1 = arith.constant 0 : i32
    return %c0_i32, %c0_i32_0 : i32, i32
  }
  func.func @transform_2(%arg0: i32) -> (i32, i32) {
    %c0_i32 = arith.constant 0 : i32
    %c0_i32_0 = arith.constant 0 : i32
    %c0_i32_1 = arith.constant 0 : i32
    return %c0_i32, %c0_i32_0 : i32, i32
  }
  func.func @transform_3(%arg0: i32) -> (i32, i32) {
    %c0_i32 = arith.constant 0 : i32
    %c0_i32_0 = arith.constant 0 : i32
    %c0_i32_1 = arith.constant 0 : i32
    return %c0_i32, %c0_i32_0 : i32, i32
  }
  func.func @transform_4(%arg0: i32) -> (i32, i32) {
    %c0_i32 = arith.constant 0 : i32
    %c0_i32_0 = arith.constant 0 : i32
    %c0_i32_1 = arith.constant 0 : i32
    return %c0_i32, %c0_i32_0 : i32, i32
  }
  func.func @transform_5(%arg0: i32) -> (i32, i32) {
    %c0_i32 = arith.constant 0 : i32
    %c0_i32_0 = arith.constant 0 : i32
    %c0_i32_1 = arith.constant 0 : i32
    return %c0_i32, %c0_i32_0 : i32, i32
  }
  func.func @transform_6(%arg0: i32) -> (i32, i32) {
    %c0_i32 = arith.constant 0 : i32
    %c0_i32_0 = arith.constant 0 : i32
    %c0_i32_1 = arith.constant 0 : i32
    return %c0_i32, %c0_i32_0 : i32, i32
  }
  func.func @transform_7(%arg0: i32) -> (i32, i32) {
    %c0_i32 = arith.constant 0 : i32
    %c0_i32_0 = arith.constant 0 : i32
    %c0_i32_1 = arith.constant 0 : i32
    return %c0_i32, %c0_i32_0 : i32, i32
  }
  func.func @transform_8(%arg0: i32) -> (i32, i32) {
    %c0_i32 = arith.constant 0 : i32
    %c0_i32_0 = arith.constant 0 : i32
    %c0_i32_1 = arith.constant 0 : i32
    return %c0_i32, %c0_i32_0 : i32, i32
  }
  func.func @transform_9(%arg0: i32) -> (i32, i32) {
    %c0_i32 = arith.constant 0 : i32
    %c0_i32_0 = arith.constant 0 : i32
    %c0_i32_1 = arith.constant 0 : i32
    return %c0_i32, %c0_i32_0 : i32, i32
  }
  func.func @transform_10(%arg0: i32) -> (i32, i32) {
    %c0_i32 = arith.constant 0 : i32
    %c0_i32_0 = arith.constant 0 : i32
    %c0_i32_1 = arith.constant 0 : i32
    return %c0_i32, %c0_i32_0 : i32, i32
  }
  func.func @transform_11(%arg0: i32) -> (i32, i32) {
    %c0_i32 = arith.constant 0 : i32
    %c0_i32_0 = arith.constant 0 : i32
    return %arg0, %c0_i32 : i32, i32
  }
}

</mosaic_0001>

<bundles_post_ra>
// kernel: tpu_custom_call.1
= control target key start
LH: loop header
LB: loop body
LE: loop exit
PB: predicated region body
PF: predicated region fallthrough
CT: control target
= control target key end

     0   :  { %s6001_s0 = inlined_call_operand.hbm [shape: bf16[8,10], index: 0, kind: input, shape index: {}]   ;;  %s6002_s1 = inlined_call_operand.hbm [shape: bf16[128,512], index: 1, kind: input, shape index: {}]   ;;  %s6003_s2 = inlined_call_operand.hbm [shape: f32[1,512], index: 2, kind: input, shape index: {}]   ;;  %s6004_s3 = inlined_call_operand.hbm [shape: bf16[512,512], index: 3, kind: input, shape index: {}]   ;;  %s6005_s4 = inlined_call_operand.vmem [shape: f32[1,512], index: 4, kind: input, shape index: {}]   ;;  %s6006_s5 = inlined_call_operand.hbm [shape: bf16[512,512], index: 5, kind: input, shape index: {}]   ;;  %s6007_s6 = inlined_call_operand.hbm [shape: f32[1,512], index: 6, kind: input, shape index: {}]   ;;  %s6008_s7 = inlined_call_operand.hbm [shape: bf16[512,512], index: 7, kind: input, shape index: {}]   ;;  %s6009_s8 = inlined_call_operand.vmem [shape: f32[1,512], index: 8, kind: input, shape index: {}]   ;;  %s6010_s9 = inlined_call_operand.hbm [shape: f32[1,512], index: 9, kind: input, shape index: {}]   ;;  %s6011_s10 = inlined_call_operand.<no memory space> [shape: f32[1,1], index: 10, kind: input, shape index: {}]   ;;  %s6012_s11 = inlined_call_operand.vmem [shape: f32[8,1], index: 11, kind: output, shape index: {}]  }
   0x1   :  { %v16_v0 = vstv %s6011_s10 }
   0x2   :  { %17 = vst [vmem:[#allocation3] sm:$0x1] %v16_v0 }
   0x3   :  { %18 = vsyncpa [#allocation5], 0 }
   0x4   :  { %19 = vsyncpa [#allocation7], 0 }
   0x5   :  { %20 = vsyncpa [#allocation10], 0 }
   0x6   :  { %21 = vsyncpa [#allocation13], 0  ;;  %s38_s21 = sshll.u32 %s6002_s1, 4  ;;  %s39_s21 = int_to_ptr.hbm [resolvable:$true] %s38_s21 }
   0x7   :  { %22 = vsyncpa [#allocation16], 0  ;;  %s5762_s22 = smov [#allocation6]   ;;  %s62_s26 = sshll.u32 %s6004_s3, 4  ;;  %s63_s26 = int_to_ptr.hbm [resolvable:$true] %s62_s26 }
   0x8   :  { %s40_s23 = sshll.u32 %s5762_s22, 4  ;;  %s5763_s27 = smov 256   ;;  %s41_s23 = int_to_ptr.vmem [resolvable:$true] %s40_s23 }
   0x9   :  { %s5764_s10 = smov 16   ;;  %s5765_s28 = smov [#allocation9]  }
   0xa   :  { %46 = dma.hbm_to_vmem [thread:$0]  %s39_s21, 4096, %s41_s23, [#allocation7], %s5763_s27, %s5763_s27, %s5764_s10  }
   0xb   :  { %s64_s29 = sshll.u32 %s5765_s28, 4  ;;  %s91_s12 = sshll.u32 %s6007_s6, 4  ;;  %s65_s29 = int_to_ptr.vmem [resolvable:$true] %s64_s29  ;;  %s92_s12 = int_to_ptr.hbm [resolvable:$true] %s91_s12 }
   0xc   :  { %70 = dma.hbm_to_vmem [thread:$0]  %s63_s26, 16384, %s65_s29, [#allocation10], %s5763_s27, %s5763_s27, %s5764_s10  }
   0xd   :  { %s28_s14 = sshll.u32 %s6001_s0, 4  ;;  %s5766_s15 = smov [#allocation12]   ;;  %s29_s14 = int_to_ptr.hbm [resolvable:$true] %s28_s14 }
   0xe   :  { %s93_s16 = sshll.u32 %s5766_s15, 4  ;;  %s5767_s17 = smov [#allocation4]   ;;  %s94_s16 = int_to_ptr.vmem [resolvable:$true] %s93_s16 }
   0xf   :  { %96 = dma.hbm_to_vmem [thread:$0]  %s92_s12, 64, %s94_s16, [#allocation13]  }
  0x10   :  { %s30_s18 = sshll.u32 %s5767_s17, 4  ;;  %s52_s6 = sshll.u32 %s6003_s2, 4  ;;  %s31_s18 = int_to_ptr.vmem [resolvable:$true] %s30_s18  ;;  %s53_s6 = int_to_ptr.hbm [resolvable:$true] %s52_s6 }
  0x11   :  { %33 = dma.hbm_to_vmem [thread:$0]  %s29_s14, 64, %s31_s18, [#allocation5]  }
  0x12   :  { %s77_s23 = sshll.u32 %s6006_s5, 4  ;;  %s5768_s24 = smov [#allocation8]   ;;  %s78_s23 = int_to_ptr.hbm [resolvable:$true] %s77_s23 }
  0x13   :  { %s54_s0 = sshll.u32 %s5768_s24, 4  ;;  %s5769_s25 = smov [#allocation11]   ;;  %s55_s0 = int_to_ptr.vmem [resolvable:$true] %s54_s0 }
  0x14   :  { %57 = dma.hbm_to_vmem [thread:$0]  %s53_s6, 64, %s55_s0, [#allocation7]  }
  0x15   :  { %s79_s26 = sshll.u32 %s5769_s25, 4  ;;  %s101_s30 = sshll.u32 %s6008_s7, 4  ;;  %s80_s26 = int_to_ptr.vmem [resolvable:$true] %s79_s26  ;;  %s102_s30 = int_to_ptr.hbm [resolvable:$true] %s101_s30 }
  0x16   :  { %85 = dma.hbm_to_vmem [thread:$0]  %s78_s23, 16384, %s80_s26, [#allocation10], %s5763_s27, %s5763_s27, %s5764_s10  }
  0x17   :  { %s117_s5 = sshll.u32 %s6010_s9, 4  ;;  %s5770_s12 = smov [#allocation14]   ;;  %s118_s5 = int_to_ptr.hbm [resolvable:$true] %s117_s5 }
  0x18   :  { %s103_s3 = sshll.u32 %s5770_s12, 4  ;;  %s5771_s13 = smov [#allocation15]   ;;  %s104_s3 = int_to_ptr.vmem [resolvable:$true] %s103_s3 }
  0x19   :  { %109 = dma.hbm_to_vmem [thread:$0]  %s102_s30, 16384, %s104_s3, [#allocation13], %s5763_s27, %s5763_s27, %s5764_s10  }
  0x1a   :  { %s119_s7 = sshll.u32 %s5771_s13, 4  ;;  %s120_s7 = int_to_ptr.vmem [resolvable:$true] %s119_s7 }
  0x1b   :  { %122 = dma.hbm_to_vmem [thread:$0]  %s118_s5, 64, %s120_s7, [#allocation16]  }
  0x1c   :  { %5752 = dma.done.wait [#allocation5], 64  }
  0x1d   :  { %5753 = vsyncadd [#allocation5], 4294967232 }
  0x1e   :  { %5754 = dma.done.wait [#allocation7], 4160  }
  0x1f   :  { %5755 = vsyncadd [#allocation7], 4294963136 }
  0x20   :  { %5756 = dma.done.wait [#allocation10], 32768  }
  0x21   :  { %5757 = vsyncadd [#allocation10], 4294934528 }
  0x22   :  { %5758 = dma.done.wait [#allocation13], 16448  }
  0x23   :  { %5759 = vsyncadd [#allocation13], 4294950848 }
  0x24   :  { %5760 = dma.done.wait [#allocation16], 64  }
  0x25   :  { %5761 = vsyncadd [#allocation16], 4294967232  ;;  %v5772_v1 = vmov 0   ;;  %v3577_v2 = vld [vmem:[#allocation6 + $0xe0] sm:$0xf]  ;;  %vm160_vm0 = vcmask 76800  }
  0x26   :  { %158 = vst [vmem:[#allocation2] sm:$0xf] %v5772_v1  ;;  %v5158_v3 = vld [vmem:[#allocation6 + $0xec] sm:$0xf0]  ;;  %v5156_v4 = vld [vmem:[#allocation6 + $0xe4] sm:$0xf] }
  0x27   :  { %v3578_v5 = vor.u32 %v5158_v3, %v3577_v2  ;;  %v3579_v6 = vld [vmem:[#allocation6 + $0xf0] sm:$0xf0]  ;;  %v3585_v7 = vld [vmem:[#allocation6 + $0xe8] sm:$0xf]  ;;  %v5159_v8 = vld [vmem:[#allocation6 + $0xf4] sm:$0xf0] }
  0x28   :  { %v3582_v9 = vor.u32 %v5156_v4, %v3579_v6  ;;  %v3586_v10 = vor.u32 %v5159_v8, %v3585_v7  ;;  %v5157_v11 = vld [vmem:[#allocation6 + $0xec] sm:$0xf]  ;;  %v3587_v12 = vld [vmem:[#allocation6 + $0xf8] sm:$0xf0]  ;;  %v3561_v13 = vld [vmem:[#allocation6 + $0xc0] sm:$0xf] }
  0x29   :  { %365 = vmatpush.bf16.msra.mxu0 %v3578_v5  ;;  %v3590_v14 = vor.u32 %v5157_v11, %v3587_v12  ;;  %v5154_v15 = vld [vmem:[#allocation6 + $0xcc] sm:$0xf0]  ;;  %v5152_v16 = vld [vmem:[#allocation6 + $0xc4] sm:$0xf]  ;;  %v3563_v17 = vld [vmem:[#allocation6 + $0xd0] sm:$0xf0] }
  0x2a   :  { %378 = vmatpush.bf16.msra.mxu1 %v3582_v9  ;;  %391 = vmatpush.bf16.msra.mxu2 %v3586_v10  ;;  %v3562_v18 = vor.u32 %v5154_v15, %v3561_v13  ;;  %v3566_v19 = vor.u32 %v5152_v16, %v3563_v17  ;;  %v3569_v20 = vld [vmem:[#allocation6 + $0xc8] sm:$0xf]  ;;  %v5155_v21 = vld [vmem:[#allocation6 + $0xd4] sm:$0xf0]  ;;  %v5153_v22 = vld [vmem:[#allocation6 + $0xcc] sm:$0xf] }
  0x2b   :  { %404 = vmatpush.bf16.msra.mxu3 %v3590_v14  ;;  %v3570_v23 = vor.u32 %v5155_v21, %v3569_v20  ;;  %v3571_v24 = vld [vmem:[#allocation6 + $0xd8] sm:$0xf0]  ;;  %v3545_v25 = vld [vmem:[#allocation6 + $0xa0] sm:$0xf]  ;;  %v5150_v26 = vld [vmem:[#allocation6 + $0xac] sm:$0xf0] }
  0x2c   :  { %v3574_v27 = vor.u32 %v5153_v22, %v3571_v24  ;;  %v5148_v28 = vld [vmem:[#allocation6 + $0xa4] sm:$0xf]  ;;  %v3547_v29 = vld [vmem:[#allocation6 + $0xb0] sm:$0xf0]  ;;  %v3553_v30 = vld [vmem:[#allocation6 + $0xa8] sm:$0xf]  ;;  %v3546_v31 = vor.u32 %v5150_v26, %v3545_v25 }
  0x2d   :  { %366 = vmatpush.bf16.msra.mxu0 %v3562_v18  ;;  %v5151_v32 = vld [vmem:[#allocation6 + $0xb4] sm:$0xf0]  ;;  %v5149_v33 = vld [vmem:[#allocation6 + $0xac] sm:$0xf]  ;;  %v3555_v34 = vld [vmem:[#allocation6 + $0xb8] sm:$0xf0]  ;;  %v3550_v35 = vor.u32 %v5148_v28, %v3547_v29 }
  0x2e   :  { %379 = vmatpush.bf16.msra.mxu1 %v3566_v19  ;;  %392 = vmatpush.bf16.msra.mxu2 %v3570_v23  ;;  %v3554_v36 = vor.u32 %v5151_v32, %v3553_v30  ;;  %v3529_v37 = vld [vmem:[#allocation6 + $0x80] sm:$0xf]  ;;  %v5146_v38 = vld [vmem:[#allocation6 + $0x8c] sm:$0xf0]  ;;  %v5144_v39 = vld [vmem:[#allocation6 + $0x84] sm:$0xf]  ;;  %v3558_v40 = vor.u32 %v5149_v33, %v3555_v34 }
  0x2f   :  { %405 = vmatpush.bf16.msra.mxu3 %v3574_v27  ;;  %v3531_v41 = vld [vmem:[#allocation6 + $0x90] sm:$0xf0]  ;;  %v3537_v42 = vld [vmem:[#allocation6 + $0x88] sm:$0xf]  ;;  %v5147_v43 = vld [vmem:[#allocation6 + $0x94] sm:$0xf0]  ;;  %v3530_v46 = vor.u32 %v5146_v38, %v3529_v37 }
  0x30   :  { %v5145_v44 = vld [vmem:[#allocation6 + $0x8c] sm:$0xf]  ;;  %v3539_v45 = vld [vmem:[#allocation6 + $0x98] sm:$0xf0]  ;;  %v3534_v47 = vor.u32 %v5144_v39, %v3531_v41  ;;  %v3538_v48 = vor.u32 %v5147_v43, %v3537_v42  ;;  %v3513_v49 = vld [vmem:[#allocation6 + $0x60] sm:$0xf] }
  0x31   :  { %367 = vmatpush.bf16.msra.mxu0 %v3546_v31  ;;  %v5142_v50 = vld [vmem:[#allocation6 + $0x6c] sm:$0xf0]  ;;  %v5140_v51 = vld [vmem:[#allocation6 + $0x64] sm:$0xf]  ;;  %v3542_v52 = vor.u32 %v5145_v44, %v3539_v45  ;;  %v3515_v53 = vld [vmem:[#allocation6 + $0x70] sm:$0xf0] }
  0x32   :  { %380 = vmatpush.bf16.msra.mxu1 %v3550_v35  ;;  %393 = vmatpush.bf16.msra.mxu2 %v3554_v36  ;;  %v3521_v54 = vld [vmem:[#allocation6 + $0x68] sm:$0xf]  ;;  %v5143_v55 = vld [vmem:[#allocation6 + $0x74] sm:$0xf0]  ;;  %v5141_v56 = vld [vmem:[#allocation6 + $0x6c] sm:$0xf]  ;;  %v3514_v58 = vor.u32 %v5142_v50, %v3513_v49  ;;  %v3518_v59 = vor.u32 %v5140_v51, %v3515_v53 }
  0x33   :  { %406 = vmatpush.bf16.msra.mxu3 %v3558_v40  ;;  %v3523_v57 = vld [vmem:[#allocation6 + $0x78] sm:$0xf0]  ;;  %v3522_v60 = vor.u32 %v5143_v55, %v3521_v54  ;;  %v3497_v61 = vld [vmem:[#allocation6 + $0x40] sm:$0xf]  ;;  %v5138_v62 = vld [vmem:[#allocation6 + $0x4c] sm:$0xf0] }
  0x34   :  { %v5136_v63 = vld [vmem:[#allocation6 + $0x44] sm:$0xf]  ;;  %v3526_v0 = vor.u32 %v5141_v56, %v3523_v57  ;;  %v3499_v1 = vld [vmem:[#allocation6 + $0x50] sm:$0xf0]  ;;  %v3505_v2 = vld [vmem:[#allocation6 + $0x48] sm:$0xf]  ;;  %v3498_v6 = vor.u32 %v5138_v62, %v3497_v61 }
  0x35   :  { %368 = vmatpush.bf16.msra.mxu0 %v3530_v46  ;;  %v5139_v3 = vld [vmem:[#allocation6 + $0x54] sm:$0xf0]  ;;  %v5137_v4 = vld [vmem:[#allocation6 + $0x4c] sm:$0xf]  ;;  %v3507_v5 = vld [vmem:[#allocation6 + $0x58] sm:$0xf0]  ;;  %v3502_v8 = vor.u32 %v5136_v63, %v3499_v1 }
  0x36   :  { %381 = vmatpush.bf16.msra.mxu1 %v3534_v47  ;;  %394 = vmatpush.bf16.msra.mxu2 %v3538_v48  ;;  %v3481_v7 = vld [vmem:[#allocation6 + $0x20] sm:$0xf]  ;;  %v3506_v9 = vor.u32 %v5139_v3, %v3505_v2  ;;  %v5134_v10 = vld [vmem:[#allocation6 + $0x2c] sm:$0xf0]  ;;  %v5132_v11 = vld [vmem:[#allocation6 + $0x24] sm:$0xf]  ;;  %v3510_v13 = vor.u32 %v5137_v4, %v3507_v5 }
  0x37   :  { %407 = vmatpush.bf16.msra.mxu3 %v3542_v52  ;;  %v3483_v12 = vld [vmem:[#allocation6 + $0x30] sm:$0xf0]  ;;  %v3489_v14 = vld [vmem:[#allocation6 + $0x28] sm:$0xf]  ;;  %v5135_v15 = vld [vmem:[#allocation6 + $0x34] sm:$0xf0]  ;;  %v3482_v19 = vor.u32 %v5134_v10, %v3481_v7 }
  0x38   :  { %v159_v16 = vld [vmem:[#allocation4] sm:$0xf]  ;;  %v5133_v17 = vld [vmem:[#allocation6 + $0x2c] sm:$0xf]  ;;  %v3465_v20 = vld [vmem:[#allocation6] sm:$0xf]  ;;  %v3486_v21 = vor.u32 %v5132_v11, %v3483_v12  ;;  %v3490_v22 = vor.u32 %v5135_v15, %v3489_v14 }
  0x39   :  { %369 = vmatpush.bf16.msra.mxu0 %v3514_v58  ;;  %v3491_v18 = vld [vmem:[#allocation6 + $0x38] sm:$0xf0]  ;;  %161 = vst.msk [vmem:[#allocation2] sm:$0xf] %vm160_vm0, %v159_v16  ;;  %v5130_v23 = vld [vmem:[#allocation6 + $0xc] sm:$0xf0] }
  0x3a   :  { %382 = vmatpush.bf16.msra.mxu1 %v3518_v59  ;;  %395 = vmatpush.bf16.msra.mxu2 %v3522_v60  ;;  %v5128_v24 = vld [vmem:[#allocation6 + $0x4] sm:$0xf]  ;;  %v3467_v25 = vld [vmem:[#allocation6 + $0x10] sm:$0xf0]  ;;  %v3494_v26 = vor.u32 %v5133_v17, %v3491_v18  ;;  %v3473_v27 = vld [vmem:[#allocation6 + $0x8] sm:$0xf]  ;;  %v3466_v33 = vor.u32 %v5130_v23, %v3465_v20 }
  0x3b   :  { %408 = vmatpush.bf16.msra.mxu3 %v3526_v0  ;;  %v5131_v28 = vld [vmem:[#allocation6 + $0x14] sm:$0xf0]  ;;  %v5129_v29 = vld [vmem:[#allocation6 + $0xc] sm:$0xf]  ;;  %v3475_v30 = vld [vmem:[#allocation6 + $0x18] sm:$0xf0]  ;;  %v3470_v36 = vor.u32 %v5128_v24, %v3467_v25 }
  0x3c   :  { %v3705_v31 = vld [vmem:[#allocation9 + $0xe0] sm:$0xf]  ;;  %v5190_v32 = vld [vmem:[#allocation9 + $0xec] sm:$0xf0]  ;;  %v3474_v37 = vor.u32 %v5131_v28, %v3473_v27  ;;  %v3478_v38 = vor.u32 %v5129_v29, %v3475_v30  ;;  %vm3452_vm4 = vcmask 7168  }
  0x3d   :  { %370 = vmatpush.bf16.msra.mxu0 %v3498_v6  ;;  %v3833_v34 = vld [vmem:[#allocation9 + $0x1e0] sm:$0xf]  ;;  %v5222_v35 = vld [vmem:[#allocation9 + $0x1ec] sm:$0xf0]  ;;  %v3706_v39 = vor.u32 %v5190_v32, %v3705_v31 }
  0x3e   :  { %383 = vmatpush.bf16.msra.mxu1 %v3502_v8  ;;  %396 = vmatpush.bf16.msra.mxu2 %v3506_v9  ;;  %v3689_v40 = vld [vmem:[#allocation9 + $0xc0] sm:$0xf]  ;;  %v5254_v42 = vld [vmem:[#allocation9 + $0x2ec] sm:$0xf0]  ;;  %v3834_v43 = vor.u32 %v5222_v35, %v3833_v34 }
  0x3f   :  { %409 = vmatpush.bf16.msra.mxu3 %v3510_v13  ;;  %v3961_v41 = vld [vmem:[#allocation9 + $0x2e0] sm:$0xf]  ;;  %v5186_v44 = vld [vmem:[#allocation9 + $0xcc] sm:$0xf0] }
  0x40   :  { %v4089_v45 = vld [vmem:[#allocation9 + $0x3e0] sm:$0xf]  ;;  %v5286_v46 = vld [vmem:[#allocation9 + $0x3ec] sm:$0xf0]  ;;  %v3962_v50 = vor.u32 %v5254_v42, %v3961_v41  ;;  %v3690_v51 = vor.u32 %v5186_v44, %v3689_v40 }
  0x41   :  { %371 = vmatpush.bf16.msra.mxu0 %v3482_v19  ;;  %v162_v47 = vld [vmem:[#allocation2] sm:$0xf]  ;;  %v3817_v48 = vld [vmem:[#allocation9 + $0x1c0] sm:$0xf]  ;;  %v4090_v52 = vor.u32 %v5286_v46, %v4089_v45 }
  0x42   :  { %384 = vmatpush.bf16.msra.mxu1 %v3486_v21  ;;  %397 = vmatpush.bf16.msra.mxu2 %v3490_v22  ;;  %v5218_v49 = vld [vmem:[#allocation9 + $0x1cc] sm:$0xf0]  ;;  %v3673_v53 = vld [vmem:[#allocation9 + $0xa0] sm:$0xf] }
  0x43   :  { %410 = vmatpush.bf16.msra.mxu3 %v3494_v26  ;;  %v3945_v54 = vld [vmem:[#allocation9 + $0x2c0] sm:$0xf]  ;;  %v5250_v55 = vld [vmem:[#allocation9 + $0x2cc] sm:$0xf0]  ;;  %v3818_v56 = vor.u32 %v5218_v49, %v3817_v48 }
  0x44   :  { %v5182_v57 = vld [vmem:[#allocation9 + $0xac] sm:$0xf0]  ;;  %v4073_v58 = vld [vmem:[#allocation9 + $0x3c0] sm:$0xf]  ;;  %v3946_v62 = vor.u32 %v5250_v55, %v3945_v54 }
  0x45   :  { %372 = vmatpush.bf16.msra.mxu0 %v3466_v33  ;;  %v5282_v59 = vld [vmem:[#allocation9 + $0x3cc] sm:$0xf0]  ;;  %v3801_v60 = vld [vmem:[#allocation9 + $0x1a0] sm:$0xf]  ;;  %v3674_v63 = vor.u32 %v5182_v57, %v3673_v53 }
  0x46   :  { %385 = vmatpush.bf16.msra.mxu1 %v3470_v36  ;;  %398 = vmatpush.bf16.msra.mxu2 %v3474_v37  ;;  %v5214_v61 = vld [vmem:[#allocation9 + $0x1ac] sm:$0xf0]  ;;  %v4074_v0 = vor.u32 %v5282_v59, %v4073_v58  ;;  %v3657_v1 = vld [vmem:[#allocation9 + $0x80] sm:$0xf]  ;;  %v5188_v58 = vld [vmem:[#allocation9 + $0xe4] sm:$0xf] }
  0x47   :  { %411 = vmatpush.bf16.msra.mxu3 %v3478_v38  ;;  %v3929_v2 = vld [vmem:[#allocation9 + $0x2a0] sm:$0xf]  ;;  %v5246_v3 = vld [vmem:[#allocation9 + $0x2ac] sm:$0xf0]  ;;  %v3802_v4 = vor.u32 %v5214_v61, %v3801_v60  ;;  %v3707_v59 = vld [vmem:[#allocation9 + $0xf0] sm:$0xf0] }
  0x48   :  { %373 = vmatmul.bf16.vlgmr.msra.gmra.mxu0 %v162_v47  ;;  %v5178_v5 = vld [vmem:[#allocation9 + $0x8c] sm:$0xf0]  ;;  %v4057_v6 = vld [vmem:[#allocation9 + $0x3a0] sm:$0xf]  ;;  %v3930_v10 = vor.u32 %v5246_v3, %v3929_v2  ;;  %v5220_v60 = vld [vmem:[#allocation9 + $0x1e4] sm:$0xf] }
  0x49   :  { %1203 = vmatpush.bf16.msrb.mxu0 %v3706_v39  ;;  %386 = vmatmul.bf16.vlgmr.msra.gmra.mxu1 %v162_v47  ;;  %v5278_v7 = vld [vmem:[#allocation9 + $0x3ac] sm:$0xf0]  ;;  %v3785_v8 = vld [vmem:[#allocation9 + $0x180] sm:$0xf]  ;;  %v3658_v11 = vor.u32 %v5178_v5, %v3657_v1  ;;  %v3835_v61 = vld [vmem:[#allocation9 + $0x1f0] sm:$0xf0] }
  0x4a   :  { %1216 = vmatpush.bf16.msrb.mxu1 %v3834_v43  ;;  %399 = vmatmul.bf16.vlgmr.msra.gmra.mxu2 %v162_v47  ;;  %v5210_v9 = vld [vmem:[#allocation9 + $0x18c] sm:$0xf0]  ;;  %v4058_v12 = vor.u32 %v5278_v7, %v4057_v6  ;;  %v3641_v13 = vld [vmem:[#allocation9 + $0x60] sm:$0xf]  ;;  %v5184_v2 = vld [vmem:[#allocation9 + $0xc4] sm:$0xf]  ;;  %v3710_v6 = vor.u32 %v5188_v58, %v3707_v59 }
  0x4b   :  { %412 = vmatmul.bf16.vlgmr.msra.gmra.mxu3 %v162_v47  ;;  %1229 = vmatpush.bf16.msrb.mxu2 %v3962_v50  ;;  %v3913_v14 = vld [vmem:[#allocation9 + $0x280] sm:$0xf]  ;;  %v5242_v15 = vld [vmem:[#allocation9 + $0x28c] sm:$0xf0]  ;;  %v3786_v16 = vor.u32 %v5210_v9, %v3785_v8  ;;  %v5252_v8 = vld [vmem:[#allocation9 + $0x2e4] sm:$0xf] }
  0x4c   :  { %1242 = vmatpush.bf16.msrb.mxu3 %v4090_v52  ;;  %v5174_v17 = vld [vmem:[#allocation9 + $0x6c] sm:$0xf0]  ;;  %v4041_v18 = vld [vmem:[#allocation9 + $0x380] sm:$0xf]  ;;  %v3914_v22 = vor.u32 %v5242_v15, %v3913_v14  ;;  %v3963_v9 = vld [vmem:[#allocation9 + $0x2f0] sm:$0xf0] }
  0x4d   :  { %1204 = vmatpush.bf16.msrb.mxu0 %v3690_v51  ;;  %v5274_v19 = vld [vmem:[#allocation9 + $0x38c] sm:$0xf0]  ;;  %v3769_v20 = vld [vmem:[#allocation9 + $0x160] sm:$0xf]  ;;  %v3642_v23 = vor.u32 %v5174_v17, %v3641_v13  ;;  %v4091_v13 = vld [vmem:[#allocation9 + $0x3f0] sm:$0xf0] }
  0x4e   :  { %1217 = vmatpush.bf16.msrb.mxu1 %v3818_v56  ;;  %v5206_v21 = vld [vmem:[#allocation9 + $0x16c] sm:$0xf0]  ;;  %v4042_v24 = vor.u32 %v5274_v19, %v4041_v18  ;;  %v3625_v25 = vld [vmem:[#allocation9 + $0x40] sm:$0xf]  ;;  %v5216_v14 = vld [vmem:[#allocation9 + $0x1c4] sm:$0xf]  ;;  %v3966_v18 = vor.u32 %v5252_v8, %v3963_v9 }
  0x4f   :  { %1230 = vmatpush.bf16.msrb.mxu2 %v3946_v62  ;;  %v3897_v26 = vld [vmem:[#allocation9 + $0x260] sm:$0xf]  ;;  %v5238_v27 = vld [vmem:[#allocation9 + $0x26c] sm:$0xf0]  ;;  %v3770_v28 = vor.u32 %v5206_v21, %v3769_v20  ;;  %v3819_v15 = vld [vmem:[#allocation9 + $0x1d0] sm:$0xf0] }
  0x50   :  { %1243 = vmatpush.bf16.msrb.mxu3 %v4074_v0  ;;  %v5170_v29 = vld [vmem:[#allocation9 + $0x4c] sm:$0xf0]  ;;  %v4025_v30 = vld [vmem:[#allocation9 + $0x360] sm:$0xf]  ;;  %v3898_v34 = vor.u32 %v5238_v27, %v3897_v26  ;;  %v5180_v21 = vld [vmem:[#allocation9 + $0xa4] sm:$0xf] }
  0x51   :  { %1205 = vmatpush.bf16.msrb.mxu0 %v3674_v63  ;;  %v5270_v31 = vld [vmem:[#allocation9 + $0x36c] sm:$0xf0]  ;;  %v3753_v32 = vld [vmem:[#allocation9 + $0x140] sm:$0xf]  ;;  %v3626_v35 = vor.u32 %v5170_v29, %v3625_v25  ;;  %v3675_v25 = vld [vmem:[#allocation9 + $0xb0] sm:$0xf0] }
  0x52   :  { %1218 = vmatpush.bf16.msrb.mxu1 %v3802_v4  ;;  %v5202_v33 = vld [vmem:[#allocation9 + $0x14c] sm:$0xf0]  ;;  %v4026_v36 = vor.u32 %v5270_v31, %v4025_v30  ;;  %v3609_v37 = vld [vmem:[#allocation9 + $0x20] sm:$0xf]  ;;  %v5280_v26 = vld [vmem:[#allocation9 + $0x3c4] sm:$0xf]  ;;  %v3678_v31 = vor.u32 %v5180_v21, %v3675_v25 }
  0x53   :  { %1231 = vmatpush.bf16.msrb.mxu2 %v3930_v10  ;;  %v3881_v38 = vld [vmem:[#allocation9 + $0x240] sm:$0xf]  ;;  %v5234_v39 = vld [vmem:[#allocation9 + $0x24c] sm:$0xf0]  ;;  %v3754_v40 = vor.u32 %v5202_v33, %v3753_v32  ;;  %v3838_v10 = vor.u32 %v5220_v60, %v3835_v61  ;;  %v4075_v27 = vld [vmem:[#allocation9 + $0x3d0] sm:$0xf0] }
  0x54   :  { %1244 = vmatpush.bf16.msrb.mxu3 %v4058_v12  ;;  %v5166_v41 = vld [vmem:[#allocation9 + $0x2c] sm:$0xf0]  ;;  %v4009_v42 = vld [vmem:[#allocation9 + $0x340] sm:$0xf]  ;;  %v3882_v46 = vor.u32 %v5234_v39, %v3881_v38  ;;  %v5284_v12 = vld [vmem:[#allocation9 + $0x3e4] sm:$0xf]  ;;  %v4078_v32 = vor.u32 %v5280_v26, %v4075_v27 }
  0x55   :  { %1206 = vmatpush.bf16.msrb.mxu0 %v3658_v11  ;;  %v5266_v43 = vld [vmem:[#allocation9 + $0x34c] sm:$0xf0]  ;;  %v3737_v44 = vld [vmem:[#allocation9 + $0x120] sm:$0xf]  ;;  %v3610_v48 = vor.u32 %v5166_v41, %v3609_v37  ;;  %v3691_v11 = vld [vmem:[#allocation9 + $0xd0] sm:$0xf0]  ;;  %v4094_v20 = vor.u32 %v5284_v12, %v4091_v13 }
  0x56   :  { %1219 = vmatpush.bf16.msrb.mxu1 %v3786_v16  ;;  %v5198_v45 = vld [vmem:[#allocation9 + $0x12c] sm:$0xf0]  ;;  %v3593_v47 = vld [vmem:[#allocation9] sm:$0xf]  ;;  %v4010_v49 = vor.u32 %v5266_v43, %v4009_v42  ;;  %v3694_v19 = vor.u32 %v5184_v2, %v3691_v11  ;;  %v3803_v29 = vld [vmem:[#allocation9 + $0x1b0] sm:$0xf0] }
  0x57   :  { %1232 = vmatpush.bf16.msrb.mxu2 %v3914_v22  ;;  %v5162_v50 = vld [vmem:[#allocation9 + $0xc] sm:$0xf0]  ;;  %v3865_v51 = vld [vmem:[#allocation9 + $0x220] sm:$0xf]  ;;  %v3738_v53 = vor.u32 %v5198_v45, %v3737_v44  ;;  %v5248_v22 = vld [vmem:[#allocation9 + $0x2c4] sm:$0xf] }
  0x58   :  { %1245 = vmatpush.bf16.msrb.mxu3 %v4042_v24  ;;  %v5230_v52 = vld [vmem:[#allocation9 + $0x22c] sm:$0xf0]  ;;  %v3721_v54 = vld [vmem:[#allocation9 + $0x100] sm:$0xf]  ;;  %v3594_v0 = vor.u32 %v5162_v50, %v3593_v47  ;;  %v3822_v24 = vor.u32 %v5216_v14, %v3819_v15  ;;  %v5176_v33 = vld [vmem:[#allocation9 + $0x84] sm:$0xf] }
  0x59   :  { %1207 = vmatpush.bf16.msrb.mxu0 %v3642_v23  ;;  %v3993_v55 = vld [vmem:[#allocation9 + $0x320] sm:$0xf]  ;;  %v5262_v56 = vld [vmem:[#allocation9 + $0x32c] sm:$0xf0]  ;;  %v3866_v62 = vor.u32 %v5230_v52, %v3865_v51  ;;  %v3947_v23 = vld [vmem:[#allocation9 + $0x2d0] sm:$0xf0] }
  0x5a   :  { %1220 = vmatpush.bf16.msrb.mxu1 %v3770_v28  ;;  %v5194_v57 = vld [vmem:[#allocation9 + $0x10c] sm:$0xf0]  ;;  %v3849_v63 = vld [vmem:[#allocation9 + $0x200] sm:$0xf]  ;;  %v3994_v1 = vor.u32 %v5262_v56, %v3993_v55  ;;  %v5212_v28 = vld [vmem:[#allocation9 + $0x1a4] sm:$0xf]  ;;  %v3950_v30 = vor.u32 %v5248_v22, %v3947_v23 }
  0x5b   :  { %1233 = vmatpush.bf16.msrb.mxu2 %v3898_v34  ;;  %v5226_v3 = vld [vmem:[#allocation9 + $0x20c] sm:$0xf0]  ;;  %v3977_v4 = vld [vmem:[#allocation9 + $0x300] sm:$0xf]  ;;  %v3722_v5 = vor.u32 %v5194_v57, %v3721_v54  ;;  %v5244_v34 = vld [vmem:[#allocation9 + $0x2a4] sm:$0xf] }
  0x5c   :  { %1246 = vmatpush.bf16.msrb.mxu3 %v4026_v36  ;;  %v5258_v7 = vld [vmem:[#allocation9 + $0x30c] sm:$0xf0]  ;;  %v3850_v16 = vor.u32 %v5226_v3, %v3849_v63  ;;  %v3806_v36 = vor.u32 %v5212_v28, %v3803_v29  ;;  %v3659_v37 = vld [vmem:[#allocation9 + $0x90] sm:$0xf0]  ;;  %v5276_v38 = vld [vmem:[#allocation9 + $0x3a4] sm:$0xf] }
  0x5d   :  { %1208 = vmatpush.bf16.msrb.mxu0 %v3626_v35  ;;  %v3978_v17 = vor.u32 %v5258_v7, %v3977_v4  ;;  %v3931_v35 = vld [vmem:[#allocation9 + $0x2b0] sm:$0xf0]  ;;  %v3662_v43 = vor.u32 %v5176_v33, %v3659_v37  ;;  %v5172_v45 = vld [vmem:[#allocation9 + $0x64] sm:$0xf] }
  0x5e   :  { %1221 = vmatpush.bf16.msrb.mxu1 %v3754_v40  ;;  %v4059_v39 = vld [vmem:[#allocation9 + $0x3b0] sm:$0xf0]  ;;  %v5208_v40 = vld [vmem:[#allocation9 + $0x184] sm:$0xf]  ;;  %v3934_v42 = vor.u32 %v5244_v34, %v3931_v35 }
  0x5f   :  { %1234 = vmatpush.bf16.msrb.mxu2 %v3882_v46  ;;  %v3787_v41 = vld [vmem:[#allocation9 + $0x190] sm:$0xf0]  ;;  %v4062_v44 = vor.u32 %v5276_v38, %v4059_v39  ;;  %v5240_v46 = vld [vmem:[#allocation9 + $0x284] sm:$0xf] }
  0x60   :  { %1247 = vmatpush.bf16.msrb.mxu3 %v4010_v49  ;;  %v3915_v47 = vld [vmem:[#allocation9 + $0x290] sm:$0xf0]  ;;  %v5272_v50 = vld [vmem:[#allocation9 + $0x384] sm:$0xf] }
  0x61   :  { %1209 = vmatpush.bf16.msrb.mxu0 %v3610_v48  ;;  %v3790_v48 = vor.u32 %v5208_v40, %v3787_v41  ;;  %v3643_v49 = vld [vmem:[#allocation9 + $0x70] sm:$0xf0]  ;;  %v5204_v52 = vld [vmem:[#allocation9 + $0x164] sm:$0xf]  ;;  %v3918_v54 = vor.u32 %v5240_v46, %v3915_v47  ;;  %v5223_v46 = vld [vmem:[#allocation9 + $0x1f4] sm:$0xf0] }
  0x62   :  { %1222 = vmatpush.bf16.msrb.mxu1 %v3738_v53  ;;  %v4043_v51 = vld [vmem:[#allocation9 + $0x390] sm:$0xf0]  ;;  %v3646_v55 = vor.u32 %v5172_v45, %v3643_v49  ;;  %v5168_v58 = vld [vmem:[#allocation9 + $0x44] sm:$0xf]  ;;  %v3841_v45 = vld [vmem:[#allocation9 + $0x1e8] sm:$0xf] }
  0x63   :  { %1235 = vmatpush.bf16.msrb.mxu2 %v3866_v62  ;;  %v3771_v53 = vld [vmem:[#allocation9 + $0x170] sm:$0xf0]  ;;  %v4046_v56 = vor.u32 %v5272_v50, %v4043_v51  ;;  %v5200_v60 = vld [vmem:[#allocation9 + $0x144] sm:$0xf] }
  0x64   :  { %1248 = vmatpush.bf16.msrb.mxu3 %v3994_v1  ;;  %v3774_v57 = vor.u32 %v5204_v52, %v3771_v53  ;;  %v3627_v59 = vld [vmem:[#allocation9 + $0x50] sm:$0xf0]  ;;  %v5268_v2 = vld [vmem:[#allocation9 + $0x364] sm:$0xf]  ;;  %v3842_v53 = vor.u32 %v5223_v46, %v3841_v45 }
  0x65   :  { %1210 = vmatpush.bf16.msrb.mxu0 %v3594_v0  ;;  %v3755_v61 = vld [vmem:[#allocation9 + $0x150] sm:$0xf0]  ;;  %v3630_v62 = vor.u32 %v5168_v58, %v3627_v59  ;;  %v5236_v0 = vld [vmem:[#allocation9 + $0x264] sm:$0xf]  ;;  %v5219_v58 = vld [vmem:[#allocation9 + $0x1d4] sm:$0xf0] }
  0x66   :  { %1223 = vmatpush.bf16.msrb.mxu1 %v3722_v5  ;;  %v3758_v63 = vor.u32 %v5200_v60, %v3755_v61  ;;  %v3899_v1 = vld [vmem:[#allocation9 + $0x270] sm:$0xf0]  ;;  %v5196_v9 = vld [vmem:[#allocation9 + $0x124] sm:$0xf] }
  0x67   :  { %1236 = vmatpush.bf16.msrb.mxu2 %v3850_v16  ;;  %v3902_v3 = vor.u32 %v5236_v0, %v3899_v1  ;;  %v4027_v4 = vld [vmem:[#allocation9 + $0x370] sm:$0xf0]  ;;  %v5232_v12 = vld [vmem:[#allocation9 + $0x244] sm:$0xf]  ;;  %v3969_v0 = vld [vmem:[#allocation9 + $0x2e8] sm:$0xf] }
  0x68   :  { %1249 = vmatpush.bf16.msrb.mxu3 %v3978_v17  ;;  %v4030_v5 = vor.u32 %v5268_v2, %v4027_v4  ;;  %v3611_v7 = vld [vmem:[#allocation9 + $0x30] sm:$0xf0]  ;;  %v5264_v14 = vld [vmem:[#allocation9 + $0x344] sm:$0xf]  ;;  %v5255_v1 = vld [vmem:[#allocation9 + $0x2f4] sm:$0xf0] }
  0x69   :  { %1255 = vmatpush.bf16.msra.mxu0 %v3710_v6  ;;  %v5164_v6 = vld [vmem:[#allocation9 + $0x24] sm:$0xf]  ;;  %v3883_v13 = vld [vmem:[#allocation9 + $0x250] sm:$0xf0]  ;;  %v4097_v2 = vld [vmem:[#allocation9 + $0x3e8] sm:$0xf] }
  0x6a   :  { %1268 = vmatpush.bf16.msra.mxu1 %v3838_v10  ;;  %v3614_v8 = vor.u32 %v5164_v6, %v3611_v7  ;;  %v3739_v10 = vld [vmem:[#allocation9 + $0x130] sm:$0xf0]  ;;  %v3886_v15 = vor.u32 %v5232_v12, %v3883_v13  ;;  %v5260_v27 = vld [vmem:[#allocation9 + $0x324] sm:$0xf]  ;;  %v5287_v6 = vld [vmem:[#allocation9 + $0x3f4] sm:$0xf0]  ;;  %v3970_v13 = vor.u32 %v5255_v1, %v3969_v0 }
  0x6b   :  { %1281 = vmatpush.bf16.msra.mxu2 %v3966_v18  ;;  %v3742_v11 = vor.u32 %v5196_v9, %v3739_v10  ;;  %v4011_v16 = vld [vmem:[#allocation9 + $0x350] sm:$0xf0]  ;;  %v5160_v18 = vld [vmem:[#allocation9 + $0x4] sm:$0xf]  ;;  %v3681_v7 = vld [vmem:[#allocation9 + $0xa8] sm:$0xf] }
  0x6c   :  { %1294 = vmatpush.bf16.msra.mxu3 %v4094_v20  ;;  %v4014_v17 = vor.u32 %v5264_v14, %v4011_v16  ;;  %v5192_v20 = vld [vmem:[#allocation9 + $0x104] sm:$0xf]  ;;  %v3723_v22 = vld [vmem:[#allocation9 + $0x110] sm:$0xf0]  ;;  %v3809_v10 = vld [vmem:[#allocation9 + $0x1a8] sm:$0xf] }
  0x6d   :  { %1256 = vmatpush.bf16.msra.mxu0 %v3694_v19  ;;  %v3595_v19 = vld [vmem:[#allocation9 + $0x10] sm:$0xf0]  ;;  %v3726_v23 = vor.u32 %v5192_v20, %v3723_v22  ;;  %v5256_v33 = vld [vmem:[#allocation9 + $0x304] sm:$0xf]  ;;  %v5283_v22 = vld [vmem:[#allocation9 + $0x3d4] sm:$0xf0] }
  0x6e   :  { %1269 = vmatpush.bf16.msra.mxu1 %v3822_v24  ;;  %v3598_v21 = vor.u32 %v5160_v18, %v3595_v19  ;;  %v5228_v24 = vld [vmem:[#allocation9 + $0x224] sm:$0xf]  ;;  %v3867_v25 = vld [vmem:[#allocation9 + $0x230] sm:$0xf0]  ;;  %v5251_v18 = vld [vmem:[#allocation9 + $0x2d4] sm:$0xf0] }
  0x6f   :  { %1282 = vmatpush.bf16.msra.mxu2 %v3950_v30  ;;  %v3870_v26 = vor.u32 %v5228_v24, %v3867_v25  ;;  %v3995_v28 = vld [vmem:[#allocation9 + $0x330] sm:$0xf0]  ;;  %v5224_v30 = vld [vmem:[#allocation9 + $0x204] sm:$0xf]  ;;  %v4081_v19 = vld [vmem:[#allocation9 + $0x3c8] sm:$0xf] }
  0x70   :  { %1295 = vmatpush.bf16.msra.mxu3 %v4078_v32  ;;  %v3998_v29 = vor.u32 %v5260_v27, %v3995_v28  ;;  %v3979_v34 = vld [vmem:[#allocation9 + $0x310] sm:$0xf0]  ;;  %v5179_v24 = vld [vmem:[#allocation9 + $0x94] sm:$0xf0]  ;;  %v3793_v25 = vld [vmem:[#allocation9 + $0x188] sm:$0xf] }
  0x71   :  { %1257 = vmatpush.bf16.msra.mxu0 %v3678_v31  ;;  %v3851_v31 = vld [vmem:[#allocation9 + $0x210] sm:$0xf0]  ;;  %v3982_v35 = vor.u32 %v5256_v33, %v3979_v34  ;;  %v5247_v33 = vld [vmem:[#allocation9 + $0x2b4] sm:$0xf0]  ;;  %v3745_v1 = vld [vmem:[#allocation9 + $0x128] sm:$0xf] }
  0x72   :  { %1270 = vmatpush.bf16.msra.mxu1 %v3806_v36  ;;  %v3854_v32 = vor.u32 %v5224_v30, %v3851_v31  ;;  %v195_v36 = vld [vmem:[#allocation8] sm:$0xf]  ;;  %v4082_v30 = vor.u32 %v5283_v22, %v4081_v19  ;;  %v5167_v0 = vld [vmem:[#allocation9 + $0x34] sm:$0xf0]  ;;  %v5221_v19 = vld [vmem:[#allocation9 + $0x1ec] sm:$0xf] }
  0x73   :  { %1283 = vmatpush.bf16.msra.mxu2 %v3934_v42  ;;  %v197_v37 = vperm.slane %v195_v36, 0  ;;  %v198_v38 = vperm.slane %v195_v36, 1  ;;  %v3713_v42 = vld [vmem:[#allocation9 + $0xe8] sm:$0xf]  ;;  %v199_v49 = vperm.slane %v195_v36, 2  ;;  %v200_v52 = vperm.slane %v195_v36, 3 }
  0x74   :  { %1296 = vmatpush.bf16.msra.mxu3 %v4062_v44  ;;  %v5279_v36 = vld [vmem:[#allocation9 + $0x3b4] sm:$0xf0] }
  0x75   :  { %1258 = vmatpush.bf16.msra.mxu0 %v3662_v43  ;;  %v5191_v43 = vld [vmem:[#allocation9 + $0xf4] sm:$0xf0] }
  0x76   :  { %1271 = vmatpush.bf16.msra.mxu1 %v3790_v48  ;;  %v3714_v50 = vor.u32 %v5191_v43, %v3713_v42  ;;  %v3921_v43 = vld [vmem:[#allocation9 + $0x288] sm:$0xf] }
  0x77   :  { %1284 = vmatpush.bf16.msra.mxu2 %v3918_v54  ;;  %v3697_v54 = vld [vmem:[#allocation9 + $0xc8] sm:$0xf] }
  0x78   :  { %1297 = vmatpush.bf16.msra.mxu3 %v4046_v56 }
  0x79   :  { %1259 = vmatpush.bf16.msra.mxu0 %v3646_v55  ;;  %v5187_v55 = vld [vmem:[#allocation9 + $0xd4] sm:$0xf0] }
  0x7a   :  { %1272 = vmatpush.bf16.msra.mxu1 %v3774_v57  ;;  %v3825_v57 = vld [vmem:[#allocation9 + $0x1c8] sm:$0xf] }
  0x7b   :  { %1285 = vmatpush.bf16.msra.mxu2 %v3902_v3 }
  0x7c   :  { %1298 = vmatpush.bf16.msra.mxu3 %v4030_v5  ;;  %v3826_v5 = vor.u32 %v5219_v58, %v3825_v57  ;;  %v3905_v57 = vld [vmem:[#allocation9 + $0x268] sm:$0xf]  ;;  %v5239_v58 = vld [vmem:[#allocation9 + $0x274] sm:$0xf0] }
  0x7d   :  { %1260 = vmatpush.bf16.msra.mxu0 %v3630_v62 }
  0x7e   :  { %1273 = vmatpush.bf16.msra.mxu1 %v3758_v63  ;;  %v3698_v63 = vor.u32 %v5187_v55, %v3697_v54 }
  0x7f   :  { %1286 = vmatpush.bf16.msra.mxu2 %v3886_v15  ;;  %v4098_v15 = vor.u32 %v5287_v6, %v4097_v2  ;;  %v5199_v2 = vld [vmem:[#allocation9 + $0x134] sm:$0xf0] }
  0x80   :  { %1299 = vmatpush.bf16.msra.mxu3 %v4014_v17  ;;  %v3953_v17 = vld [vmem:[#allocation9 + $0x2c8] sm:$0xf]  ;;  %v5235_v6 = vld [vmem:[#allocation9 + $0x254] sm:$0xf0] }
  0x81   :  { %1261 = vmatpush.bf16.msra.mxu0 %v3614_v8  ;;  %v5183_v8 = vld [vmem:[#allocation9 + $0xb4] sm:$0xf0]  ;;  %v3954_v28 = vor.u32 %v5251_v18, %v3953_v17  ;;  %v3715_v18 = vld [vmem:[#allocation9 + $0xf8] sm:$0xf0] }
  0x82   :  { %1274 = vmatpush.bf16.msra.mxu1 %v3742_v11  ;;  %v5215_v11 = vld [vmem:[#allocation9 + $0x1b4] sm:$0xf0]  ;;  %v3682_v16 = vor.u32 %v5183_v8, %v3681_v7  ;;  %v4017_v7 = vld [vmem:[#allocation9 + $0x348] sm:$0xf] }
  0x83   :  { %1287 = vmatpush.bf16.msra.mxu2 %v3870_v26  ;;  %v5211_v26 = vld [vmem:[#allocation9 + $0x194] sm:$0xf0] }
  0x84   :  { %1300 = vmatpush.bf16.msra.mxu3 %v3998_v29  ;;  %v3794_v34 = vor.u32 %v5211_v26, %v3793_v25 }
  0x85   :  { %1262 = vmatpush.bf16.msra.mxu0 %v3598_v21  ;;  %v3810_v21 = vor.u32 %v5215_v11, %v3809_v10  ;;  %v5267_v10 = vld [vmem:[#allocation9 + $0x354] sm:$0xf0]  ;;  %v3601_v11 = vld [vmem:[#allocation9 + $0x8] sm:$0xf] }
  0x86   :  { %1275 = vmatpush.bf16.msra.mxu1 %v3726_v23  ;;  %v3665_v23 = vld [vmem:[#allocation9 + $0x88] sm:$0xf]  ;;  %v4018_v22 = vor.u32 %v5267_v10, %v4017_v7  ;;  %v4067_v10 = vld [vmem:[#allocation9 + $0x3b8] sm:$0xf0] }
  0x87   :  { %1288 = vmatpush.bf16.msra.mxu2 %v3854_v32  ;;  %v3666_v31 = vor.u32 %v5179_v24, %v3665_v23  ;;  %v3937_v32 = vld [vmem:[#allocation9 + $0x2a8] sm:$0xf]  ;;  %v5231_v24 = vld [vmem:[#allocation9 + $0x234] sm:$0xf0] }
  0x88   :  { %1301 = vmatpush.bf16.msra.mxu3 %v3982_v35  ;;  %v4065_v35 = vld [vmem:[#allocation9 + $0x3a8] sm:$0xf] }
  0x89   :  { %v4066_v42 = vor.u32 %v5279_v36, %v4065_v35  ;;  %v3873_v23 = vld [vmem:[#allocation9 + $0x228] sm:$0xf]  ;;  %v3827_v35 = vld [vmem:[#allocation9 + $0x1d8] sm:$0xf0] }
  0xc5   :  { %v374_v39 = vpop.f32.mrf.mxu0 }
  0xc6   :  { %v375_v40 = vadd.f32 %v374_v39, %v197_v37  ;;  %v387_v41 = vpop.f32.mrf.mxu1  ;;  %v3649_v37 = vld [vmem:[#allocation9 + $0x68] sm:$0xf] }
  0xc7   :  { %v388_v44 = vadd.f32 %v387_v41, %v198_v38  ;;  %v5175_v38 = vld [vmem:[#allocation9 + $0x74] sm:$0xf0]  ;;  %v3777_v39 = vld [vmem:[#allocation9 + $0x168] sm:$0xf]  ;;  %v3938_v41 = vor.u32 %v5247_v33, %v3937_v32  ;;  %v3874_v32 = vor.u32 %v5231_v24, %v3873_v23  ;;  %v3699_v33 = vld [vmem:[#allocation9 + $0xd8] sm:$0xf0] }
  0xc8   :  { %v417_v47 = vmax.f32 %v375_v40, 0.0  ;;  %v5207_v40 = vld [vmem:[#allocation9 + $0x174] sm:$0xf0]  ;;  %v3650_v45 = vor.u32 %v5175_v38, %v3649_v37  ;;  %v3857_v37 = vld [vmem:[#allocation9 + $0x208] sm:$0xf] }
  0xc9   :  { %v418_v48 = vmax.f32 %v388_v44, 0.0  ;;  %v5243_v44 = vld [vmem:[#allocation9 + $0x294] sm:$0xf0]  ;;  %v3778_v46 = vor.u32 %v5207_v40, %v3777_v39  ;;  %v3985_v39 = vld [vmem:[#allocation9 + $0x308] sm:$0xf] }
  0xca   :  { %v5872_v51 = vpack.c.bf16 %v417_v47, %v417_v47  ;;  %v4049_v47 = vld [vmem:[#allocation9 + $0x388] sm:$0xf]  ;;  %v3922_v54 = vor.u32 %v5243_v44, %v3921_v43  ;;  %v5227_v38 = vld [vmem:[#allocation9 + $0x214] sm:$0xf0]  ;;  %v5273_v23 = vld [vmem:[#allocation9 + $0x38c] sm:$0xf] }
  0xcb   :  { %v5874_v56 = vpack.c.bf16 %v418_v48, %v418_v48  ;;  %v5275_v48 = vld [vmem:[#allocation9 + $0x394] sm:$0xf0]  ;;  %v4051_v24 = vld [vmem:[#allocation9 + $0x398] sm:$0xf0] }
  0xcc   :  { %1211 = vmatmul.bf16.vlgmr.msrb.gmra.mxu0 %v5872_v51  ;;  %v4050_v55 = vor.u32 %v5275_v48, %v4049_v47  ;;  %v5259_v40 = vld [vmem:[#allocation9 + $0x314] sm:$0xf0]  ;;  %v5181_v47 = vld [vmem:[#allocation9 + $0xac] sm:$0xf]  ;;  %v3858_v48 = vor.u32 %v5227_v38, %v3857_v37  ;;  %v3619_v38 = vld [vmem:[#allocation9 + $0x38] sm:$0xf0] }
  0xcd   :  { %v400_v59 = vpop.f32.mrf.mxu2  ;;  %1224 = vmatmul.bf16.vlgmr.msrb.gmra.mxu1 %v5874_v56  ;;  %1307 = vmatpush.bf16.msrb.mxu0 %v3714_v50  ;;  %v376_v62 = vpop.f32.mrf.mxu0  ;;  %v5171_v50 = vld [vmem:[#allocation9 + $0x54] sm:$0xf0]  ;;  %v5165_v37 = vld [vmem:[#allocation9 + $0x2c] sm:$0xf] }
  0xce   :  { %v401_v60 = vadd.f32 %v400_v59, %v199_v49  ;;  %v413_v61 = vpop.f32.mrf.mxu3  ;;  %1320 = vmatpush.bf16.msrb.mxu1 %v3842_v53  ;;  %v389_v4 = vpop.f32.mrf.mxu1  ;;  %v3633_v49 = vld [vmem:[#allocation9 + $0x48] sm:$0xf]  ;;  %v5203_v53 = vld [vmem:[#allocation9 + $0x154] sm:$0xf0] }
  0xcf   :  { %v414_v3 = vadd.f32 %v413_v61, %v200_v52  ;;  %v3761_v52 = vld [vmem:[#allocation9 + $0x148] sm:$0xf]  ;;  %v3634_v59 = vor.u32 %v5171_v50, %v3633_v49  ;;  %v5271_v62 = vld [vmem:[#allocation9 + $0x374] sm:$0xf0]  ;;  %v3683_v49 = vld [vmem:[#allocation9 + $0xb8] sm:$0xf0] }
  0xd0   :  { %v419_v9 = vmax.f32 %v401_v60, 0.0  ;;  %v3762_v60 = vor.u32 %v5203_v53, %v3761_v52  ;;  %v4033_v61 = vld [vmem:[#allocation9 + $0x368] sm:$0xf]  ;;  %v5213_v50 = vld [vmem:[#allocation9 + $0x1ac] sm:$0xf]  ;;  %v3986_v53 = vor.u32 %v5259_v40, %v3985_v39 }
  0xd1   :  { %v420_v12 = vmax.f32 %v414_v3, 0.0  ;;  %1308 = vmatpush.bf16.msrb.mxu0 %v3698_v63  ;;  %v3617_v63 = vld [vmem:[#allocation9 + $0x28] sm:$0xf]  ;;  %v3906_v3 = vor.u32 %v5239_v58, %v3905_v57  ;;  %v4034_v4 = vor.u32 %v5271_v62, %v4033_v61  ;;  %v3811_v52 = vld [vmem:[#allocation9 + $0x1b8] sm:$0xf0] }
  0xd2   :  { %v5878_v14 = vpack.c.bf16 %v419_v9, %v419_v9  ;;  %1321 = vmatpush.bf16.msrb.mxu1 %v3826_v5  ;;  %v3889_v5 = vld [vmem:[#allocation9 + $0x248] sm:$0xf]  ;;  %v3618_v8 = vor.u32 %v5167_v0, %v3617_v63  ;;  %v3746_v9 = vor.u32 %v5199_v2, %v3745_v1  ;;  %v5249_v57 = vld [vmem:[#allocation9 + $0x2cc] sm:$0xf]  ;;  %v3955_v58 = vld [vmem:[#allocation9 + $0x2d8] sm:$0xf0] }
  0xd3   :  { %v5880_v20 = vpack.c.bf16 %v420_v12, %v420_v12  ;;  %v5163_v12 = vld [vmem:[#allocation9 + $0x14] sm:$0xf0]  ;;  %v3890_v17 = vor.u32 %v5235_v6, %v3889_v5  ;;  %v5281_v61 = vld [vmem:[#allocation9 + $0x3cc] sm:$0xf]  ;;  %v4083_v62 = vld [vmem:[#allocation9 + $0x3d8] sm:$0xf0] }
  0xd4   :  { %1237 = vmatmul.bf16.vlgmr.msrb.gmra.mxu2 %v5878_v14  ;;  %v3602_v25 = vor.u32 %v5163_v12, %v3601_v11  ;;  %v5177_v63 = vld [vmem:[#allocation9 + $0x8c] sm:$0xf]  ;;  %v3667_v0 = vld [vmem:[#allocation9 + $0x98] sm:$0xf0] }
  0xd5   :  { %1250 = vmatmul.bf16.vlgmr.msrb.gmra.mxu3 %v5880_v20  ;;  %1333 = vmatpush.bf16.msrb.mxu2 %v3970_v13  ;;  %v402_v27 = vpop.f32.mrf.mxu2  ;;  %v3729_v13 = vld [vmem:[#allocation9 + $0x108] sm:$0xf]  ;;  %v5209_v1 = vld [vmem:[#allocation9 + $0x18c] sm:$0xf]  ;;  %v3795_v2 = vld [vmem:[#allocation9 + $0x198] sm:$0xf0]  ;;  %v3670_v7 = vor.u32 %v5177_v63, %v3667_v0 }
  0xd6   :  { %1346 = vmatpush.bf16.msrb.mxu3 %v4098_v15  ;;  %v415_v29 = vpop.f32.mrf.mxu3  ;;  %1309 = vmatpush.bf16.msrb.mxu0 %v3682_v16  ;;  %v5195_v15 = vld [vmem:[#allocation9 + $0x114] sm:$0xf0]  ;;  %v5189_v16 = vld [vmem:[#allocation9 + $0xec] sm:$0xf]  ;;  %v4001_v27 = vld [vmem:[#allocation9 + $0x328] sm:$0xf] }
  0xd7   :  { %1322 = vmatpush.bf16.msrb.mxu1 %v3810_v21  ;;  %v3843_v21 = vld [vmem:[#allocation9 + $0x1f8] sm:$0xf0]  ;;  %v3730_v26 = vor.u32 %v5195_v15, %v3729_v13  ;;  %v3718_v29 = vor.u32 %v5189_v16, %v3715_v18  ;;  %v5245_v5 = vld [vmem:[#allocation9 + $0x2ac] sm:$0xf] }
  0xd8   :  { %v3939_v6 = vld [vmem:[#allocation9 + $0x2b8] sm:$0xf0]  ;;  %v5173_v11 = vld [vmem:[#allocation9 + $0x6c] sm:$0xf] }
  0xd9   :  { %1334 = vmatpush.bf16.msrb.mxu2 %v3954_v28  ;;  %v5263_v28 = vld [vmem:[#allocation9 + $0x334] sm:$0xf0]  ;;  %v3651_v12 = vld [vmem:[#allocation9 + $0x78] sm:$0xf0]  ;;  %v5205_v13 = vld [vmem:[#allocation9 + $0x16c] sm:$0xf]  ;;  %v3942_v16 = vor.u32 %v5245_v5, %v3939_v6 }
  0xda   :  { %1347 = vmatpush.bf16.msrb.mxu3 %v4082_v30  ;;  %1310 = vmatpush.bf16.msrb.mxu0 %v3666_v31  ;;  %v3846_v30 = vor.u32 %v5221_v19, %v3843_v21  ;;  %v5185_v31 = vld [vmem:[#allocation9 + $0xcc] sm:$0xf]  ;;  %v4002_v36 = vor.u32 %v5263_v28, %v4001_v27  ;;  %v3779_v15 = vld [vmem:[#allocation9 + $0x178] sm:$0xf0]  ;;  %v3654_v21 = vor.u32 %v5173_v11, %v3651_v12 }
  0xdb   :  { %1323 = vmatpush.bf16.msrb.mxu1 %v3794_v34  ;;  %v5217_v34 = vld [vmem:[#allocation9 + $0x1cc] sm:$0xf]  ;;  %v3702_v43 = vor.u32 %v5185_v31, %v3699_v33  ;;  %v3923_v19 = vld [vmem:[#allocation9 + $0x298] sm:$0xf0] }
  0xdc   :  { %1263 = vmatmul.bf16.vlgmr.msra.gmra.mxu0 %v5872_v51  ;;  %v3830_v44 = vor.u32 %v5217_v34, %v3827_v35  ;;  %v5241_v18 = vld [vmem:[#allocation9 + $0x28c] sm:$0xf]  ;;  %v3763_v28 = vld [vmem:[#allocation9 + $0x158] sm:$0xf0] }
  0xdd   :  { %1335 = vmatpush.bf16.msrb.mxu2 %v3938_v41  ;;  %1276 = vmatmul.bf16.vlgmr.msra.gmra.mxu1 %v5874_v56  ;;  %v5253_v41 = vld [vmem:[#allocation9 + $0x2ec] sm:$0xf]  ;;  %v3747_v40 = vld [vmem:[#allocation9 + $0x138] sm:$0xf0] }
  0xde   :  { %1348 = vmatpush.bf16.msrb.mxu3 %v4066_v42  ;;  %1311 = vmatpush.bf16.msrb.mxu0 %v3650_v45  ;;  %v3971_v42 = vld [vmem:[#allocation9 + $0x2f8] sm:$0xf0]  ;;  %v5285_v45 = vld [vmem:[#allocation9 + $0x3ec] sm:$0xf] }
  0xdf   :  { %1324 = vmatpush.bf16.msrb.mxu1 %v3778_v46  ;;  %v4099_v46 = vld [vmem:[#allocation9 + $0x3f8] sm:$0xf0]  ;;  %v5201_v27 = vld [vmem:[#allocation9 + $0x14c] sm:$0xf] }
  0xe0   :  { %v5237_v31 = vld [vmem:[#allocation9 + $0x26c] sm:$0xf]  ;;  %v3766_v34 = vor.u32 %v5201_v27, %v3763_v28  ;;  %v3859_v12 = vld [vmem:[#allocation9 + $0x218] sm:$0xf0]  ;;  %v4457_v28 = vld [vmem:[#allocation11 + $0x2c0] sm:$0xf] }
  0xe1   :  { %1336 = vmatpush.bf16.msrb.mxu2 %v3922_v54  ;;  %v3974_v54 = vor.u32 %v5253_v41, %v3971_v42  ;;  %v5269_v35 = vld [vmem:[#allocation9 + $0x36c] sm:$0xf] }
  0xe2   :  { %1349 = vmatpush.bf16.msrb.mxu3 %v4050_v55  ;;  %1312 = vmatpush.bf16.msrb.mxu0 %v3634_v59  ;;  %v4102_v55 = vor.u32 %v5285_v45, %v4099_v46  ;;  %v3686_v59 = vor.u32 %v5181_v47, %v3683_v49  ;;  %v5197_v39 = vld [vmem:[#allocation9 + $0x12c] sm:$0xf]  ;;  %v3622_v46 = vor.u32 %v5165_v37, %v3619_v38  ;;  %v5302_v37 = vld [vmem:[#allocation11 + $0x6c] sm:$0xf0] }
  0xe3   :  { %1325 = vmatpush.bf16.msrb.mxu1 %v3762_v60  ;;  %v3814_v60 = vor.u32 %v5213_v50, %v3811_v52  ;;  %v5265_v45 = vld [vmem:[#allocation9 + $0x34c] sm:$0xf]  ;;  %v3750_v47 = vor.u32 %v5197_v39, %v3747_v40  ;;  %v3603_v50 = vld [vmem:[#allocation9 + $0x18] sm:$0xf0]  ;;  %v4281_v39 = vld [vmem:[#allocation11 + $0x160] sm:$0xf] }
  0xe4   :  { %1289 = vmatmul.bf16.vlgmr.msra.gmra.mxu2 %v5878_v14  ;;  %v5161_v49 = vld [vmem:[#allocation9 + $0xc] sm:$0xf]  ;;  %v5334_v40 = vld [vmem:[#allocation11 + $0x16c] sm:$0xf0] }
  0xe5   :  { %1302 = vmatmul.bf16.vlgmr.msra.gmra.mxu3 %v5880_v20  ;;  %1337 = vmatpush.bf16.msrb.mxu2 %v3906_v3  ;;  %v3958_v3 = vor.u32 %v5249_v57, %v3955_v58  ;;  %v5193_v52 = vld [vmem:[#allocation9 + $0x10c] sm:$0xf]  ;;  %v5318_v57 = vld [vmem:[#allocation11 + $0xec] sm:$0xf0]  ;;  %v4345_v58 = vld [vmem:[#allocation11 + $0x1e0] sm:$0xf]  ;;  %v3606_v63 = vor.u32 %v5161_v49, %v3603_v50 }
  0xe6   :  { %1350 = vmatpush.bf16.msrb.mxu3 %v4034_v4  ;;  %1313 = vmatpush.bf16.msrb.mxu0 %v3618_v8  ;;  %v4086_v4 = vor.u32 %v5281_v61, %v4083_v62  ;;  %v3798_v8 = vor.u32 %v5209_v1, %v3795_v2  ;;  %v5229_v61 = vld [vmem:[#allocation9 + $0x22c] sm:$0xf]  ;;  %v3875_v62 = vld [vmem:[#allocation9 + $0x238] sm:$0xf0]  ;;  %v4105_v50 = vld [vmem:[#allocation11] sm:$0xf] }
  0xe7   :  { %1326 = vmatpush.bf16.msrb.mxu1 %v3746_v9  ;;  %v5277_v9 = vld [vmem:[#allocation9 + $0x3ac] sm:$0xf]  ;;  %v4003_v2 = vld [vmem:[#allocation9 + $0x338] sm:$0xf0]  ;;  %v3878_v6 = vor.u32 %v5229_v61, %v3875_v62  ;;  %v5308_v61 = vld [vmem:[#allocation11 + $0xa4] sm:$0xf] }
  0xe8   :  { %v5261_v1 = vld [vmem:[#allocation9 + $0x32c] sm:$0xf]  ;;  %v4187_v62 = vld [vmem:[#allocation11 + $0xb0] sm:$0xf0] }
  0xe9   :  { %1338 = vmatpush.bf16.msrb.mxu2 %v3890_v17  ;;  %v4070_v17 = vor.u32 %v5277_v9, %v4067_v10  ;;  %v5346_v9 = vld [vmem:[#allocation11 + $0x1cc] sm:$0xf0]  ;;  %v4006_v10 = vor.u32 %v5261_v1, %v4003_v2  ;;  %v5225_v11 = vld [vmem:[#allocation9 + $0x20c] sm:$0xf]  ;;  %v4441_v2 = vld [vmem:[#allocation11 + $0x2a0] sm:$0xf] }
  0xea   :  { %1351 = vmatpush.bf16.msrb.mxu3 %v4018_v22  ;;  %1314 = vmatpush.bf16.msrb.mxu0 %v3602_v25  ;;  %v3782_v22 = vor.u32 %v5205_v13, %v3779_v15  ;;  %v5169_v25 = vld [vmem:[#allocation9 + $0x4c] sm:$0xf]  ;;  %v3987_v15 = vld [vmem:[#allocation9 + $0x318] sm:$0xf0]  ;;  %v5326_v1 = vld [vmem:[#allocation11 + $0x12c] sm:$0xf0] }
  0xeb   :  { %1327 = vmatpush.bf16.msrb.mxu1 %v3730_v26  ;;  %v3635_v26 = vld [vmem:[#allocation9 + $0x58] sm:$0xf0]  ;;  %v5257_v13 = vld [vmem:[#allocation9 + $0x30c] sm:$0xf] }
  0xec   :  { %v3638_v33 = vor.u32 %v5169_v25, %v3635_v26  ;;  %v4313_v25 = vld [vmem:[#allocation11 + $0x1a0] sm:$0xf]  ;;  %v5342_v26 = vld [vmem:[#allocation11 + $0x1ac] sm:$0xf0] }
  0xed   :  { %1339 = vmatpush.bf16.msrb.mxu2 %v3874_v32  ;;  %1315 = vmatmul.bf16.vlgmr.msrb.gmra.mxu0 %v5872_v51  ;;  %v3907_v32 = vld [vmem:[#allocation9 + $0x278] sm:$0xf0] }
  0xee   :  { %1359 = vmatpush.bf16.msra.mxu0 %v3718_v29  ;;  %1352 = vmatpush.bf16.msrb.mxu3 %v4002_v36  ;;  %v3926_v29 = vor.u32 %v5241_v18, %v3923_v19  ;;  %v4035_v36 = vld [vmem:[#allocation9 + $0x378] sm:$0xf0]  ;;  %v3910_v41 = vor.u32 %v5237_v31, %v3907_v32  ;;  %v4169_v31 = vld [vmem:[#allocation11 + $0x80] sm:$0xf]  ;;  %v5306_v32 = vld [vmem:[#allocation11 + $0x8c] sm:$0xf0] }
  0xef   :  { %1372 = vmatpush.bf16.msra.mxu1 %v3846_v30  ;;  %v4054_v30 = vor.u32 %v5273_v23, %v4051_v24  ;;  %v4038_v42 = vor.u32 %v5269_v35, %v4035_v36  ;;  %v5310_v23 = vld [vmem:[#allocation11 + $0xac] sm:$0xf0]  ;;  %v3990_v24 = vor.u32 %v5257_v13, %v3987_v15  ;;  %v4170_v36 = vor.u32 %v5306_v32, %v4169_v31  ;;  %v4393_v32 = vld [vmem:[#allocation11 + $0x240] sm:$0xf] }
  0xf0   :  { %1328 = vmatmul.bf16.vlgmr.msrb.gmra.mxu1 %v5874_v56  ;;  %v5338_v35 = vld [vmem:[#allocation11 + $0x18c] sm:$0xf0] }
  0xf1   :  { %1340 = vmatpush.bf16.msrb.mxu2 %v3858_v48  ;;  %v4019_v48 = vld [vmem:[#allocation9 + $0x358] sm:$0xf0]  ;;  %v5370_v13 = vld [vmem:[#allocation11 + $0x28c] sm:$0xf0] }
  0xf2   :  { %1360 = vmatpush.bf16.msra.mxu0 %v3702_v43  ;;  %1353 = vmatpush.bf16.msrb.mxu3 %v3986_v53  ;;  %v5233_v43 = vld [vmem:[#allocation9 + $0x24c] sm:$0xf]  ;;  %v3731_v53 = vld [vmem:[#allocation9 + $0x118] sm:$0xf0] }
  0xf3   :  { %1373 = vmatpush.bf16.msra.mxu1 %v3830_v44  ;;  %v3891_v44 = vld [vmem:[#allocation9 + $0x258] sm:$0xf0]  ;;  %v3734_v0 = vor.u32 %v5193_v52, %v3731_v53  ;;  %v5290_v52 = vld [vmem:[#allocation11 + $0xc] sm:$0xf0]  ;;  %v5316_v53 = vld [vmem:[#allocation11 + $0xe4] sm:$0xf] }
  0xf4   :  { %1341 = vmatmul.bf16.vlgmr.msrb.gmra.mxu2 %v5878_v14 }
  0xf5   :  { %1385 = vmatpush.bf16.msra.mxu2 %v3974_v54  ;;  %1354 = vmatmul.bf16.vlgmr.msrb.gmra.mxu3 %v5880_v20  ;;  %v4217_v54 = vld [vmem:[#allocation11 + $0xe0] sm:$0xf] }
  0xf6   :  { %1398 = vmatpush.bf16.msra.mxu3 %v4102_v55  ;;  %1361 = vmatpush.bf16.msra.mxu0 %v3686_v59  ;;  %v3894_v55 = vor.u32 %v5233_v43, %v3891_v44  ;;  %v5350_v59 = vld [vmem:[#allocation11 + $0x1ec] sm:$0xf0]  ;;  %v4282_v44 = vor.u32 %v5334_v40, %v4281_v39  ;;  %v4377_v39 = vld [vmem:[#allocation11 + $0x220] sm:$0xf] }
  0xf7   :  { %1374 = vmatpush.bf16.msra.mxu1 %v3814_v60  ;;  %v4022_v60 = vor.u32 %v5265_v45, %v4019_v48  ;;  %v4346_v5 = vor.u32 %v5350_v59, %v4345_v58  ;;  %v5298_v43 = vld [vmem:[#allocation11 + $0x4c] sm:$0xf0]  ;;  %v4265_v45 = vld [vmem:[#allocation11 + $0x140] sm:$0xf]  ;;  %v5312_v58 = vld [vmem:[#allocation11 + $0xc4] sm:$0xf] }
  0xf8   :  { %v5294_v48 = vld [vmem:[#allocation11 + $0x2c] sm:$0xf0]  ;;  %v4203_v59 = vld [vmem:[#allocation11 + $0xd0] sm:$0xf0] }
  0xf9   :  { %1386 = vmatpush.bf16.msra.mxu2 %v3958_v3  ;;  %v4218_v3 = vor.u32 %v5318_v57, %v4217_v54  ;;  %v4219_v54 = vld [vmem:[#allocation11 + $0xf0] sm:$0xf0]  ;;  %v5358_v40 = vld [vmem:[#allocation11 + $0x22c] sm:$0xf0] }
  0xfa   :  { %1399 = vmatpush.bf16.msra.mxu3 %v4086_v4  ;;  %1362 = vmatpush.bf16.msra.mxu0 %v3670_v7  ;;  %v4201_v4 = vld [vmem:[#allocation11 + $0xc0] sm:$0xf]  ;;  %v5314_v7 = vld [vmem:[#allocation11 + $0xcc] sm:$0xf0]  ;;  %v4222_v57 = vor.u32 %v5316_v53, %v4219_v54  ;;  %v4283_v53 = vld [vmem:[#allocation11 + $0x170] sm:$0xf0] }
  0xfb   :  { %1375 = vmatpush.bf16.msra.mxu1 %v3798_v8  ;;  %v4329_v8 = vld [vmem:[#allocation11 + $0x1c0] sm:$0xf]  ;;  %v4202_v18 = vor.u32 %v5314_v7, %v4201_v4  ;;  %v5374_v4 = vld [vmem:[#allocation11 + $0x2ac] sm:$0xf0] }
  0xfc   :  { %v4330_v19 = vor.u32 %v5346_v9, %v4329_v8  ;;  %v4442_v7 = vor.u32 %v5374_v4, %v4441_v2  ;;  %v4233_v9 = vld [vmem:[#allocation11 + $0x100] sm:$0xf] }
  0xfd   :  { %1387 = vmatpush.bf16.msra.mxu2 %v3942_v16  ;;  %v4473_v16 = vld [vmem:[#allocation11 + $0x2e0] sm:$0xf] }
  0xfe   :  { %1400 = vmatpush.bf16.msra.mxu3 %v4070_v17  ;;  %1363 = vmatpush.bf16.msra.mxu0 %v3654_v21  ;;  %v5382_v17 = vld [vmem:[#allocation11 + $0x2ec] sm:$0xf0]  ;;  %v3862_v21 = vor.u32 %v5225_v11, %v3859_v12  ;;  %v4425_v11 = vld [vmem:[#allocation11 + $0x280] sm:$0xf] }
  0xff   :  { %1376 = vmatpush.bf16.msra.mxu1 %v3782_v22  ;;  %v4185_v22 = vld [vmem:[#allocation11 + $0xa0] sm:$0xf]  ;;  %v4474_v27 = vor.u32 %v5382_v17, %v4473_v16  ;;  %v4426_v15 = vor.u32 %v5370_v13, %v4425_v11  ;;  %v5300_v16 = vld [vmem:[#allocation11 + $0x64] sm:$0xf]  ;;  %v4155_v17 = vld [vmem:[#allocation11 + $0x70] sm:$0xf0] }
 0x100   :  { %v4251_v11 = vld [vmem:[#allocation11 + $0x130] sm:$0xf0] }
 0x101   :  { %1388 = vmatpush.bf16.msra.mxu2 %v3926_v29  ;;  %v5378_v29 = vld [vmem:[#allocation11 + $0x2cc] sm:$0xf0] }
 0x102   :  { %1401 = vmatpush.bf16.msra.mxu3 %v4054_v30  ;;  %1364 = vmatpush.bf16.msra.mxu0 %v3638_v33  ;;  %v4186_v30 = vor.u32 %v5310_v23, %v4185_v22  ;;  %v4314_v33 = vor.u32 %v5342_v26, %v4313_v25  ;;  %v4409_v22 = vld [vmem:[#allocation11 + $0x260] sm:$0xf]  ;;  %v5366_v23 = vld [vmem:[#allocation11 + $0x26c] sm:$0xf0]  ;;  %v5296_v26 = vld [vmem:[#allocation11 + $0x44] sm:$0xf] }
 0x103   :  { %1377 = vmatpush.bf16.msra.mxu1 %v3766_v34  ;;  %v4297_v34 = vld [vmem:[#allocation11 + $0x180] sm:$0xf]  ;;  %v4410_v25 = vor.u32 %v5366_v23, %v4409_v22  ;;  %v5320_v23 = vld [vmem:[#allocation11 + $0x104] sm:$0xf] }
 0x104   :  { %v4298_v38 = vor.u32 %v5338_v35, %v4297_v34  ;;  %v5292_v35 = vld [vmem:[#allocation11 + $0x24] sm:$0xf] }
 0x105   :  { %1389 = vmatpush.bf16.msra.mxu2 %v3910_v41 }
 0x106   :  { %1402 = vmatpush.bf16.msra.mxu3 %v4038_v42  ;;  %1365 = vmatpush.bf16.msra.mxu0 %v3622_v46  ;;  %v4137_v42 = vld [vmem:[#allocation11 + $0x40] sm:$0xf]  ;;  %v5330_v46 = vld [vmem:[#allocation11 + $0x14c] sm:$0xf0] }
 0x107   :  { %1378 = vmatpush.bf16.msra.mxu1 %v3750_v47  ;;  %v4121_v47 = vld [vmem:[#allocation11 + $0x20] sm:$0xf] }
 0x108   :  { %v4122_v49 = vor.u32 %v5294_v48, %v4121_v47  ;;  %v4361_v47 = vld [vmem:[#allocation11 + $0x200] sm:$0xf]  ;;  %v5354_v48 = vld [vmem:[#allocation11 + $0x20c] sm:$0xf0] }
 0x109   :  { %1390 = vmatpush.bf16.msra.mxu2 %v3894_v55  ;;  %v4106_v55 = vor.u32 %v5290_v52, %v4105_v50  ;;  %v5414_v50 = vld [vmem:[#allocation11 + $0x3ec] sm:$0xf0]  ;;  %v5332_v52 = vld [vmem:[#allocation11 + $0x164] sm:$0xf] }
 0x10a   :  { %1403 = vmatpush.bf16.msra.mxu3 %v4022_v60  ;;  %1366 = vmatpush.bf16.msra.mxu0 %v3606_v63  ;;  %v4206_v60 = vor.u32 %v5312_v58, %v4203_v59  ;;  %v4190_v63 = vor.u32 %v5308_v61, %v4187_v62  ;;  %v4475_v58 = vld [vmem:[#allocation11 + $0x2f0] sm:$0xf0]  ;;  %v5410_v61 = vld [vmem:[#allocation11 + $0x3cc] sm:$0xf0] }
 0x10b   :  { %1379 = vmatpush.bf16.msra.mxu1 %v3734_v0  ;;  %v4249_v0 = vld [vmem:[#allocation11 + $0x120] sm:$0xf] }
 0x10d   :  { %1391 = vmatpush.bf16.msra.mxu2 %v3878_v6  ;;  %1367 = vmatmul.bf16.vlgmr.msra.gmra.mxu0 %v5872_v51  ;;  %v4458_v51 = vor.u32 %v5378_v29, %v4457_v28  ;;  %v4171_v6 = vld [vmem:[#allocation11 + $0x90] sm:$0xf0]  ;;  %v5344_v28 = vld [vmem:[#allocation11 + $0x1c4] sm:$0xf] }
 0x10e   :  { %2197 = vmatpush.bf16.msrb.mxu0 %v4218_v3  ;;  %1404 = vmatpush.bf16.msra.mxu3 %v4006_v10  ;;  %v4250_v3 = vor.u32 %v5326_v1, %v4249_v0  ;;  %v5322_v10 = vld [vmem:[#allocation11 + $0x10c] sm:$0xf0]  ;;  %v4267_v0 = vld [vmem:[#allocation11 + $0x150] sm:$0xf0]  ;;  %v5376_v1 = vld [vmem:[#allocation11 + $0x2c4] sm:$0xf] }
 0x10f   :  { %2210 = vmatpush.bf16.msrb.mxu1 %v4346_v5  ;;  %v5304_v5 = vld [vmem:[#allocation11 + $0x84] sm:$0xf]  ;;  %v4234_v12 = vor.u32 %v5322_v10, %v4233_v9 }
 0x110   :  { %1380 = vmatmul.bf16.vlgmr.msra.gmra.mxu1 %v5874_v56  ;;  %v4153_v56 = vld [vmem:[#allocation11 + $0x60] sm:$0xf]  ;;  %v4174_v8 = vor.u32 %v5304_v5, %v4171_v6  ;;  %v5899_v5 = vld [vmem:[%s6005_s4] sm:$0xf]  ;;  %v5324_v10 = vld [vmem:[#allocation11 + $0x124] sm:$0xf] }
 0x111   :  { %1392 = vmatpush.bf16.msra.mxu2 %v3862_v21  ;;  %v4154_v41 = vor.u32 %v5302_v37, %v4153_v56  ;;  %v4347_v21 = vld [vmem:[#allocation11 + $0x1f0] sm:$0xf0]  ;;  %v4569_v6 = vld [vmem:[#allocation11 + $0x3a0] sm:$0xf] }
 0x112   :  { %2198 = vmatpush.bf16.msrb.mxu0 %v4202_v18  ;;  %1405 = vmatpush.bf16.msra.mxu3 %v3990_v24  ;;  %v5348_v18 = vld [vmem:[#allocation11 + $0x1e4] sm:$0xf]  ;;  %v4315_v37 = vld [vmem:[#allocation11 + $0x1b0] sm:$0xf0] }
 0x113   :  { %2211 = vmatpush.bf16.msrb.mxu1 %v4330_v19  ;;  %v4158_v19 = vor.u32 %v5300_v16, %v4155_v17  ;;  %v4350_v24 = vor.u32 %v5348_v18, %v4347_v21  ;;  %v4443_v16 = vld [vmem:[#allocation11 + $0x2b0] sm:$0xf0]  ;;  %v555_v17 = vperm.slane %v5899_v5, 0  ;;  %v5402_v21 = vld [vmem:[#allocation11 + $0x38c] sm:$0xf0] }
 0x114   :  { %1393 = vmatmul.bf16.vlgmr.msra.gmra.mxu2 %v5878_v14  ;;  %v4138_v14 = vor.u32 %v5298_v43, %v4137_v42  ;;  %v5288_v42 = vld [vmem:[#allocation11 + $0x4] sm:$0xf]  ;;  %v4107_v43 = vld [vmem:[#allocation11 + $0x10] sm:$0xf0] }
 0x115   :  { %2223 = vmatpush.bf16.msrb.mxu2 %v4474_v27  ;;  %1406 = vmatmul.bf16.vlgmr.msra.gmra.mxu3 %v5880_v20  ;;  %v4266_v20 = vor.u32 %v5330_v46, %v4265_v45  ;;  %v4139_v27 = vld [vmem:[#allocation11 + $0x50] sm:$0xf0]  ;;  %v4110_v45 = vor.u32 %v5288_v42, %v4107_v43 }
 0x116   :  { %2199 = vmatpush.bf16.msrb.mxu0 %v4186_v30  ;;  %v4142_v29 = vor.u32 %v5296_v26, %v4139_v27  ;;  %v4331_v30 = vld [vmem:[#allocation11 + $0x1d0] sm:$0xf0] }
 0x117   :  { %2212 = vmatpush.bf16.msrb.mxu1 %v4314_v33  ;;  %v4334_v31 = vor.u32 %v5344_v28, %v4331_v30  ;;  %v5362_v33 = vld [vmem:[#allocation11 + $0x24c] sm:$0xf0]  ;;  %v4299_v46 = vld [vmem:[#allocation11 + $0x190] sm:$0xf0]  ;;  %v4537_v30 = vld [vmem:[#allocation11 + $0x360] sm:$0xf] }
 0x118   :  { %v4394_v34 = vor.u32 %v5362_v33, %v4393_v32  ;;  %v4427_v27 = vld [vmem:[#allocation11 + $0x290] sm:$0xf0] }
 0x119   :  { %2224 = vmatpush.bf16.msrb.mxu2 %v4458_v51  ;;  %v4123_v51 = vld [vmem:[#allocation11 + $0x30] sm:$0xf0] }
 0x11a   :  { %2200 = vmatpush.bf16.msrb.mxu0 %v4170_v36  ;;  %v5340_v36 = vld [vmem:[#allocation11 + $0x1a4] sm:$0xf]  ;;  %v4126_v56 = vor.u32 %v5292_v35, %v4123_v51  ;;  %v4411_v35 = vld [vmem:[#allocation11 + $0x270] sm:$0xf0] }
 0x11b   :  { %2213 = vmatpush.bf16.msrb.mxu1 %v4298_v38  ;;  %v4318_v38 = vor.u32 %v5340_v36, %v4315_v37  ;;  %v4521_v37 = vld [vmem:[#allocation11 + $0x340] sm:$0xf] }
 0x11d   :  { %2225 = vmatpush.bf16.msrb.mxu2 %v4442_v7  ;;  %v5406_v7 = vld [vmem:[#allocation11 + $0x3ac] sm:$0xf0] }
 0x11e   :  { %2201 = vmatpush.bf16.msrb.mxu0 %v4154_v41  ;;  %v4378_v41 = vor.u32 %v5358_v40, %v4377_v39  ;;  %v4570_v9 = vor.u32 %v5406_v7, %v4569_v6  ;;  %v5360_v40 = vld [vmem:[#allocation11 + $0x244] sm:$0xf] }
 0x11f   :  { %2214 = vmatpush.bf16.msrb.mxu1 %v4282_v44  ;;  %v5336_v44 = vld [vmem:[#allocation11 + $0x184] sm:$0xf] }
 0x121   :  { %2226 = vmatpush.bf16.msrb.mxu2 %v4426_v15  ;;  %v4254_v15 = vor.u32 %v5324_v10, %v4251_v11 }
 0x122   :  { %2202 = vmatpush.bf16.msrb.mxu0 %v4138_v14  ;;  %v4302_v14 = vor.u32 %v5336_v44, %v4299_v46  ;;  %v4225_v46 = vld [vmem:[#allocation11 + $0xe8] sm:$0xf] }
 0x123   :  { %2215 = vmatpush.bf16.msrb.mxu1 %v4266_v20  ;;  %v4601_v20 = vld [vmem:[#allocation11 + $0x3e0] sm:$0xf] }
 0x124   :  { %v4602_v54 = vor.u32 %v5414_v50, %v4601_v20 }
 0x125   :  { %2227 = vmatpush.bf16.msrb.mxu2 %v4410_v25  ;;  %v5368_v25 = vld [vmem:[#allocation11 + $0x284] sm:$0xf] }
 0x126   :  { %2203 = vmatpush.bf16.msrb.mxu0 %v4122_v49  ;;  %v4362_v49 = vor.u32 %v5354_v48, %v4361_v47  ;;  %2236 = vmatpush.bf16.msrb.mxu3 %v4602_v54  ;;  %v5390_v47 = vld [vmem:[#allocation11 + $0x32c] sm:$0xf0] }
 0x127   :  { %2216 = vmatpush.bf16.msrb.mxu1 %v4250_v3  ;;  %v4459_v3 = vld [vmem:[#allocation11 + $0x2d0] sm:$0xf0] }
 0x128   :  { %v4462_v4 = vor.u32 %v5376_v1, %v4459_v3  ;;  %v4363_v3 = vld [vmem:[#allocation11 + $0x210] sm:$0xf0] }
 0x129   :  { %2228 = vmatpush.bf16.msrb.mxu2 %v4394_v34  ;;  %v5364_v34 = vld [vmem:[#allocation11 + $0x264] sm:$0xf] }
 0x12a   :  { %2204 = vmatpush.bf16.msrb.mxu0 %v4106_v55  ;;  %v4286_v55 = vor.u32 %v5332_v52, %v4283_v53  ;;  %v4414_v36 = vor.u32 %v5364_v34, %v4411_v35  ;;  %v5356_v52 = vld [vmem:[#allocation11 + $0x224] sm:$0xf]  ;;  %v4379_v53 = vld [vmem:[#allocation11 + $0x230] sm:$0xf0]  ;;  %v5303_v34 = vld [vmem:[#allocation11 + $0x74] sm:$0xf0] }
 0x12b   :  { %2217 = vmatpush.bf16.msrb.mxu1 %v4234_v12  ;;  %v5372_v12 = vld [vmem:[#allocation11 + $0x2a4] sm:$0xf]  ;;  %v4353_v35 = vld [vmem:[#allocation11 + $0x1e8] sm:$0xf] }
 0x12c   :  { %v4446_v18 = vor.u32 %v5372_v12, %v4443_v16  ;;  %v4193_v12 = vld [vmem:[#allocation11 + $0xa8] sm:$0xf]  ;;  %v5311_v16 = vld [vmem:[#allocation11 + $0xb4] sm:$0xf0] }
 0x12d   :  { %2229 = vmatpush.bf16.msrb.mxu2 %v4378_v41  ;;  %v4395_v41 = vld [vmem:[#allocation11 + $0x250] sm:$0xf0] }
 0x12e   :  { %2249 = vmatpush.bf16.msra.mxu0 %v4222_v57  ;;  %v5380_v57 = vld [vmem:[#allocation11 + $0x2e4] sm:$0xf]  ;;  %v4398_v43 = vor.u32 %v5360_v40, %v4395_v41 }
 0x12f   :  { %2262 = vmatpush.bf16.msra.mxu1 %v4350_v24  ;;  %v4478_v59 = vor.u32 %v5380_v57, %v4475_v58  ;;  %v4235_v24 = vld [vmem:[#allocation11 + $0x110] sm:$0xf0]  ;;  %v556_v58 = vperm.slane %v5899_v5, 1 }
 0x130   :  { %v4238_v26 = vor.u32 %v5320_v23, %v4235_v24  ;;  %v4177_v23 = vld [vmem:[#allocation11 + $0x88] sm:$0xf] }
 0x131   :  { %2230 = vmatpush.bf16.msrb.mxu2 %v4362_v49  ;;  %v5319_v49 = vld [vmem:[#allocation11 + $0xf4] sm:$0xf0] }
 0x132   :  { %2250 = vmatpush.bf16.msra.mxu0 %v4206_v60  ;;  %v4585_v60 = vld [vmem:[#allocation11 + $0x3c0] sm:$0xf] }
 0x133   :  { %2263 = vmatpush.bf16.msra.mxu1 %v4334_v31  ;;  %v4586_v62 = vor.u32 %v5410_v61, %v4585_v60  ;;  %v5398_v31 = vld [vmem:[#allocation11 + $0x36c] sm:$0xf0]  ;;  %v4226_v60 = vor.u32 %v5319_v49, %v4225_v46  ;;  %v5315_v61 = vld [vmem:[#allocation11 + $0xd4] sm:$0xf0]  ;;  %v4337_v46 = vld [vmem:[#allocation11 + $0x1c8] sm:$0xf] }
 0x134   :  { %v4538_v33 = vor.u32 %v5398_v31, %v4537_v30  ;;  %v557_v49 = vperm.slane %v5899_v5, 2 }
 0x135   :  { %2275 = vmatpush.bf16.msra.mxu2 %v4478_v59  ;;  %2237 = vmatpush.bf16.msrb.mxu3 %v4586_v62  ;;  %v4209_v59 = vld [vmem:[#allocation11 + $0xc8] sm:$0xf]  ;;  %v4489_v62 = vld [vmem:[#allocation11 + $0x300] sm:$0xf] }
 0x136   :  { %2251 = vmatpush.bf16.msra.mxu0 %v4190_v63  ;;  %v5328_v63 = vld [vmem:[#allocation11 + $0x144] sm:$0xf]  ;;  %v4210_v11 = vor.u32 %v5315_v61, %v4209_v59  ;;  %v4321_v59 = vld [vmem:[#allocation11 + $0x1a8] sm:$0xf] }
 0x137   :  { %2264 = vmatpush.bf16.msra.mxu1 %v4318_v38  ;;  %v4270_v2 = vor.u32 %v5328_v63, %v4267_v0  ;;  %v5394_v38 = vld [vmem:[#allocation11 + $0x34c] sm:$0xf0]  ;;  %v5392_v61 = vld [vmem:[#allocation11 + $0x344] sm:$0xf] }
 0x138   :  { %v4522_v39 = vor.u32 %v5394_v38, %v4521_v37  ;;  %v5386_v63 = vld [vmem:[#allocation11 + $0x30c] sm:$0xf0]  ;;  %v4555_v37 = vld [vmem:[#allocation11 + $0x390] sm:$0xf0] }
 0x139   :  { %2276 = vmatpush.bf16.msra.mxu2 %v4462_v4  ;;  %2238 = vmatpush.bf16.msrb.mxu3 %v4570_v9  ;;  %v4490_v1 = vor.u32 %v5386_v63, %v4489_v62  ;;  %v5412_v4 = vld [vmem:[#allocation11 + $0x3e4] sm:$0xf]  ;;  %v4523_v62 = vld [vmem:[#allocation11 + $0x350] sm:$0xf0] }
 0x13a   :  { %2252 = vmatpush.bf16.msra.mxu0 %v4174_v8 }
 0x13b   :  { %2265 = vmatpush.bf16.msra.mxu1 %v4302_v14  ;;  %v4505_v14 = vld [vmem:[#allocation11 + $0x320] sm:$0xf] }
 0x13c   :  { %v4506_v50 = vor.u32 %v5390_v47, %v4505_v14  ;;  %v5347_v47 = vld [vmem:[#allocation11 + $0x1d4] sm:$0xf0] }
 0x13d   :  { %2277 = vmatpush.bf16.msra.mxu2 %v4446_v18  ;;  %v4587_v18 = vld [vmem:[#allocation11 + $0x3d0] sm:$0xf0] }
 0x13e   :  { %2253 = vmatpush.bf16.msra.mxu0 %v4158_v19  ;;  %v4553_v19 = vld [vmem:[#allocation11 + $0x380] sm:$0xf] }
 0x13f   :  { %2266 = vmatpush.bf16.msra.mxu1 %v4286_v55  ;;  %v4554_v22 = vor.u32 %v5402_v21, %v4553_v19  ;;  %v4382_v55 = vor.u32 %v5356_v52, %v4379_v53 }
 0x141   :  { %2239 = vmatpush.bf16.msrb.mxu3 %v4554_v22  ;;  %v4194_v22 = vor.u32 %v5311_v16, %v4193_v12  ;;  %v4507_v12 = vld [vmem:[#allocation11 + $0x330] sm:$0xf0]  ;;  %v4227_v16 = vld [vmem:[#allocation11 + $0xf8] sm:$0xf0] }
 0x142   :  { %2254 = vmatpush.bf16.msra.mxu0 %v4142_v29  ;;  %v4430_v29 = vor.u32 %v5368_v25, %v4427_v27  ;;  %v5307_v25 = vld [vmem:[#allocation11 + $0x94] sm:$0xf0]  ;;  %v4571_v27 = vld [vmem:[#allocation11 + $0x3b0] sm:$0xf0] }
 0x143   :  { %2267 = vmatpush.bf16.msra.mxu1 %v4270_v2  ;;  %v5352_v2 = vld [vmem:[#allocation11 + $0x204] sm:$0xf] }
 0x144   :  { %2278 = vmatpush.bf16.msra.mxu2 %v4430_v29  ;;  %v4366_v7 = vor.u32 %v5352_v2, %v4363_v3  ;;  %v4526_v2 = vor.u32 %v5392_v61, %v4523_v62  ;;  %v4433_v61 = vld [vmem:[#allocation11 + $0x288] sm:$0xf]  ;;  %v5371_v62 = vld [vmem:[#allocation11 + $0x294] sm:$0xf0] }
 0x145   :  { %2240 = vmatpush.bf16.msrb.mxu3 %v4538_v33  ;;  %v4161_v33 = vld [vmem:[#allocation11 + $0x68] sm:$0xf] }
 0x146   :  { %2255 = vmatpush.bf16.msra.mxu0 %v4126_v56 }
 0x147   :  { %2268 = vmatpush.bf16.msra.mxu1 %v4254_v15 }
 0x148   :  { %2279 = vmatpush.bf16.msra.mxu2 %v4414_v36  ;;  %v5351_v36 = vld [vmem:[#allocation11 + $0x1f4] sm:$0xf0] }
 0x149   :  { %v1212_v8 = vpop.f32.mrf.mxu0  ;;  %2241 = vmatpush.bf16.msrb.mxu3 %v4522_v39 }
 0x14a   :  { %2256 = vmatpush.bf16.msra.mxu0 %v4110_v45  ;;  %v1225_v13 = vpop.f32.mrf.mxu1  ;;  %v1213_v28 = vadd.f32 %v1212_v8, %v555_v17  ;;  %v4603_v8 = vld [vmem:[#allocation11 + $0x3f0] sm:$0xf0]  ;;  %v5408_v17 = vld [vmem:[#allocation11 + $0x3c4] sm:$0xf] }
 0x14b   :  { %2269 = vmatpush.bf16.msra.mxu1 %v4238_v26  ;;  %v4606_v10 = vor.u32 %v5412_v4, %v4603_v8  ;;  %v4590_v21 = vor.u32 %v5408_v17, %v4587_v18  ;;  %v5404_v26 = vld [vmem:[#allocation11 + $0x3a4] sm:$0xf]  ;;  %v5291_v8 = vld [vmem:[#allocation11 + $0x14] sm:$0xf0] }
 0x14c   :  { %v1226_v56 = vadd.f32 %v1225_v13, %v1213_v28  ;;  %2280 = vmatpush.bf16.msra.mxu2 %v4398_v43  ;;  %v4574_v29 = vor.u32 %v5404_v26, %v4571_v27  ;;  %v4354_v43 = vor.u32 %v5351_v36, %v4353_v35  ;;  %v4481_v27 = vld [vmem:[#allocation11 + $0x2e8] sm:$0xf] }
 0x14d   :  { %2242 = vmatpush.bf16.msrb.mxu3 %v4506_v50 }
 0x150   :  { %2281 = vmatpush.bf16.msra.mxu2 %v4382_v55  ;;  %v4338_v55 = vor.u32 %v5347_v47, %v4337_v46 }
 0x151   :  { %v1214_v32 = vpop.f32.mrf.mxu0  ;;  %2243 = vmatpush.bf16.msrb.mxu3 %v4490_v1 }
 0x152   :  { %v1227_v51 = vpop.f32.mrf.mxu1  ;;  %v4178_v32 = vor.u32 %v5307_v25, %v4177_v23  ;;  %v5335_v25 = vld [vmem:[#allocation11 + $0x174] sm:$0xf0] }
 0x154   :  { %2282 = vmatpush.bf16.msra.mxu2 %v4366_v7  ;;  %v4113_v7 = vld [vmem:[#allocation11 + $0x8] sm:$0xf] }
 0x155   :  { %2288 = vmatpush.bf16.msra.mxu3 %v4606_v10  ;;  %v5339_v10 = vld [vmem:[#allocation11 + $0x194] sm:$0xf0] }
 0x157   :  { %v1238_v42 = vpop.f32.mrf.mxu2 }
 0x158   :  { %v1239_v44 = vadd.f32 %v1238_v42, %v1226_v56  ;;  %v1251_v45 = vpop.f32.mrf.mxu3  ;;  %v5400_v56 = vld [vmem:[#allocation11 + $0x384] sm:$0xf]  ;;  %v4162_v42 = vor.u32 %v5303_v34, %v4161_v33  ;;  %v4211_v33 = vld [vmem:[#allocation11 + $0xd8] sm:$0xf0] }
 0x159   :  { %v1264_v20 = vpop.f32.mrf.mxu0  ;;  %2289 = vmatpush.bf16.msra.mxu3 %v4590_v21  ;;  %v4558_v39 = vor.u32 %v5400_v56, %v4555_v37  ;;  %v4273_v37 = vld [vmem:[#allocation11 + $0x148] sm:$0xf] }
 0x15a   :  { %v1252_v48 = vadd.f32 %v1251_v45, %v1239_v44  ;;  %v1277_v54 = vpop.f32.mrf.mxu1  ;;  %v1265_v13 = vadd.f32 %v1264_v20, %v556_v58  ;;  %v4145_v44 = vld [vmem:[#allocation11 + $0x48] sm:$0xf]  ;;  %v5299_v45 = vld [vmem:[#allocation11 + $0x54] sm:$0xf0]  ;;  %v4539_v20 = vld [vmem:[#allocation11 + $0x370] sm:$0xf0] }
 0x15b   :  { %v5295_v58 = vld [vmem:[#allocation11 + $0x34] sm:$0xf0] }
 0x15c   :  { %v1411_v57 = vmax.f32 %v1252_v48, 0.0  ;;  %v1278_v24 = vadd.f32 %v1277_v54, %v1265_v13  ;;  %v5396_v48 = vld [vmem:[#allocation11 + $0x364] sm:$0xf]  ;;  %v4146_v54 = vor.u32 %v5299_v45, %v4145_v44 }
 0x15d   :  { %2290 = vmatpush.bf16.msra.mxu3 %v4574_v29  ;;  %v4542_v52 = vor.u32 %v5396_v48, %v4539_v20  ;;  %v4491_v29 = vld [vmem:[#allocation11 + $0x310] sm:$0xf0]  ;;  %v4257_v20 = vld [vmem:[#allocation11 + $0x128] sm:$0xf] }
 0x15e   :  { %v5903_v0 = vpack.c.bf16 %v1411_v57, %v1411_v57  ;;  %v4129_v57 = vld [vmem:[#allocation11 + $0x28] sm:$0xf] }
 0x15f   :  { %v1240_v6 = vpop.f32.mrf.mxu2  ;;  %v4130_v4 = vor.u32 %v5295_v58, %v4129_v57 }
 0x160   :  { %v1253_v9 = vpop.f32.mrf.mxu3  ;;  %2205 = vmatmul.bf16.vlgmr.msrb.gmra.mxu0 %v5903_v0 }
 0x161   :  { %2301 = vmatpush.bf16.msrb.mxu0 %v4226_v60  ;;  %v1266_v15 = vpop.f32.mrf.mxu0  ;;  %2291 = vmatpush.bf16.msra.mxu3 %v4558_v39  ;;  %v5343_v60 = vld [vmem:[#allocation11 + $0x1b4] sm:$0xf0]  ;;  %v4305_v9 = vld [vmem:[#allocation11 + $0x188] sm:$0xf] }
 0x162   :  { %v1279_v19 = vpop.f32.mrf.mxu1  ;;  %v4322_v6 = vor.u32 %v5343_v60, %v4321_v59  ;;  %v5317_v15 = vld [vmem:[#allocation11 + $0xec] sm:$0xf]  ;;  %v4306_v23 = vor.u32 %v5339_v10, %v4305_v9  ;;  %v4465_v39 = vld [vmem:[#allocation11 + $0x2c8] sm:$0xf]  ;;  %v5323_v60 = vld [vmem:[#allocation11 + $0x114] sm:$0xf0]  ;;  %v4434_v9 = vor.u32 %v5371_v62, %v4433_v61 }
 0x163   :  { %v4230_v26 = vor.u32 %v5317_v15, %v4227_v16  ;;  %v4241_v59 = vld [vmem:[#allocation11 + $0x108] sm:$0xf]  ;;  %v5297_v15 = vld [vmem:[#allocation11 + $0x4c] sm:$0xf]  ;;  %v4147_v16 = vld [vmem:[#allocation11 + $0x58] sm:$0xf0] }
 0x164   :  { %v4593_v62 = vld [vmem:[#allocation11 + $0x3c8] sm:$0xf] }
 0x165   :  { %2302 = vmatpush.bf16.msrb.mxu0 %v4210_v11  ;;  %2292 = vmatpush.bf16.msra.mxu3 %v4542_v52  ;;  %v5388_v11 = vld [vmem:[#allocation11 + $0x324] sm:$0xf]  ;;  %v5375_v52 = vld [vmem:[#allocation11 + $0x2b4] sm:$0xf0] }
 0x166   :  { %v4510_v17 = vor.u32 %v5388_v11, %v4507_v12  ;;  %v4417_v11 = vld [vmem:[#allocation11 + $0x268] sm:$0xf] }
 0x167   :  { %v1290_v28 = vpop.f32.mrf.mxu2 }
 0x168   :  { %v1291_v30 = vadd.f32 %v1290_v28, %v1278_v24  ;;  %v1303_v31 = vpop.f32.mrf.mxu3  ;;  %v4289_v24 = vld [vmem:[#allocation11 + $0x168] sm:$0xf]  ;;  %v5384_v28 = vld [vmem:[#allocation11 + $0x304] sm:$0xf] }
 0x169   :  { %2303 = vmatpush.bf16.msrb.mxu0 %v4194_v22  ;;  %2293 = vmatpush.bf16.msra.mxu3 %v4526_v2  ;;  %v4114_v22 = vor.u32 %v5291_v8, %v4113_v7  ;;  %v4494_v34 = vor.u32 %v5384_v28, %v4491_v29  ;;  %v4242_v7 = vor.u32 %v5323_v60, %v4241_v59  ;;  %v558_v8 = vperm.slane %v5899_v5, 3  ;;  %v5341_v28 = vld [vmem:[#allocation11 + $0x1ac] sm:$0xf]  ;;  %v4323_v29 = vld [vmem:[#allocation11 + $0x1b8] sm:$0xf0] }
 0x16a   :  { %v1304_v51 = vadd.f32 %v1303_v31, %v1291_v30  ;;  %v1316_v38 = vpop.f32.mrf.mxu0  ;;  %v5383_v31 = vld [vmem:[#allocation11 + $0x2f4] sm:$0xf0] }
 0x16b   :  { %v1317_v63 = vadd.f32 %v1316_v38, %v557_v49  ;;  %v4482_v36 = vor.u32 %v5383_v31, %v4481_v27  ;;  %v5331_v38 = vld [vmem:[#allocation11 + $0x154] sm:$0xf0] }
 0x16c   :  { %v1412_v40 = vmax.f32 %v1304_v51, 0.0  ;;  %v4290_v51 = vor.u32 %v5335_v25, %v4289_v24  ;;  %v4274_v46 = vor.u32 %v5331_v38, %v4273_v37  ;;  %v5327_v49 = vld [vmem:[#allocation11 + $0x134] sm:$0xf0]  ;;  %v5293_v25 = vld [vmem:[#allocation11 + $0x2c] sm:$0xf] }
 0x16d   :  { %v1329_v41 = vpop.f32.mrf.mxu1  ;;  %2304 = vmatpush.bf16.msrb.mxu0 %v4178_v32  ;;  %2294 = vmatpush.bf16.msra.mxu3 %v4510_v17  ;;  %v5313_v32 = vld [vmem:[#allocation11 + $0xcc] sm:$0xf]  ;;  %v5363_v24 = vld [vmem:[#allocation11 + $0x254] sm:$0xf0] }
 0x16e   :  { %v5906_v14 = vpack.c.bf16 %v1412_v40, %v1412_v40  ;;  %v1330_v13 = vadd.f32 %v1329_v41, %v1317_v63  ;;  %v4214_v56 = vor.u32 %v5313_v32, %v4211_v33  ;;  %v5379_v41 = vld [vmem:[#allocation11 + $0x2d4] sm:$0xf0]  ;;  %v5301_v63 = vld [vmem:[#allocation11 + $0x6c] sm:$0xf]  ;;  %v4385_v33 = vld [vmem:[#allocation11 + $0x228] sm:$0xf] }
 0x16f   :  { %v1292_v50 = vpop.f32.mrf.mxu2  ;;  %v4466_v47 = vor.u32 %v5379_v41, %v4465_v39  ;;  %v5345_v17 = vld [vmem:[#allocation11 + $0x1cc] sm:$0xf]  ;;  %v4307_v39 = vld [vmem:[#allocation11 + $0x198] sm:$0xf0] }
 0x170   :  { %v1305_v53 = vpop.f32.mrf.mxu3  ;;  %2218 = vmatmul.bf16.vlgmr.msrb.gmra.mxu1 %v5906_v14  ;;  %2257 = vmatmul.bf16.vlgmr.msra.gmra.mxu0 %v5903_v0  ;;  %v4449_v50 = vld [vmem:[#allocation11 + $0x2a8] sm:$0xf]  ;;  %v5337_v38 = vld [vmem:[#allocation11 + $0x18c] sm:$0xf] }
 0x171   :  { %2305 = vmatpush.bf16.msrb.mxu0 %v4162_v42  ;;  %2314 = vmatpush.bf16.msrb.mxu1 %v4354_v43  ;;  %v5309_v42 = vld [vmem:[#allocation11 + $0xac] sm:$0xf]  ;;  %v4195_v43 = vld [vmem:[#allocation11 + $0xb8] sm:$0xf0]  ;;  %v4450_v57 = vor.u32 %v5375_v52, %v4449_v50 }
 0x172   :  { %v1318_v1 = vpop.f32.mrf.mxu0  ;;  %2295 = vmatpush.bf16.msra.mxu3 %v4494_v34  ;;  %v4198_v48 = vor.u32 %v5309_v42, %v4195_v43  ;;  %v5305_v53 = vld [vmem:[#allocation11 + $0x8c] sm:$0xf]  ;;  %v4291_v52 = vld [vmem:[#allocation11 + $0x178] sm:$0xf0] }
 0x173   :  { %v4163_v1 = vld [vmem:[#allocation11 + $0x78] sm:$0xf0]  ;;  %v5333_v50 = vld [vmem:[#allocation11 + $0x16c] sm:$0xf] }
 0x174   :  { %v4166_v10 = vor.u32 %v5301_v63, %v4163_v1  ;;  %v4294_v60 = vor.u32 %v5333_v50, %v4291_v52  ;;  %v5411_v63 = vld [vmem:[#allocation11 + $0x3d4] sm:$0xf0]  ;;  %v5329_v1 = vld [vmem:[#allocation11 + $0x14c] sm:$0xf]  ;;  %v4611_v50 = vld [vmem:[#allocation11 + $0x3f8] sm:$0xf0] }
 0x175   :  { %v1331_v3 = vpop.f32.mrf.mxu1  ;;  %2306 = vmatpush.bf16.msrb.mxu0 %v4146_v54  ;;  %2315 = vmatpush.bf16.msrb.mxu1 %v4338_v55  ;;  %v4179_v54 = vld [vmem:[#allocation11 + $0x98] sm:$0xf0]  ;;  %v4258_v55 = vor.u32 %v5327_v49, %v4257_v20  ;;  %v4609_v20 = vld [vmem:[#allocation11 + $0x3e8] sm:$0xf]  ;;  %v5415_v49 = vld [vmem:[#allocation11 + $0x3f4] sm:$0xf0] }
 0x176   :  { %v4182_v58 = vor.u32 %v5305_v53, %v4179_v54  ;;  %v5349_v3 = vld [vmem:[#allocation11 + $0x1ec] sm:$0xf]  ;;  %v4483_v54 = vld [vmem:[#allocation11 + $0x2f8] sm:$0xf0] }
 0x177   :  { %v1342_v18 = vpop.f32.mrf.mxu2  ;;  %v5381_v53 = vld [vmem:[#allocation11 + $0x2ec] sm:$0xf] }
 0x178   :  { %v1355_v19 = vpop.f32.mrf.mxu3  ;;  %v1343_v21 = vadd.f32 %v1342_v18, %v1330_v13  ;;  %v5367_v13 = vld [vmem:[#allocation11 + $0x274] sm:$0xf0]  ;;  %v4339_v18 = vld [vmem:[#allocation11 + $0x1d8] sm:$0xf0]  ;;  %v4486_v61 = vor.u32 %v5381_v53, %v4483_v54  ;;  %v5409_v54 = vld [vmem:[#allocation11 + $0x3cc] sm:$0xf] }
 0x179   :  { %2307 = vmatpush.bf16.msrb.mxu0 %v4130_v4  ;;  %2316 = vmatpush.bf16.msrb.mxu1 %v4322_v6  ;;  %v4355_v4 = vld [vmem:[#allocation11 + $0x1f8] sm:$0xf0]  ;;  %v4342_v5 = vor.u32 %v5345_v17, %v4339_v18 }
 0x17a   :  { %v1356_v30 = vadd.f32 %v1355_v19, %v1343_v21  ;;  %v4358_v12 = vor.u32 %v5349_v3, %v4355_v4  ;;  %v4418_v19 = vor.u32 %v5367_v13, %v4417_v11  ;;  %v4150_v21 = vor.u32 %v5297_v15, %v4147_v16  ;;  %v4275_v3 = vld [vmem:[#allocation11 + $0x158] sm:$0xf0]  ;;  %v5377_v4 = vld [vmem:[#allocation11 + $0x2cc] sm:$0xf]  ;;  %v4577_v11 = vld [vmem:[#allocation11 + $0x3a8] sm:$0xf] }
 0x17b   :  { %v5325_v13 = vld [vmem:[#allocation11 + $0x12c] sm:$0xf]  ;;  %v4259_v15 = vld [vmem:[#allocation11 + $0x138] sm:$0xf0] }
 0x17c   :  { %v1413_v35 = vmax.f32 %v1356_v30, 0.0  ;;  %v5373_v16 = vld [vmem:[#allocation11 + $0x2ac] sm:$0xf]  ;;  %v4451_v17 = vld [vmem:[#allocation11 + $0x2b8] sm:$0xf0] }
 0x17d   :  { %2308 = vmatpush.bf16.msrb.mxu0 %v4114_v22  ;;  %2317 = vmatpush.bf16.msrb.mxu1 %v4306_v23  ;;  %v4401_v22 = vld [vmem:[#allocation11 + $0x248] sm:$0xf] }
 0x17e   :  { %v5911_v40 = vpack.c.bf16 %v1413_v35, %v1413_v35  ;;  %v4402_v31 = vor.u32 %v5363_v24, %v4401_v22  ;;  %v4326_v35 = vor.u32 %v5341_v28, %v4323_v29  ;;  %v5403_v22 = vld [vmem:[#allocation11 + $0x394] sm:$0xf0]  ;;  %v5369_v24 = vld [vmem:[#allocation11 + $0x28c] sm:$0xf]  ;;  %v4545_v29 = vld [vmem:[#allocation11 + $0x368] sm:$0xf] }
 0x17f   :  { %v1344_v44 = vpop.f32.mrf.mxu2 }
 0x180   :  { %v1357_v45 = vpop.f32.mrf.mxu3  ;;  %2270 = vmatmul.bf16.vlgmr.msra.gmra.mxu1 %v5906_v14  ;;  %2309 = vmatmul.bf16.vlgmr.msrb.gmra.mxu0 %v5903_v0 }
 0x181   :  { %2353 = vmatpush.bf16.msra.mxu0 %v4230_v26  ;;  %2231 = vmatmul.bf16.vlgmr.msrb.gmra.mxu2 %v5911_v40  ;;  %v4131_v26 = vld [vmem:[#allocation11 + $0x38] sm:$0xf0]  ;;  %v4369_v45 = vld [vmem:[#allocation11 + $0x208] sm:$0xf] }
 0x182   :  { %2318 = vmatpush.bf16.msrb.mxu1 %v4290_v51  ;;  %2327 = vmatpush.bf16.msrb.mxu2 %v4482_v36  ;;  %v4134_v32 = vor.u32 %v5293_v25, %v4131_v26  ;;  %v5359_v51 = vld [vmem:[#allocation11 + $0x234] sm:$0xf0]  ;;  %v5289_v36 = vld [vmem:[#allocation11 + $0xc] sm:$0xf]  ;;  %v4435_v25 = vld [vmem:[#allocation11 + $0x298] sm:$0xf0] }
 0x183   :  { %v4386_v43 = vor.u32 %v5359_v51, %v4385_v33  ;;  %v4438_v28 = vor.u32 %v5369_v24, %v4435_v25  ;;  %v5395_v51 = vld [vmem:[#allocation11 + $0x354] sm:$0xf0]  ;;  %v5434_v24 = vld [vmem:[#allocation14 + $0x8c] sm:$0xf0]  ;;  %v4665_v25 = vld [vmem:[#allocation14 + $0x60] sm:$0xf] }
 0x185   :  { %2354 = vmatpush.bf16.msra.mxu0 %v4214_v56  ;;  %v4115_v56 = vld [vmem:[#allocation11 + $0x18] sm:$0xf0] }
 0x186   :  { %2319 = vmatpush.bf16.msrb.mxu1 %v4274_v46  ;;  %2328 = vmatpush.bf16.msrb.mxu2 %v4466_v47  ;;  %v4118_v44 = vor.u32 %v5289_v36, %v4115_v56  ;;  %v5355_v46 = vld [vmem:[#allocation11 + $0x214] sm:$0xf0]  ;;  %v5361_v36 = vld [vmem:[#allocation11 + $0x24c] sm:$0xf]  ;;  %v4403_v56 = vld [vmem:[#allocation11 + $0x258] sm:$0xf0] }
 0x189   :  { %2355 = vmatpush.bf16.msra.mxu0 %v4198_v48  ;;  %v4310_v48 = vor.u32 %v5337_v38, %v4307_v39  ;;  %v4406_v38 = vor.u32 %v5361_v36, %v4403_v56  ;;  %v4513_v39 = vld [vmem:[#allocation11 + $0x328] sm:$0xf]  ;;  %v5474_v36 = vld [vmem:[#allocation14 + $0x1cc] sm:$0xf0] }
 0x18a   :  { %v1368_v2 = vpop.f32.mrf.mxu0  ;;  %2320 = vmatpush.bf16.msrb.mxu1 %v4258_v55  ;;  %2329 = vmatpush.bf16.msrb.mxu2 %v4450_v57  ;;  %v4370_v57 = vor.u32 %v5355_v46, %v4369_v45  ;;  %v4497_v46 = vld [vmem:[#allocation11 + $0x308] sm:$0xf] }
 0x18b   :  { %v1369_v23 = vadd.f32 %v1368_v2, %v558_v8  ;;  %v4594_v8 = vor.u32 %v5411_v63, %v4593_v62  ;;  %v5401_v62 = vld [vmem:[#allocation11 + $0x38c] sm:$0xf]  ;;  %v4563_v63 = vld [vmem:[#allocation11 + $0x398] sm:$0xf0] }
 0x18d   :  { %v1381_v6 = vpop.f32.mrf.mxu1  ;;  %2356 = vmatpush.bf16.msra.mxu0 %v4182_v58  ;;  %v4610_v58 = vor.u32 %v5415_v49, %v4609_v20  ;;  %v4371_v20 = vld [vmem:[#allocation11 + $0x218] sm:$0xf0]  ;;  %v5413_v49 = vld [vmem:[#allocation11 + $0x3ec] sm:$0xf] }
 0x18e   :  { %2321 = vmatpush.bf16.msrb.mxu1 %v4242_v7  ;;  %2330 = vmatpush.bf16.msrb.mxu2 %v4434_v9  ;;  %v1382_v34 = vadd.f32 %v1381_v6, %v1369_v23  ;;  %v4467_v6 = vld [vmem:[#allocation11 + $0x2d8] sm:$0xf0]  ;;  %v4278_v9 = vor.u32 %v5329_v1, %v4275_v3  ;;  %v5321_v23 = vld [vmem:[#allocation11 + $0x10c] sm:$0xf]  ;;  %v4614_v53 = vor.u32 %v5413_v49, %v4611_v50  ;;  %v4731_v49 = vld [vmem:[#allocation14 + $0xf0] sm:$0xf0] }
 0x18f   :  { %v4566_v1 = vor.u32 %v5401_v62, %v4563_v63  ;;  %v4547_v3 = vld [vmem:[#allocation11 + $0x378] sm:$0xf0] }
 0x191   :  { %2357 = vmatpush.bf16.msra.mxu0 %v4166_v10  ;;  %2322 = vmatmul.bf16.vlgmr.msrb.gmra.mxu1 %v5906_v14  ;;  %v4470_v10 = vor.u32 %v5377_v4, %v4467_v6  ;;  %v4729_v4 = vld [vmem:[#allocation14 + $0xe0] sm:$0xf]  ;;  %v5446_v6 = vld [vmem:[#allocation14 + $0xec] sm:$0xf0] }
 0x192   :  { %2366 = vmatpush.bf16.msra.mxu1 %v4358_v12  ;;  %v1370_v27 = vpop.f32.mrf.mxu0  ;;  %2283 = vmatmul.bf16.vlgmr.msra.gmra.mxu2 %v5911_v40  ;;  %v5407_v12 = vld [vmem:[#allocation11 + $0x3b4] sm:$0xf0] }
 0x193   :  { %2331 = vmatpush.bf16.msrb.mxu2 %v4418_v19  ;;  %v4578_v18 = vor.u32 %v5407_v12, %v4577_v11  ;;  %v4454_v19 = vor.u32 %v5373_v16, %v4451_v17  ;;  %v5389_v12 = vld [vmem:[#allocation11 + $0x32c] sm:$0xf] }
 0x195   :  { %v1383_v30 = vpop.f32.mrf.mxu1  ;;  %2358 = vmatpush.bf16.msra.mxu0 %v4150_v21  ;;  %v4561_v21 = vld [vmem:[#allocation11 + $0x388] sm:$0xf] }
 0x196   :  { %2367 = vmatpush.bf16.msra.mxu1 %v4342_v5  ;;  %v4243_v5 = vld [vmem:[#allocation11 + $0x118] sm:$0xf0]  ;;  %v4562_v26 = vor.u32 %v5403_v22, %v4561_v21  ;;  %v5399_v30 = vld [vmem:[#allocation11 + $0x374] sm:$0xf0] }
 0x197   :  { %v1394_v37 = vpop.f32.mrf.mxu2  ;;  %2332 = vmatpush.bf16.msrb.mxu2 %v4402_v31  ;;  %v4246_v27 = vor.u32 %v5321_v23, %v4243_v5  ;;  %v5365_v31 = vld [vmem:[#allocation11 + $0x26c] sm:$0xf]  ;;  %v4546_v33 = vor.u32 %v5399_v30, %v4545_v29  ;;  %v4499_v21 = vld [vmem:[#allocation11 + $0x318] sm:$0xf0]  ;;  %v4681_v5 = vld [vmem:[#allocation14 + $0x80] sm:$0xf] }
 0x198   :  { %v1395_v41 = vadd.f32 %v1394_v37, %v1382_v34  ;;  %v1407_v42 = vpop.f32.mrf.mxu3  ;;  %v5478_v29 = vld [vmem:[#allocation14 + $0x1ec] sm:$0xf0] }
 0x199   :  { %2359 = vmatpush.bf16.msra.mxu0 %v4134_v32  ;;  %v4419_v32 = vld [vmem:[#allocation11 + $0x278] sm:$0xf0] }
 0x19a   :  { %v1408_v47 = vadd.f32 %v1407_v42, %v1395_v41  ;;  %2368 = vmatpush.bf16.msra.mxu1 %v4326_v35  ;;  %v4422_v34 = vor.u32 %v5365_v31, %v4419_v32  ;;  %v4529_v35 = vld [vmem:[#allocation11 + $0x348] sm:$0xf]  ;;  %v5391_v41 = vld [vmem:[#allocation11 + $0x334] sm:$0xf0]  ;;  %v5357_v42 = vld [vmem:[#allocation11 + $0x22c] sm:$0xf] }
 0x19b   :  { %2333 = vmatpush.bf16.msrb.mxu2 %v4386_v43  ;;  %v4530_v37 = vor.u32 %v5395_v51, %v4529_v35  ;;  %v4387_v43 = vld [vmem:[#allocation11 + $0x238] sm:$0xf0]  ;;  %v4841_v51 = vld [vmem:[#allocation14 + $0x1c0] sm:$0xf] }
 0x19c   :  { %v1414_v55 = vmax.f32 %v1408_v47, 0.0  ;;  %v4390_v45 = vor.u32 %v5357_v42, %v4387_v43  ;;  %v5387_v47 = vld [vmem:[#allocation11 + $0x314] sm:$0xf0]  ;;  %v4842_v56 = vor.u32 %v5474_v36, %v4841_v51  ;;  %v5470_v42 = vld [vmem:[#allocation14 + $0x1ac] sm:$0xf0] }
 0x19d   :  { %2360 = vmatpush.bf16.msra.mxu0 %v4118_v44  ;;  %v4514_v44 = vor.u32 %v5391_v41, %v4513_v39  ;;  %v4498_v52 = vor.u32 %v5387_v47, %v4497_v46  ;;  %v4825_v39 = vld [vmem:[#allocation14 + $0x1a0] sm:$0xf]  ;;  %v5494_v51 = vld [vmem:[#allocation14 + $0x26c] sm:$0xf0] }
 0x19e   :  { %v5919_v59 = vpack.c.bf16 %v1414_v55, %v1414_v55  ;;  %2369 = vmatpush.bf16.msra.mxu1 %v4310_v48  ;;  %v5353_v48 = vld [vmem:[#allocation11 + $0x20c] sm:$0xf]  ;;  %v4595_v55 = vld [vmem:[#allocation11 + $0x3d8] sm:$0xf0]  ;;  %v4809_v46 = vld [vmem:[#allocation14 + $0x180] sm:$0xf] }
 0x19f   :  { %v1396_v2 = vpop.f32.mrf.mxu2  ;;  %2334 = vmatpush.bf16.msrb.mxu2 %v4370_v57  ;;  %v4598_v57 = vor.u32 %v5409_v54, %v4595_v55  ;;  %v4985_v54 = vld [vmem:[#allocation14 + $0x2e0] sm:$0xf] }
 0x1a0   :  { %v1409_v7 = vpop.f32.mrf.mxu3  ;;  %2244 = vmatmul.bf16.vlgmr.msrb.gmra.mxu3 %v5919_v59  ;;  %2361 = vmatmul.bf16.vlgmr.msra.gmra.mxu0 %v5903_v0  ;;  %v4262_v0 = vor.u32 %v5325_v13, %v4259_v15  ;;  %v5397_v2 = vld [vmem:[#allocation11 + $0x36c] sm:$0xf]  ;;  %v4713_v13 = vld [vmem:[#allocation14 + $0xc0] sm:$0xf]  ;;  %v5442_v15 = vld [vmem:[#allocation14 + $0xcc] sm:$0xf0] }
 0x1a1   :  { %2340 = vmatpush.bf16.msrb.mxu3 %v4610_v58  ;;  %v5405_v58 = vld [vmem:[#allocation11 + $0x3ac] sm:$0xf]  ;;  %v4730_v7 = vor.u32 %v5446_v6, %v4729_v4  ;;  %v4714_v17 = vor.u32 %v5442_v15, %v4713_v13  ;;  %v4969_v4 = vld [vmem:[#allocation14 + $0x2c0] sm:$0xf] }
 0x1a2   :  { %2370 = vmatpush.bf16.msra.mxu1 %v4294_v60  ;;  %2335 = vmatmul.bf16.vlgmr.msrb.gmra.mxu2 %v5911_v40  ;;  %v4579_v60 = vld [vmem:[#allocation11 + $0x3b8] sm:$0xf0]  ;;  %v4953_v13 = vld [vmem:[#allocation14 + $0x2a0] sm:$0xf] }
 0x1a3   :  { %2379 = vmatpush.bf16.msra.mxu2 %v4486_v61  ;;  %v4582_v61 = vor.u32 %v5405_v58, %v4579_v60  ;;  %3191 = vmatpush.bf16.msrb.mxu0 %v4730_v7  ;;  %v5440_v58 = vld [vmem:[#allocation14 + $0xc4] sm:$0xf]  ;;  %v4715_v60 = vld [vmem:[#allocation14 + $0xd0] sm:$0xf0]  ;;  %v5506_v7 = vld [vmem:[#allocation14 + $0x2cc] sm:$0xf0] }
 0x1a5   :  { %2341 = vmatpush.bf16.msrb.mxu3 %v4594_v8  ;;  %v4550_v8 = vor.u32 %v5397_v2, %v4547_v3  ;;  %v4777_v2 = vld [vmem:[#allocation14 + $0x140] sm:$0xf]  ;;  %v5458_v3 = vld [vmem:[#allocation14 + $0x14c] sm:$0xf0] }
 0x1a6   :  { %2371 = vmatpush.bf16.msra.mxu1 %v4278_v9  ;;  %v5393_v9 = vld [vmem:[#allocation11 + $0x34c] sm:$0xf]  ;;  %v4778_v6 = vor.u32 %v5458_v3, %v4777_v2  ;;  %v4811_v3 = vld [vmem:[#allocation14 + $0x190] sm:$0xf0] }
 0x1a7   :  { %2380 = vmatpush.bf16.msra.mxu2 %v4470_v10  ;;  %v4531_v10 = vld [vmem:[#allocation11 + $0x358] sm:$0xf0]  ;;  %3192 = vmatpush.bf16.msrb.mxu0 %v4714_v17  ;;  %v5432_v17 = vld [vmem:[#allocation14 + $0x84] sm:$0xf] }
 0x1a8   :  { %v4534_v11 = vor.u32 %v5393_v9, %v4531_v10  ;;  %v4699_v9 = vld [vmem:[#allocation14 + $0xb0] sm:$0xf0]  ;;  %v4970_v10 = vor.u32 %v5506_v7, %v4969_v4  ;;  %v5482_v7 = vld [vmem:[#allocation14 + $0x20c] sm:$0xf0] }
 0x1a9   :  { %2342 = vmatpush.bf16.msrb.mxu3 %v4578_v18  ;;  %v4697_v18 = vld [vmem:[#allocation14 + $0xa0] sm:$0xf] }
 0x1aa   :  { %2372 = vmatpush.bf16.msra.mxu1 %v4262_v0  ;;  %v5438_v0 = vld [vmem:[#allocation14 + $0xac] sm:$0xf0] }
 0x1ab   :  { %2381 = vmatpush.bf16.msra.mxu2 %v4454_v19  ;;  %v5385_v19 = vld [vmem:[#allocation11 + $0x30c] sm:$0xf]  ;;  %v4698_v22 = vor.u32 %v5438_v0, %v4697_v18  ;;  %v4683_v18 = vld [vmem:[#allocation14 + $0x90] sm:$0xf0] }
 0x1ac   :  { %v4502_v23 = vor.u32 %v5385_v19, %v4499_v21 }
 0x1ad   :  { %2343 = vmatpush.bf16.msrb.mxu3 %v4562_v26  ;;  %3193 = vmatpush.bf16.msrb.mxu0 %v4698_v22  ;;  %v4682_v26 = vor.u32 %v5434_v24, %v4681_v5  ;;  %v4686_v22 = vor.u32 %v5432_v17, %v4683_v18  ;;  %v5450_v5 = vld [vmem:[#allocation14 + $0x10c] sm:$0xf0]  ;;  %v4937_v24 = vld [vmem:[#allocation14 + $0x280] sm:$0xf] }
 0x1ae   :  { %2373 = vmatpush.bf16.msra.mxu1 %v4246_v27  ;;  %v5430_v27 = vld [vmem:[#allocation14 + $0x6c] sm:$0xf0]  ;;  %v5097_v18 = vld [vmem:[#allocation14 + $0x3c0] sm:$0xf] }
 0x1af   :  { %2382 = vmatpush.bf16.msra.mxu2 %v4438_v28  ;;  %v4857_v28 = vld [vmem:[#allocation14 + $0x1e0] sm:$0xf]  ;;  %v4666_v31 = vor.u32 %v5430_v27, %v4665_v25  ;;  %v5498_v25 = vld [vmem:[#allocation14 + $0x28c] sm:$0xf0] }
 0x1b0   :  { %2296 = vmatmul.bf16.vlgmr.msra.gmra.mxu3 %v5919_v59  ;;  %v4858_v30 = vor.u32 %v5478_v29, %v4857_v28  ;;  %v4938_v27 = vor.u32 %v5498_v25, %v4937_v24  ;;  %v5428_v28 = vld [vmem:[#allocation14 + $0x64] sm:$0xf]  ;;  %v4667_v29 = vld [vmem:[#allocation14 + $0x70] sm:$0xf0] }
 0x1b1   :  { %2344 = vmatpush.bf16.msrb.mxu3 %v4546_v33  ;;  %2374 = vmatmul.bf16.vlgmr.msra.gmra.mxu1 %v5906_v14  ;;  %v4374_v14 = vor.u32 %v5353_v48, %v4371_v20  ;;  %v4649_v33 = vld [vmem:[#allocation14 + $0x40] sm:$0xf]  ;;  %v5466_v48 = vld [vmem:[#allocation14 + $0x18c] sm:$0xf0]  ;;  %v5444_v20 = vld [vmem:[#allocation14 + $0xe4] sm:$0xf] }
 0x1b2   :  { %3194 = vmatpush.bf16.msrb.mxu0 %v4682_v26  ;;  %3204 = vmatpush.bf16.msrb.mxu1 %v4858_v30  ;;  %v4810_v50 = vor.u32 %v5466_v48, %v4809_v46  ;;  %v5476_v30 = vld [vmem:[#allocation14 + $0x1e4] sm:$0xf]  ;;  %v4635_v48 = vld [vmem:[#allocation14 + $0x30] sm:$0xf0] }
 0x1b3   :  { %2383 = vmatpush.bf16.msra.mxu2 %v4422_v34  ;;  %v5426_v34 = vld [vmem:[#allocation14 + $0x4c] sm:$0xf0] }
 0x1b4   :  { %v4650_v35 = vor.u32 %v5426_v34, %v4649_v33  ;;  %v4859_v33 = vld [vmem:[#allocation14 + $0x1f0] sm:$0xf0] }
 0x1b5   :  { %2345 = vmatpush.bf16.msrb.mxu3 %v4530_v37  ;;  %v4633_v37 = vld [vmem:[#allocation14 + $0x20] sm:$0xf]  ;;  %v4862_v34 = vor.u32 %v5476_v30, %v4859_v33  ;;  %v4763_v33 = vld [vmem:[#allocation14 + $0x130] sm:$0xf0] }
 0x1b6   :  { %3195 = vmatpush.bf16.msrb.mxu0 %v4666_v31  ;;  %3205 = vmatpush.bf16.msrb.mxu1 %v4842_v56  ;;  %v4670_v31 = vor.u32 %v5428_v28, %v4667_v29  ;;  %v5424_v56 = vld [vmem:[#allocation14 + $0x44] sm:$0xf]  ;;  %v5081_v28 = vld [vmem:[#allocation14 + $0x3a0] sm:$0xf]  ;;  %v5534_v29 = vld [vmem:[#allocation14 + $0x3ac] sm:$0xf0] }
 0x1b7   :  { %2384 = vmatpush.bf16.msra.mxu2 %v4406_v38  ;;  %v5422_v38 = vld [vmem:[#allocation14 + $0x2c] sm:$0xf0]  ;;  %v5082_v30 = vor.u32 %v5534_v29, %v5081_v28  ;;  %v4721_v28 = vld [vmem:[#allocation14 + $0xc8] sm:$0xf]  ;;  %v5443_v29 = vld [vmem:[#allocation14 + $0xd4] sm:$0xf0] }
 0x1b8   :  { %v4634_v41 = vor.u32 %v5422_v38, %v4633_v37  ;;  %v4651_v37 = vld [vmem:[#allocation14 + $0x50] sm:$0xf0]  ;;  %v5472_v38 = vld [vmem:[#allocation14 + $0x1c4] sm:$0xf] }
 0x1b9   :  { %2346 = vmatpush.bf16.msrb.mxu3 %v4514_v44  ;;  %v4826_v44 = vor.u32 %v5470_v42, %v4825_v39  ;;  %v4654_v42 = vor.u32 %v5424_v56, %v4651_v37  ;;  %v5943_v56 = vld [vmem:[#allocation12] sm:$0xf]  ;;  %v5065_v37 = vld [vmem:[#allocation14 + $0x380] sm:$0xf] }
 0x1ba   :  { %3196 = vmatpush.bf16.msrb.mxu0 %v4650_v35  ;;  %v4921_v35 = vld [vmem:[#allocation14 + $0x260] sm:$0xf] }
 0x1bb   :  { %2385 = vmatpush.bf16.msra.mxu2 %v4390_v45  ;;  %v4617_v45 = vld [vmem:[#allocation14] sm:$0xf]  ;;  %3206 = vmatpush.bf16.msrb.mxu1 %v4826_v44  ;;  %v4922_v36 = vor.u32 %v5494_v51, %v4921_v35  ;;  %v4955_v51 = vld [vmem:[#allocation14 + $0x2b0] sm:$0xf0] }
 0x1bd   :  { %2347 = vmatpush.bf16.msrb.mxu3 %v4498_v52  ;;  %v4734_v52 = vor.u32 %v5444_v20, %v4731_v49  ;;  %v5468_v20 = vld [vmem:[#allocation14 + $0x1a4] sm:$0xf] }
 0x1be   :  { %3197 = vmatpush.bf16.msrb.mxu0 %v4634_v41 }
 0x1bf   :  { %2386 = vmatpush.bf16.msra.mxu2 %v4374_v14  ;;  %3207 = vmatpush.bf16.msrb.mxu1 %v4810_v50  ;;  %v4793_v14 = vld [vmem:[#allocation14 + $0x160] sm:$0xf]  ;;  %v4827_v50 = vld [vmem:[#allocation14 + $0x1b0] sm:$0xf0] }
 0x1c0   :  { %2348 = vmatmul.bf16.vlgmr.msrb.gmra.mxu3 %v5919_v59 }
 0x1c1   :  { %2392 = vmatpush.bf16.msra.mxu3 %v4614_v53  ;;  %v5462_v53 = vld [vmem:[#allocation14 + $0x16c] sm:$0xf0] }
 0x1c2   :  { %2387 = vmatmul.bf16.vlgmr.msra.gmra.mxu2 %v5911_v40  ;;  %v4515_v40 = vld [vmem:[#allocation11 + $0x338] sm:$0xf0]  ;;  %v4794_v55 = vor.u32 %v5462_v53, %v4793_v14  ;;  %v4889_v14 = vld [vmem:[#allocation14 + $0x220] sm:$0xf]  ;;  %v5486_v53 = vld [vmem:[#allocation14 + $0x22c] sm:$0xf0] }
 0x1c3   :  { %v4518_v16 = vor.u32 %v5389_v12, %v4515_v40  ;;  %v4761_v12 = vld [vmem:[#allocation14 + $0x120] sm:$0xf]  ;;  %v5454_v40 = vld [vmem:[#allocation14 + $0x12c] sm:$0xf0] }
 0x1c4   :  { %3208 = vmatpush.bf16.msrb.mxu1 %v4794_v55  ;;  %v4762_v15 = vor.u32 %v5454_v40, %v4761_v12  ;;  %v4890_v55 = vor.u32 %v5486_v53, %v4889_v14  ;;  %v4795_v12 = vld [vmem:[#allocation14 + $0x170] sm:$0xf0]  ;;  %v5492_v53 = vld [vmem:[#allocation14 + $0x264] sm:$0xf] }
 0x1c5   :  { %2393 = vmatpush.bf16.msra.mxu3 %v4598_v57  ;;  %v5510_v57 = vld [vmem:[#allocation14 + $0x2ec] sm:$0xf0] }
 0x1c6   :  { %v4986_v63 = vor.u32 %v5510_v57, %v4985_v54  ;;  %v5416_v57 = vld [vmem:[#allocation14 + $0x4] sm:$0xf] }
 0x1c8   :  { %3217 = vmatpush.bf16.msrb.mxu2 %v4986_v63  ;;  %3209 = vmatpush.bf16.msrb.mxu1 %v4778_v6  ;;  %v4873_v6 = vld [vmem:[#allocation14 + $0x200] sm:$0xf] }
 0x1c9   :  { %2394 = vmatpush.bf16.msra.mxu3 %v4582_v61 }
 0x1cc   :  { %3218 = vmatpush.bf16.msrb.mxu2 %v4970_v10  ;;  %3210 = vmatpush.bf16.msrb.mxu1 %v4762_v15  ;;  %v5542_v10 = vld [vmem:[#allocation14 + $0x3ec] sm:$0xf0]  ;;  %v5508_v15 = vld [vmem:[#allocation14 + $0x2e4] sm:$0xf] }
 0x1cd   :  { %2395 = vmatpush.bf16.msra.mxu3 %v4566_v1  ;;  %v4718_v1 = vor.u32 %v5440_v58, %v4715_v60  ;;  %v4619_v58 = vld [vmem:[#allocation14 + $0x10] sm:$0xf0]  ;;  %v5464_v60 = vld [vmem:[#allocation14 + $0x184] sm:$0xf] }
 0x1ce   :  { %v4622_v2 = vor.u32 %v5416_v57, %v4619_v58  ;;  %v4814_v4 = vor.u32 %v5464_v60, %v4811_v3 }
 0x1d1   :  { %2396 = vmatpush.bf16.msra.mxu3 %v4550_v8  ;;  %v5436_v8 = vld [vmem:[#allocation14 + $0xa4] sm:$0xf] }
 0x1d5   :  { %2397 = vmatpush.bf16.msra.mxu3 %v4534_v11  ;;  %v4702_v11 = vor.u32 %v5436_v8, %v4699_v9  ;;  %v5113_v8 = vld [vmem:[#allocation14 + $0x3e0] sm:$0xf]  ;;  %v4874_v9 = vor.u32 %v5482_v7, %v4873_v6  ;;  %v4907_v6 = vld [vmem:[#allocation14 + $0x250] sm:$0xf0] }
 0x1d6   :  { %v5114_v40 = vor.u32 %v5542_v10, %v5113_v8  ;;  %v5017_v10 = vld [vmem:[#allocation14 + $0x320] sm:$0xf] }
 0x1d9   :  { %2398 = vmatpush.bf16.msra.mxu3 %v4518_v16  ;;  %v5502_v16 = vld [vmem:[#allocation14 + $0x2ac] sm:$0xf0] }
 0x1da   :  { %v4954_v21 = vor.u32 %v5502_v16, %v4953_v13  ;;  %v4987_v16 = vld [vmem:[#allocation14 + $0x2f0] sm:$0xf0] }
 0x1db   :  { %v4990_v17 = vor.u32 %v5508_v15, %v4987_v16  ;;  %v4737_v16 = vld [vmem:[#allocation14 + $0xe8] sm:$0xf] }
 0x1dc   :  { %3219 = vmatpush.bf16.msrb.mxu2 %v4954_v21 }
 0x1dd   :  { %2399 = vmatpush.bf16.msra.mxu3 %v4502_v23  ;;  %v5929_v32 = vpop.f32.mrf.mxu0  ;;  %v4745_v23 = vld [vmem:[#allocation14 + $0x100] sm:$0xf] }
 0x1de   :  { %v4746_v26 = vor.u32 %v5450_v5, %v4745_v23  ;;  %v4779_v23 = vld [vmem:[#allocation14 + $0x150] sm:$0xf0]  ;;  %v5504_v5 = vld [vmem:[#allocation14 + $0x2c4] sm:$0xf] }
 0x1e0   :  { %2400 = vmatmul.bf16.vlgmr.msra.gmra.mxu3 %v5919_v59  ;;  %v5418_v59 = vld [vmem:[#allocation14 + $0xc] sm:$0xf0]  ;;  %3211 = vmatpush.bf16.msrb.mxu1 %v4746_v26  ;;  %v4971_v26 = vld [vmem:[#allocation14 + $0x2d0] sm:$0xf0] }
 0x1e1   :  { %v4618_v47 = vor.u32 %v5418_v59, %v4617_v45  ;;  %3220 = vmatpush.bf16.msrb.mxu2 %v4938_v27  ;;  %v4905_v45 = vld [vmem:[#allocation14 + $0x240] sm:$0xf]  ;;  %v5490_v59 = vld [vmem:[#allocation14 + $0x24c] sm:$0xf0]  ;;  %3230 = vmatpush.bf16.msrb.mxu3 %v5114_v40  ;;  %v4974_v27 = vor.u32 %v5504_v5, %v4971_v26  ;;  %v5480_v5 = vld [vmem:[#allocation14 + $0x204] sm:$0xf] }
 0x1e2   :  { %v4906_v46 = vor.u32 %v5490_v59, %v4905_v45  ;;  %v4747_v45 = vld [vmem:[#allocation14 + $0x110] sm:$0xf0]  ;;  %v5496_v59 = vld [vmem:[#allocation14 + $0x284] sm:$0xf] }
 0x1e3   :  { %3198 = vmatpush.bf16.msrb.mxu0 %v4618_v47  ;;  %v5420_v47 = vld [vmem:[#allocation14 + $0x24] sm:$0xf] }
 0x1e4   :  { %3256 = vmatpush.bf16.msra.mxu1 %v4862_v34  ;;  %v4638_v49 = vor.u32 %v5420_v47, %v4635_v48  ;;  %v5500_v34 = vld [vmem:[#allocation14 + $0x2a4] sm:$0xf]  ;;  %v4939_v48 = vld [vmem:[#allocation14 + $0x290] sm:$0xf0] }
 0x1e5   :  { %v2208_v43 = vpop.f32.mrf.mxu0  ;;  %3221 = vmatpush.bf16.msrb.mxu2 %v4922_v36  ;;  %v4958_v36 = vor.u32 %v5500_v34, %v4955_v51  ;;  %v5540_v26 = vld [vmem:[#allocation14 + $0x3e4] sm:$0xf]  ;;  %v1550_v34 = vperm.slane %v5943_v56, 1  ;;  %v4722_v51 = vor.u32 %v5443_v29, %v4721_v28 }
 0x1e6   :  { %v4843_v43 = vld [vmem:[#allocation14 + $0x1d0] sm:$0xf0] }
 0x1e7   :  { %3243 = vmatpush.bf16.msra.mxu0 %v4734_v52  ;;  %v4846_v44 = vor.u32 %v5472_v38, %v4843_v43  ;;  %v4830_v52 = vor.u32 %v5468_v20, %v4827_v50  ;;  %v5530_v38 = vld [vmem:[#allocation14 + $0x38c] sm:$0xf0]  ;;  %v4942_v20 = vor.u32 %v5496_v59, %v4939_v48  ;;  %v5049_v50 = vld [vmem:[#allocation14 + $0x360] sm:$0xf]  ;;  %v4689_v48 = vld [vmem:[#allocation14 + $0x88] sm:$0xf] }
 0x1e8   :  { %v5066_v43 = vor.u32 %v5530_v38, %v5065_v37  ;;  %v5439_v37 = vld [vmem:[#allocation14 + $0xb4] sm:$0xf0]  ;;  %v5536_v38 = vld [vmem:[#allocation14 + $0x3c4] sm:$0xf] }
 0x1e9   :  { %3257 = vmatpush.bf16.msra.mxu1 %v4846_v44  ;;  %3222 = vmatpush.bf16.msrb.mxu2 %v4906_v46  ;;  %v5448_v44 = vld [vmem:[#allocation14 + $0x104] sm:$0xf] }
 0x1ea   :  { %v4750_v47 = vor.u32 %v5448_v44, %v4747_v45 }
 0x1eb   :  { %3244 = vmatpush.bf16.msra.mxu0 %v4718_v1 }
 0x1ed   :  { %v5931_v61 = vpop.f32.mrf.mxu1  ;;  %v5933_v62 = vpop.f32.mrf.mxu0  ;;  %3258 = vmatpush.bf16.msra.mxu1 %v4830_v52  ;;  %3223 = vmatpush.bf16.msrb.mxu2 %v4890_v55  ;;  %v5526_v52 = vld [vmem:[#allocation14 + $0x36c] sm:$0xf0]  ;;  %v4923_v55 = vld [vmem:[#allocation14 + $0x270] sm:$0xf0] }
 0x1ee   :  { %v5050_v14 = vor.u32 %v5526_v52, %v5049_v50  ;;  %v4926_v57 = vor.u32 %v5492_v53, %v4923_v55  ;;  %v2259_v45 = vadd.f32 %v5933_v62, %v1550_v34  ;;  %v5532_v50 = vld [vmem:[#allocation14 + $0x3a4] sm:$0xf]  ;;  %v5083_v52 = vld [vmem:[#allocation14 + $0x3b0] sm:$0xf0]  ;;  %v5431_v62 = vld [vmem:[#allocation14 + $0x74] sm:$0xf0] }
 0x1ef   :  { %3245 = vmatpush.bf16.msra.mxu0 %v4702_v11  ;;  %v5460_v11 = vld [vmem:[#allocation14 + $0x164] sm:$0xf] }
 0x1f0   :  { %v4798_v13 = vor.u32 %v5460_v11, %v4795_v12  ;;  %v5518_v11 = vld [vmem:[#allocation14 + $0x32c] sm:$0xf0] }
 0x1f1   :  { %3259 = vmatpush.bf16.msra.mxu1 %v4814_v4  ;;  %3224 = vmatpush.bf16.msrb.mxu2 %v4874_v9  ;;  %v5488_v4 = vld [vmem:[#allocation14 + $0x244] sm:$0xf]  ;;  %v5018_v40 = vor.u32 %v5518_v11, %v5017_v10  ;;  %v4657_v10 = vld [vmem:[#allocation14 + $0x48] sm:$0xf]  ;;  %v5427_v11 = vld [vmem:[#allocation14 + $0x54] sm:$0xf0] }
 0x1f2   :  { %v4910_v8 = vor.u32 %v5488_v4, %v4907_v6  ;;  %v5067_v4 = vld [vmem:[#allocation14 + $0x390] sm:$0xf0] }
 0x1f3   :  { %3246 = vmatpush.bf16.msra.mxu0 %v4686_v22  ;;  %v5456_v22 = vld [vmem:[#allocation14 + $0x144] sm:$0xf] }
 0x1f4   :  { %v4782_v25 = vor.u32 %v5456_v22, %v4779_v23 }
 0x1f5   :  { %v2221_v0 = vpop.f32.mrf.mxu1  ;;  %v2260_v19 = vpop.f32.mrf.mxu0  ;;  %3260 = vmatpush.bf16.msra.mxu1 %v4798_v13  ;;  %3269 = vmatpush.bf16.msra.mxu2 %v4990_v17  ;;  %v4891_v13 = vld [vmem:[#allocation14 + $0x230] sm:$0xf0]  ;;  %v5447_v17 = vld [vmem:[#allocation14 + $0xf4] sm:$0xf0] }
 0x1f6   :  { %v5538_v0 = vld [vmem:[#allocation14 + $0x3cc] sm:$0xf0] }
 0x1f7   :  { %3247 = vmatpush.bf16.msra.mxu0 %v4670_v31  ;;  %v5098_v21 = vor.u32 %v5538_v0, %v5097_v18  ;;  %v5452_v31 = vld [vmem:[#allocation14 + $0x124] sm:$0xf] }
 0x1f8   :  { %v4766_v35 = vor.u32 %v5452_v31, %v4763_v33  ;;  %v5115_v31 = vld [vmem:[#allocation14 + $0x3f0] sm:$0xf0] }
 0x1f9   :  { %3231 = vmatpush.bf16.msrb.mxu3 %v5098_v21  ;;  %3261 = vmatpush.bf16.msra.mxu1 %v4782_v25  ;;  %v5001_v21 = vld [vmem:[#allocation14 + $0x300] sm:$0xf]  ;;  %v4875_v25 = vld [vmem:[#allocation14 + $0x210] sm:$0xf0]  ;;  %v5118_v33 = vor.u32 %v5540_v26, %v5115_v31  ;;  %v5419_v31 = vld [vmem:[#allocation14 + $0x14] sm:$0xf0] }
 0x1fa   :  { %3270 = vmatpush.bf16.msra.mxu2 %v4974_v27 }
 0x1fb   :  { %3248 = vmatpush.bf16.msra.mxu0 %v4654_v42 }
 0x1fd   :  { %v5935_v39 = vpop.f32.mrf.mxu1  ;;  %v5937_v41 = vpop.f32.mrf.mxu0  ;;  %3232 = vmatpush.bf16.msrb.mxu3 %v5082_v30  ;;  %3262 = vmatpush.bf16.msra.mxu1 %v4766_v35  ;;  %v4878_v30 = vor.u32 %v5480_v5, %v4875_v25  ;;  %v5035_v5 = vld [vmem:[#allocation14 + $0x350] sm:$0xf0] }
 0x1fe   :  { %3271 = vmatpush.bf16.msra.mxu2 %v4958_v36  ;;  %v4705_v36 = vld [vmem:[#allocation14 + $0xa8] sm:$0xf] }
 0x1ff   :  { %3249 = vmatpush.bf16.msra.mxu0 %v4638_v49  ;;  %v1549_v49 = vperm.slane %v5943_v56, 0 }
 0x201   :  { %3233 = vmatpush.bf16.msrb.mxu3 %v5066_v43  ;;  %3263 = vmatpush.bf16.msra.mxu1 %v4750_v47  ;;  %v2207_v60 = vadd.f32 %v5929_v32, %v1549_v49  ;;  %v5484_v32 = vld [vmem:[#allocation14 + $0x224] sm:$0xf]  ;;  %v5099_v43 = vld [vmem:[#allocation14 + $0x3d0] sm:$0xf0]  ;;  %v4706_v47 = vor.u32 %v5439_v37, %v4705_v36  ;;  %v5435_v49 = vld [vmem:[#allocation14 + $0x94] sm:$0xf0] }
 0x202   :  { %3272 = vmatpush.bf16.msra.mxu2 %v4942_v20  ;;  %v4894_v18 = vor.u32 %v5484_v32, %v4891_v13  ;;  %v5102_v44 = vor.u32 %v5536_v38, %v5099_v43  ;;  %v2272_v20 = vadd.f32 %v5935_v39, %v2259_v45  ;;  %v5524_v32 = vld [vmem:[#allocation14 + $0x364] sm:$0xf]  ;;  %v5051_v13 = vld [vmem:[#allocation14 + $0x370] sm:$0xf0]  ;;  %v5445_v37 = vld [vmem:[#allocation14 + $0xec] sm:$0xf] }
 0x203   :  { %3250 = vmatpush.bf16.msra.mxu0 %v4622_v2  ;;  %v2220_v7 = vadd.f32 %v5931_v61, %v2207_v60  ;;  %v5514_v61 = vld [vmem:[#allocation14 + $0x30c] sm:$0xf0]  ;;  %v4673_v60 = vld [vmem:[#allocation14 + $0x68] sm:$0xf]  ;;  %v5019_v36 = vld [vmem:[#allocation14 + $0x330] sm:$0xf0] }
 0x204   :  { %v5939_v54 = vpop.f32.mrf.mxu2  ;;  %v5002_v23 = vor.u32 %v5514_v61, %v5001_v21  ;;  %v5423_v21 = vld [vmem:[#allocation14 + $0x34] sm:$0xf0]  ;;  %v4833_v61 = vld [vmem:[#allocation14 + $0x1a8] sm:$0xf]  ;;  %v4739_v38 = vld [vmem:[#allocation14 + $0xf8] sm:$0xf0] }
 0x205   :  { %v2273_v63 = vpop.f32.mrf.mxu1  ;;  %v2312_v1 = vpop.f32.mrf.mxu0  ;;  %3234 = vmatpush.bf16.msrb.mxu3 %v5050_v14  ;;  %v2233_v9 = vadd.f32 %v5939_v54, %v2220_v7  ;;  %v4738_v54 = vor.u32 %v5447_v17, %v4737_v16  ;;  %v5086_v14 = vor.u32 %v5532_v50, %v5083_v52  ;;  %v1551_v16 = vperm.slane %v5943_v56, 2  ;;  %v4993_v50 = vld [vmem:[#allocation14 + $0x2e8] sm:$0xf]  ;;  %v5512_v52 = vld [vmem:[#allocation14 + $0x304] sm:$0xf] }
 0x206   :  { %v5033_v63 = vld [vmem:[#allocation14 + $0x340] sm:$0xf]  ;;  %v5522_v1 = vld [vmem:[#allocation14 + $0x34c] sm:$0xf0]  ;;  %3273 = vmatpush.bf16.msra.mxu2 %v4926_v57  ;;  %v4690_v57 = vor.u32 %v5435_v49, %v4689_v48  ;;  %v5463_v48 = vld [vmem:[#allocation14 + $0x174] sm:$0xf0] }
 0x207   :  { %v5034_v3 = vor.u32 %v5522_v1, %v5033_v63  ;;  %v4865_v63 = vld [vmem:[#allocation14 + $0x1e8] sm:$0xf]  ;;  %v2311_v26 = vadd.f32 %v5937_v41, %v1551_v16  ;;  %v5503_v16 = vld [vmem:[#allocation14 + $0x2b4] sm:$0xf0] }
 0x209   :  { %3235 = vmatpush.bf16.msrb.mxu3 %v5034_v3  ;;  %v5528_v3 = vld [vmem:[#allocation14 + $0x384] sm:$0xf] }
 0x20a   :  { %3274 = vmatpush.bf16.msra.mxu2 %v4910_v8  ;;  %v5070_v6 = vor.u32 %v5528_v3, %v5067_v4  ;;  %v4674_v8 = vor.u32 %v5431_v62, %v4673_v60  ;;  %v4785_v3 = vld [vmem:[#allocation14 + $0x148] sm:$0xf]  ;;  %v5459_v4 = vld [vmem:[#allocation14 + $0x154] sm:$0xf0] }
 0x20c   :  { %v2234_v19 = vpop.f32.mrf.mxu2 }
 0x20d   :  { %3236 = vmatpush.bf16.msrb.mxu3 %v5018_v40  ;;  %v5475_v40 = vld [vmem:[#allocation14 + $0x1d4] sm:$0xf0] }
 0x20e   :  { %v5941_v24 = vpop.f32.mrf.mxu1  ;;  %3275 = vmatpush.bf16.msra.mxu2 %v4894_v18  ;;  %v4658_v18 = vor.u32 %v5427_v11, %v4657_v10  ;;  %v4786_v10 = vor.u32 %v5459_v4, %v4785_v3  ;;  %v4819_v3 = vld [vmem:[#allocation14 + $0x198] sm:$0xf0] }
 0x20f   :  { %v2324_v34 = vadd.f32 %v5941_v24, %v2311_v26  ;;  %v4742_v24 = vor.u32 %v5445_v37, %v4739_v38  ;;  %v4675_v26 = vld [vmem:[#allocation14 + $0x78] sm:$0xf0]  ;;  %v5473_v38 = vld [vmem:[#allocation14 + $0x1cc] sm:$0xf] }
 0x210   :  { %v4659_v37 = vld [vmem:[#allocation14 + $0x58] sm:$0xf0] }
 0x211   :  { %3237 = vmatpush.bf16.msrb.mxu3 %v5002_v23  ;;  %v5520_v23 = vld [vmem:[#allocation14 + $0x344] sm:$0xf] }
 0x212   :  { %3276 = vmatpush.bf16.msra.mxu2 %v4878_v30  ;;  %v5038_v25 = vor.u32 %v5520_v23, %v5035_v5  ;;  %v4625_v30 = vld [vmem:[#allocation14 + $0x8] sm:$0xf]  ;;  %v5499_v5 = vld [vmem:[#allocation14 + $0x294] sm:$0xf0] }
 0x213   :  { %v4626_v45 = vor.u32 %v5419_v31, %v4625_v30  ;;  %v4945_v23 = vld [vmem:[#allocation14 + $0x288] sm:$0xf] }
 0x214   :  { %v4946_v31 = vor.u32 %v5499_v5, %v4945_v23  ;;  %v5505_v23 = vld [vmem:[#allocation14 + $0x2cc] sm:$0xf]  ;;  %v4979_v5 = vld [vmem:[#allocation14 + $0x2d8] sm:$0xf0] }
 0x215   :  { %v5945_v42 = vpop.f32.mrf.mxu2  ;;  %3282 = vmatpush.bf16.msra.mxu3 %v5118_v33  ;;  %v4817_v33 = vld [vmem:[#allocation14 + $0x188] sm:$0xf] }
 0x216   :  { %v2325_v46 = vpop.f32.mrf.mxu1  ;;  %v2285_v53 = vadd.f32 %v5945_v42, %v2272_v20  ;;  %v4849_v42 = vld [vmem:[#allocation14 + $0x1c8] sm:$0xf] }
 0x219   :  { %3283 = vmatpush.bf16.msra.mxu3 %v5102_v44 }
 0x21d   :  { %v5948_v58 = vpop.f32.mrf.mxu0  ;;  %v2286_v2 = vpop.f32.mrf.mxu2  ;;  %3284 = vmatpush.bf16.msra.mxu3 %v5086_v14  ;;  %v5003_v14 = vld [vmem:[#allocation14 + $0x310] sm:$0xf0] }
 0x21e   :  { %v5479_v2 = vld [vmem:[#allocation14 + $0x1f4] sm:$0xf0]  ;;  %v5006_v60 = vor.u32 %v5512_v52, %v5003_v14  ;;  %v4835_v52 = vld [vmem:[#allocation14 + $0x1b8] sm:$0xf0] }
 0x221   :  { %3285 = vmatpush.bf16.msra.mxu3 %v5070_v6  ;;  %v4977_v6 = vld [vmem:[#allocation14 + $0x2c8] sm:$0xf] }
 0x223   :  { %v2245_v12 = vpop.f32.mrf.mxu3 }
 0x224   :  { %v2246_v15 = vadd.f32 %v2245_v12, %v2233_v9  ;;  %v4866_v9 = vor.u32 %v5479_v2, %v4865_v63 }
 0x225   :  { %v2364_v0 = vpop.f32.mrf.mxu0  ;;  %v5953_v22 = vpop.f32.mrf.mxu2 }
 0x226   :  { %v2405_v19 = vmax.f32 %v2246_v15, 0.0  ;;  %v5054_v15 = vor.u32 %v5524_v32, %v5051_v13  ;;  %v4850_v0 = vor.u32 %v5475_v40, %v4849_v42  ;;  %v2337_v44 = vadd.f32 %v5953_v22, %v2324_v34  ;;  %v4769_v32 = vld [vmem:[#allocation14 + $0x128] sm:$0xf]  ;;  %v5455_v13 = vld [vmem:[#allocation14 + $0x134] sm:$0xf0] }
 0x227   :  { %v4929_v34 = vld [vmem:[#allocation14 + $0x268] sm:$0xf] }
 0x228   :  { %v5955_v27 = vpack.c.bf16 %v2405_v19, %v2405_v19  ;;  %v4641_v19 = vld [vmem:[#allocation14 + $0x28] sm:$0xf]  ;;  %3286 = vmatpush.bf16.msra.mxu3 %v5054_v15 }
 0x229   :  { %v4642_v28 = vor.u32 %v5423_v21, %v4641_v19  ;;  %v4961_v15 = vld [vmem:[#allocation14 + $0x2a8] sm:$0xf] }
 0x22a   :  { %3199 = vmatmul.bf16.vlgmr.msrb.gmra.mxu0 %v5955_v27  ;;  %v4962_v19 = vor.u32 %v5503_v16, %v4961_v15 }
 0x22b   :  { %3295 = vmatpush.bf16.msrb.mxu0 %v4738_v54  ;;  %v2247_v35 = vpop.f32.mrf.mxu3  ;;  %v5471_v54 = vld [vmem:[#allocation14 + $0x1b4] sm:$0xf0] }
 0x22c   :  { %v4834_v29 = vor.u32 %v5471_v54, %v4833_v61  ;;  %v5467_v35 = vld [vmem:[#allocation14 + $0x194] sm:$0xf0]  ;;  %3287 = vmatpush.bf16.msra.mxu3 %v5038_v25  ;;  %v4753_v61 = vld [vmem:[#allocation14 + $0x108] sm:$0xf]  ;;  %v5429_v25 = vld [vmem:[#allocation14 + $0x6c] sm:$0xf] }
 0x22d   :  { %v2338_v46 = vpop.f32.mrf.mxu2  ;;  %v5451_v54 = vld [vmem:[#allocation14 + $0x114] sm:$0xf0] }
 0x22e   :  { %v5960_v59 = vpop.f32.mrf.mxu1  ;;  %v4818_v46 = vor.u32 %v5467_v35, %v4817_v33  ;;  %v4754_v30 = vor.u32 %v5451_v54, %v4753_v61  ;;  %v4678_v33 = vor.u32 %v5429_v25, %v4675_v26  ;;  %v5457_v61 = vld [vmem:[#allocation14 + $0x14c] sm:$0xf]  ;;  %v4787_v54 = vld [vmem:[#allocation14 + $0x158] sm:$0xf0] }
 0x22f   :  { %3296 = vmatpush.bf16.msrb.mxu0 %v4722_v51  ;;  %v5516_v51 = vld [vmem:[#allocation14 + $0x324] sm:$0xf] }
 0x230   :  { %v5022_v43 = vor.u32 %v5516_v51, %v5019_v36  ;;  %v5495_v51 = vld [vmem:[#allocation14 + $0x274] sm:$0xf0]  ;;  %v5425_v36 = vld [vmem:[#allocation14 + $0x4c] sm:$0xf] }
 0x232   :  { %3288 = vmatpush.bf16.msra.mxu3 %v5022_v43  ;;  %v4851_v43 = vld [vmem:[#allocation14 + $0x1d8] sm:$0xf0] }
 0x233   :  { %3297 = vmatpush.bf16.msrb.mxu0 %v4706_v47  ;;  %v2297_v55 = vpop.f32.mrf.mxu3  ;;  %v4801_v47 = vld [vmem:[#allocation14 + $0x168] sm:$0xf] }
 0x234   :  { %v2298_v1 = vadd.f32 %v2297_v55, %v2285_v53  ;;  %v5511_v53 = vld [vmem:[#allocation14 + $0x2f4] sm:$0xf0]  ;;  %v5441_v55 = vld [vmem:[#allocation14 + $0xcc] sm:$0xf]  ;;  %v4802_v62 = vor.u32 %v5463_v48, %v4801_v47  ;;  %v4854_v47 = vor.u32 %v5473_v38, %v4851_v43  ;;  %v5073_v38 = vld [vmem:[#allocation14 + $0x388] sm:$0xf] }
 0x235   :  { %v5491_v48 = vld [vmem:[#allocation14 + $0x254] sm:$0xf0] }
 0x236   :  { %v2406_v39 = vmax.f32 %v2298_v1, 0.0  ;;  %v2377_v7 = vpop.f32.mrf.mxu1  ;;  %v4994_v1 = vor.u32 %v5511_v53, %v4993_v50  ;;  %3289 = vmatpush.bf16.msra.mxu3 %v5006_v60  ;;  %v5469_v50 = vld [vmem:[#allocation14 + $0x1ac] sm:$0xf]  ;;  %v5531_v43 = vld [vmem:[#allocation14 + $0x394] sm:$0xf0] }
 0x237   :  { %3298 = vmatpush.bf16.msrb.mxu0 %v4690_v57  ;;  %v4723_v57 = vld [vmem:[#allocation14 + $0xd8] sm:$0xf0]  ;;  %v5437_v7 = vld [vmem:[#allocation14 + $0xac] sm:$0xf]  ;;  %v4838_v60 = vor.u32 %v5469_v50, %v4835_v52  ;;  %v5527_v50 = vld [vmem:[#allocation14 + $0x374] sm:$0xf0] }
 0x238   :  { %v5964_v12 = vpack.c.bf16 %v2406_v39, %v2406_v39  ;;  %v4726_v2 = vor.u32 %v5441_v55, %v4723_v57  ;;  %v5507_v39 = vld [vmem:[#allocation14 + $0x2d4] sm:$0xf0]  ;;  %v4897_v55 = vld [vmem:[#allocation14 + $0x228] sm:$0xf]  ;;  %v5493_v52 = vld [vmem:[#allocation14 + $0x26c] sm:$0xf] }
 0x239   :  { %v4978_v42 = vor.u32 %v5507_v39, %v4977_v6 }
 0x23a   :  { %3212 = vmatmul.bf16.vlgmr.msrb.gmra.mxu1 %v5964_v12  ;;  %3251 = vmatmul.bf16.vlgmr.msra.gmra.mxu0 %v5955_v27 }
 0x23b   :  { %3299 = vmatpush.bf16.msrb.mxu0 %v4674_v8  ;;  %3308 = vmatpush.bf16.msrb.mxu1 %v4866_v9  ;;  %v2299_v17 = vpop.f32.mrf.mxu3  ;;  %v4707_v8 = vld [vmem:[#allocation14 + $0xb8] sm:$0xf0] }
 0x23c   :  { %v4710_v40 = vor.u32 %v5437_v7, %v4707_v8  ;;  %v5433_v17 = vld [vmem:[#allocation14 + $0x8c] sm:$0xf]  ;;  %v4881_v7 = vld [vmem:[#allocation14 + $0x208] sm:$0xf]  ;;  %v5483_v8 = vld [vmem:[#allocation14 + $0x214] sm:$0xf0] }
 0x23f   :  { %3300 = vmatpush.bf16.msrb.mxu0 %v4658_v18  ;;  %3309 = vmatpush.bf16.msrb.mxu1 %v4850_v0  ;;  %v4691_v18 = vld [vmem:[#allocation14 + $0x98] sm:$0xf0]  ;;  %v4770_v0 = vor.u32 %v5455_v13, %v4769_v32  ;;  %v5509_v32 = vld [vmem:[#allocation14 + $0x2ec] sm:$0xf] }
 0x240   :  { %v4694_v21 = vor.u32 %v5433_v17, %v4691_v18  ;;  %v4995_v13 = vld [vmem:[#allocation14 + $0x2f8] sm:$0xf0] }
 0x243   :  { %3301 = vmatpush.bf16.msrb.mxu0 %v4642_v28  ;;  %3310 = vmatpush.bf16.msrb.mxu1 %v4834_v29  ;;  %v2349_v41 = vpop.f32.mrf.mxu3  ;;  %v5477_v28 = vld [vmem:[#allocation14 + $0x1ec] sm:$0xf]  ;;  %v4867_v29 = vld [vmem:[#allocation14 + $0x1f8] sm:$0xf0] }
 0x244   :  { %v2350_v20 = vadd.f32 %v2349_v41, %v2337_v44  ;;  %v4870_v35 = vor.u32 %v5477_v28, %v4867_v29  ;;  %v1552_v44 = vperm.slane %v5943_v56, 3  ;;  %v4930_v41 = vor.u32 %v5495_v51, %v4929_v34  ;;  %v4771_v34 = vld [vmem:[#allocation14 + $0x138] sm:$0xf0] }
 0x245   :  { %v5972_v49 = vpop.f32.mrf.mxu2  ;;  %v4790_v28 = vor.u32 %v5457_v61, %v4787_v54  ;;  %v4982_v29 = vor.u32 %v5505_v23, %v4979_v5  ;;  %v4963_v51 = vld [vmem:[#allocation14 + $0x2b8] sm:$0xf0]  ;;  %v5525_v61 = vld [vmem:[#allocation14 + $0x36c] sm:$0xf] }
 0x246   :  { %v2407_v22 = vmax.f32 %v2350_v20, 0.0  ;;  %v5421_v20 = vld [vmem:[#allocation14 + $0x2c] sm:$0xf]  ;;  %v2363_v14 = vadd.f32 %v5948_v58, %v1552_v44  ;;  %v5059_v54 = vld [vmem:[#allocation14 + $0x378] sm:$0xf0] }
 0x247   :  { %3302 = vmatpush.bf16.msrb.mxu0 %v4626_v45  ;;  %3311 = vmatpush.bf16.msrb.mxu1 %v4818_v46  ;;  %v4662_v45 = vor.u32 %v5425_v36, %v4659_v37  ;;  %v4913_v46 = vld [vmem:[#allocation14 + $0x248] sm:$0xf]  ;;  %v5449_v44 = vld [vmem:[#allocation14 + $0x10c] sm:$0xf]  ;;  %v5062_v23 = vor.u32 %v5525_v61, %v5059_v54 }
 0x248   :  { %v5974_v63 = vpack.c.bf16 %v2407_v22, %v2407_v22  ;;  %v4914_v56 = vor.u32 %v5491_v48, %v4913_v46  ;;  %v2376_v57 = vadd.f32 %v5960_v59, %v2363_v14  ;;  %v5487_v22 = vld [vmem:[#allocation14 + $0x234] sm:$0xf0]  ;;  %v5121_v59 = vld [vmem:[#allocation14 + $0x3e8] sm:$0xf]  ;;  %v4947_v46 = vld [vmem:[#allocation14 + $0x298] sm:$0xf0] }
 0x249   :  { %v4898_v58 = vor.u32 %v5487_v22, %v4897_v55  ;;  %v4931_v14 = vld [vmem:[#allocation14 + $0x278] sm:$0xf0]  ;;  %v5041_v55 = vld [vmem:[#allocation14 + $0x348] sm:$0xf]  ;;  %v5521_v5 = vld [vmem:[#allocation14 + $0x34c] sm:$0xf] }
 0x24a   :  { %3225 = vmatmul.bf16.vlgmr.msrb.gmra.mxu2 %v5974_v63  ;;  %3264 = vmatmul.bf16.vlgmr.msra.gmra.mxu1 %v5964_v12  ;;  %v2389_v4 = vadd.f32 %v5972_v49, %v2376_v57  ;;  %v4882_v49 = vor.u32 %v5483_v8, %v4881_v7  ;;  %v5523_v57 = vld [vmem:[#allocation14 + $0x354] sm:$0xf0]  ;;  %v4915_v22 = vld [vmem:[#allocation14 + $0x258] sm:$0xf0]  ;;  %v5009_v7 = vld [vmem:[#allocation14 + $0x308] sm:$0xf] }
 0x24b   :  { %3347 = vmatpush.bf16.msra.mxu0 %v4742_v24  ;;  %3312 = vmatpush.bf16.msrb.mxu1 %v4802_v62  ;;  %v2351_v9 = vpop.f32.mrf.mxu3  ;;  %v4643_v24 = vld [vmem:[#allocation14 + $0x38] sm:$0xf0]  ;;  %v5417_v62 = vld [vmem:[#allocation14 + $0xc] sm:$0xf]  ;;  %v5515_v8 = vld [vmem:[#allocation14 + $0x314] sm:$0xf0] }
 0x24c   :  { %3303 = vmatmul.bf16.vlgmr.msrb.gmra.mxu0 %v5955_v27  ;;  %3321 = vmatpush.bf16.msrb.mxu2 %v4994_v1  ;;  %v4646_v53 = vor.u32 %v5421_v20, %v4643_v24  ;;  %v4627_v1 = vld [vmem:[#allocation14 + $0x18] sm:$0xf0]  ;;  %v5057_v24 = vld [vmem:[#allocation14 + $0x368] sm:$0xf] }
 0x24d   :  { %v2390_v11 = vpop.f32.mrf.mxu2  ;;  %v4630_v39 = vor.u32 %v5417_v62, %v4627_v1  ;;  %v5042_v62 = vor.u32 %v5523_v57, %v5041_v55 }
 0x24e   :  { %v5543_v11 = vld [vmem:[#allocation14 + $0x3f4] sm:$0xf0] }
 0x24f   :  { %3348 = vmatpush.bf16.msra.mxu0 %v4726_v2  ;;  %3313 = vmatpush.bf16.msrb.mxu1 %v4786_v10  ;;  %v5465_v2 = vld [vmem:[#allocation14 + $0x18c] sm:$0xf]  ;;  %v5122_v16 = vor.u32 %v5543_v11, %v5121_v59  ;;  %v5123_v11 = vld [vmem:[#allocation14 + $0x3f8] sm:$0xf0] }
 0x250   :  { %3322 = vmatpush.bf16.msrb.mxu2 %v4978_v42  ;;  %v4822_v10 = vor.u32 %v5465_v2, %v4819_v3  ;;  %v5461_v42 = vld [vmem:[#allocation14 + $0x16c] sm:$0xf]  ;;  %v5025_v2 = vld [vmem:[#allocation14 + $0x328] sm:$0xf]  ;;  %v5519_v3 = vld [vmem:[#allocation14 + $0x334] sm:$0xf0] }
 0x251   :  { %v5541_v59 = vld [vmem:[#allocation14 + $0x3ec] sm:$0xf] }
 0x253   :  { %3349 = vmatpush.bf16.msra.mxu0 %v4710_v40  ;;  %3314 = vmatpush.bf16.msrb.mxu1 %v4770_v0  ;;  %v4803_v40 = vld [vmem:[#allocation14 + $0x178] sm:$0xf0]  ;;  %v4998_v0 = vor.u32 %v5509_v32, %v4995_v13  ;;  %v5537_v32 = vld [vmem:[#allocation14 + $0x3cc] sm:$0xf] }
 0x254   :  { %3323 = vmatpush.bf16.msrb.mxu2 %v4962_v19  ;;  %v4806_v18 = vor.u32 %v5461_v42, %v4803_v40  ;;  %v5105_v19 = vld [vmem:[#allocation14 + $0x3c8] sm:$0xf]  ;;  %v5010_v42 = vor.u32 %v5515_v8, %v5009_v7  ;;  %v5126_v40 = vor.u32 %v5541_v59, %v5123_v11  ;;  %v5107_v13 = vld [vmem:[#allocation14 + $0x3d8] sm:$0xf0] }
 0x257   :  { %3350 = vmatpush.bf16.msra.mxu0 %v4694_v21  ;;  %3315 = vmatpush.bf16.msrb.mxu1 %v4754_v30  ;;  %v5539_v21 = vld [vmem:[#allocation14 + $0x3d4] sm:$0xf0]  ;;  %v5089_v30 = vld [vmem:[#allocation14 + $0x3a8] sm:$0xf] }
 0x258   :  { %3324 = vmatpush.bf16.msrb.mxu2 %v4946_v31  ;;  %v5106_v26 = vor.u32 %v5539_v21, %v5105_v19  ;;  %v5535_v31 = vld [vmem:[#allocation14 + $0x3b4] sm:$0xf0]  ;;  %v5075_v19 = vld [vmem:[#allocation14 + $0x398] sm:$0xf0] }
 0x259   :  { %v5090_v36 = vor.u32 %v5535_v31, %v5089_v30  ;;  %v5513_v31 = vld [vmem:[#allocation14 + $0x30c] sm:$0xf] }
 0x25a   :  { %3277 = vmatmul.bf16.vlgmr.msra.gmra.mxu2 %v5974_v63  ;;  %3316 = vmatmul.bf16.vlgmr.msrb.gmra.mxu1 %v5964_v12 }
 0x25b   :  { %3351 = vmatpush.bf16.msra.mxu0 %v4678_v33  ;;  %3360 = vmatpush.bf16.msra.mxu1 %v4870_v35  ;;  %v5453_v33 = vld [vmem:[#allocation14 + $0x12c] sm:$0xf] }
 0x25c   :  { %3325 = vmatpush.bf16.msrb.mxu2 %v4930_v41  ;;  %v5501_v35 = vld [vmem:[#allocation14 + $0x2ac] sm:$0xf]  ;;  %v4755_v41 = vld [vmem:[#allocation14 + $0x118] sm:$0xf0] }
 0x25d   :  { %v4966_v37 = vor.u32 %v5501_v35, %v4963_v51  ;;  %v4758_v48 = vor.u32 %v5449_v44, %v4755_v41  ;;  %v2541_v35 = vld [vmem:[%s6009_s8] sm:$0xf] }
 0x25f   :  { %3352 = vmatpush.bf16.msra.mxu0 %v4662_v45  ;;  %3361 = vmatpush.bf16.msra.mxu1 %v4854_v47  ;;  %v5497_v45 = vld [vmem:[#allocation14 + $0x28c] sm:$0xf]  ;;  %v5074_v47 = vor.u32 %v5531_v43, %v5073_v38 }
 0x260   :  { %3326 = vmatpush.bf16.msrb.mxu2 %v4914_v56  ;;  %v4950_v20 = vor.u32 %v5497_v45, %v4947_v46  ;;  %v5058_v56 = vor.u32 %v5527_v50, %v5057_v24  ;;  %v2544_v45 = vperm.slane %v2541_v35, 1 }
 0x263   :  { %v2401_v6 = vpop.f32.mrf.mxu3  ;;  %3353 = vmatpush.bf16.msra.mxu0 %v4646_v53  ;;  %3362 = vmatpush.bf16.msra.mxu1 %v4838_v60  ;;  %v4934_v53 = vor.u32 %v5493_v52, %v4931_v14  ;;  %v5489_v60 = vld [vmem:[#allocation14 + $0x24c] sm:$0xf]  ;;  %v2545_v14 = vperm.slane %v2541_v35, 2 }
 0x264   :  { %v2402_v9 = vadd.f32 %v2401_v6, %v2389_v4  ;;  %3327 = vmatpush.bf16.msrb.mxu2 %v4898_v58  ;;  %v4918_v1 = vor.u32 %v5489_v60, %v4915_v22  ;;  %v5485_v4 = vld [vmem:[#allocation14 + $0x22c] sm:$0xf]  ;;  %v4899_v6 = vld [vmem:[#allocation14 + $0x238] sm:$0xf0]  ;;  %v5026_v58 = vor.u32 %v5519_v3, %v5025_v2 }
 0x266   :  { %v2408_v15 = vmax.f32 %v2402_v9, 0.0  ;;  %v5481_v9 = vld [vmem:[#allocation14 + $0x20c] sm:$0xf] }
 0x267   :  { %3354 = vmatpush.bf16.msra.mxu0 %v4630_v39  ;;  %3363 = vmatpush.bf16.msra.mxu1 %v4822_v10  ;;  %v4902_v39 = vor.u32 %v5485_v4, %v4899_v6  ;;  %v4883_v10 = vld [vmem:[#allocation14 + $0x218] sm:$0xf0] }
 0x268   :  { %v5985_v17 = vpack.c.bf16 %v2408_v15, %v2408_v15  ;;  %3328 = vmatpush.bf16.msrb.mxu2 %v4882_v49  ;;  %v5110_v15 = vor.u32 %v5537_v32, %v5107_v13  ;;  %v5533_v49 = vld [vmem:[#allocation14 + $0x3ac] sm:$0xf] }
 0x26a   :  { %3238 = vmatmul.bf16.vlgmr.msrb.gmra.mxu3 %v5985_v17  ;;  %3355 = vmatmul.bf16.vlgmr.msra.gmra.mxu0 %v5955_v27  ;;  %v4774_v27 = vor.u32 %v5453_v33, %v4771_v34 }
 0x26b   :  { %3334 = vmatpush.bf16.msrb.mxu3 %v5122_v16  ;;  %v2403_v25 = vpop.f32.mrf.mxu3  ;;  %3364 = vmatpush.bf16.msra.mxu1 %v4806_v18  ;;  %v5091_v16 = vld [vmem:[#allocation14 + $0x3b8] sm:$0xf0] }
 0x26c   :  { %3373 = vmatpush.bf16.msra.mxu2 %v4998_v0  ;;  %v5094_v18 = vor.u32 %v5533_v49, %v5091_v16  ;;  %v5529_v0 = vld [vmem:[#allocation14 + $0x38c] sm:$0xf]  ;;  %v5043_v25 = vld [vmem:[#allocation14 + $0x358] sm:$0xf0]  ;;  %v2546_v16 = vperm.slane %v2541_v35, 3 }
 0x26d   :  { %3329 = vmatmul.bf16.vlgmr.msrb.gmra.mxu2 %v5974_v63  ;;  %v5078_v21 = vor.u32 %v5529_v0, %v5075_v19 }
 0x26f   :  { %3335 = vmatpush.bf16.msrb.mxu3 %v5106_v26  ;;  %3365 = vmatpush.bf16.msra.mxu1 %v4790_v28  ;;  %v5046_v26 = vor.u32 %v5521_v5, %v5043_v25  ;;  %v5517_v28 = vld [vmem:[#allocation14 + $0x32c] sm:$0xf] }
 0x270   :  { %3374 = vmatpush.bf16.msra.mxu2 %v4982_v29  ;;  %v5027_v29 = vld [vmem:[#allocation14 + $0x338] sm:$0xf0] }
 0x271   :  { %v5030_v30 = vor.u32 %v5517_v28, %v5027_v29 }
 0x273   :  { %3336 = vmatpush.bf16.msrb.mxu3 %v5090_v36  ;;  %3366 = vmatpush.bf16.msra.mxu1 %v4774_v27  ;;  %v2543_v36 = vperm.slane %v2541_v35, 0 }
 0x274   :  { %3375 = vmatpush.bf16.msra.mxu2 %v4966_v37 }
 0x277   :  { %3337 = vmatpush.bf16.msrb.mxu3 %v5074_v47  ;;  %3367 = vmatpush.bf16.msra.mxu1 %v4758_v48 }
 0x278   :  { %3376 = vmatpush.bf16.msra.mxu2 %v4950_v20 }
 0x27a   :  { %3290 = vmatmul.bf16.vlgmr.msra.gmra.mxu3 %v5985_v17  ;;  %3368 = vmatmul.bf16.vlgmr.msra.gmra.mxu1 %v5964_v12  ;;  %v4886_v12 = vor.u32 %v5481_v9, %v4883_v10 }
 0x27b   :  { %3338 = vmatpush.bf16.msrb.mxu3 %v5058_v56 }
 0x27c   :  { %3377 = vmatpush.bf16.msra.mxu2 %v4934_v53 }
 0x27f   :  { %3339 = vmatpush.bf16.msrb.mxu3 %v5042_v62 }
 0x280   :  { %3378 = vmatpush.bf16.msra.mxu2 %v4918_v1 }
 0x283   :  { %3340 = vmatpush.bf16.msrb.mxu3 %v5026_v58 }
 0x284   :  { %3379 = vmatpush.bf16.msra.mxu2 %v4902_v39 }
 0x287   :  { %3341 = vmatpush.bf16.msrb.mxu3 %v5010_v42 }
 0x288   :  { %3380 = vmatpush.bf16.msra.mxu2 %v4886_v12 }
 0x28a   :  { %3342 = vmatmul.bf16.vlgmr.msrb.gmra.mxu3 %v5985_v17 }
 0x28b   :  { %3386 = vmatpush.bf16.msra.mxu3 %v5126_v40  ;;  %3381 = vmatmul.bf16.vlgmr.msra.gmra.mxu2 %v5974_v63  ;;  %v5011_v63 = vld [vmem:[#allocation14 + $0x318] sm:$0xf0] }
 0x28c   :  { %v5014_v33 = vor.u32 %v5513_v31, %v5011_v63 }
 0x28f   :  { %3387 = vmatpush.bf16.msra.mxu3 %v5110_v15 }
 0x293   :  { %3388 = vmatpush.bf16.msra.mxu3 %v5094_v18 }
 0x297   :  { %3389 = vmatpush.bf16.msra.mxu3 %v5078_v21  ;;  %v3409_v21 = vld [vmem:[#allocation15] sm:$0xf] }
 0x298   :  { %v3411_v5 = vperm.slane %v3409_v21, 0  ;;  %v3412_v29 = vperm.slane %v3409_v21, 1 }
 0x29b   :  { %3390 = vmatpush.bf16.msra.mxu3 %v5062_v23 }
 0x29f   :  { %3391 = vmatpush.bf16.msra.mxu3 %v5046_v26 }
 0x2a3   :  { %3392 = vmatpush.bf16.msra.mxu3 %v5030_v30 }
 0x2a7   :  { %3393 = vmatpush.bf16.msra.mxu3 %v5014_v33  ;;  %v3200_v34 = vpop.f32.mrf.mxu0  ;;  %v3413_v33 = vperm.slane %v3409_v21, 2 }
 0x2a8   :  { %v3201_v27 = vadd.f32 %v3200_v34, %v2543_v36 }
 0x2aa   :  { %3394 = vmatmul.bf16.vlgmr.msra.gmra.mxu3 %v5985_v17 }
 0x2af   :  { %v3202_v51 = vpop.f32.mrf.mxu0 }
 0x2b7   :  { %v3213_v37 = vpop.f32.mrf.mxu1  ;;  %v3252_v38 = vpop.f32.mrf.mxu0 }
 0x2b8   :  { %v3214_v43 = vadd.f32 %v3213_v37, %v3201_v27  ;;  %v3253_v46 = vadd.f32 %v3252_v38, %v2544_v45  ;;  %v3414_v27 = vperm.slane %v3409_v21, 3 }
 0x2bf   :  { %v3215_v44 = vpop.f32.mrf.mxu1  ;;  %v3254_v41 = vpop.f32.mrf.mxu0 }
 0x2c7   :  { %v3265_v47 = vpop.f32.mrf.mxu1 }
 0x2c8   :  { %v3266_v48 = vadd.f32 %v3265_v47, %v3253_v46  ;;  %v5555_v46 = vld [vmem:[#allocation3] ss:$0 sm:$0xff] }
 0x2c9   :  { %v3304_v20 = vpop.f32.mrf.mxu0 }
 0x2ca   :  { %v3305_v53 = vadd.f32 %v3304_v20, %v2545_v14 }
 0x2cd   :  { %v3226_v24 = vpop.f32.mrf.mxu2 }
 0x2ce   :  { %v3227_v17 = vadd.f32 %v3226_v24, %v3214_v43 }
 0x2cf   :  { %v3267_v50 = vpop.f32.mrf.mxu1 }
 0x2d1   :  { %v3306_v52 = vpop.f32.mrf.mxu0 }
 0x2d5   :  { %v3228_v56 = vpop.f32.mrf.mxu2 }
 0x2d7   :  { %v3317_v55 = vpop.f32.mrf.mxu1 }
 0x2d8   :  { %v3318_v57 = vadd.f32 %v3317_v55, %v3305_v53 }
 0x2dd   :  { %v3278_v60 = vpop.f32.mrf.mxu2 }
 0x2de   :  { %v3279_v22 = vadd.f32 %v3278_v60, %v3266_v48 }
 0x2df   :  { %v3319_v62 = vpop.f32.mrf.mxu1 }
 0x2e5   :  { %v3280_v2 = vpop.f32.mrf.mxu2 }
 0x2e7   :  { %v3356_v1 = vpop.f32.mrf.mxu0 }
 0x2e8   :  { %v3357_v18 = vadd.f32 %v3356_v1, %v2546_v16 }
 0x2ed   :  { %v3239_v3 = vpop.f32.mrf.mxu3 }
 0x2ee   :  { %v3240_v8 = vadd.f32 %v3239_v3, %v3227_v17 }
 0x2ef   :  { %v3358_v4 = vpop.f32.mrf.mxu0 }
 0x2f0   :  { %v3330_v6 = vpop.f32.mrf.mxu2  ;;  %v3399_v59 = vmax.f32 %v3240_v8, 0.0 }
 0x2f1   :  { %v3331_v0 = vadd.f32 %v3330_v6, %v3318_v57 }
 0x2f5   :  { %v3241_v58 = vpop.f32.mrf.mxu3 }
 0x2f7   :  { %v3369_v39 = vpop.f32.mrf.mxu1 }
 0x2f8   :  { %v3332_v7 = vpop.f32.mrf.mxu2  ;;  %v3370_v19 = vadd.f32 %v3369_v39, %v3357_v18 }
 0x2fd   :  { %v3291_v9 = vpop.f32.mrf.mxu3 }
 0x2fe   :  { %v3292_v10 = vadd.f32 %v3291_v9, %v3279_v22 }
 0x2ff   :  { %v3371_v42 = vpop.f32.mrf.mxu1 }
 0x300   :  { %v3400_v11 = vmax.f32 %v3292_v10, 0.0 }
 0x302   :  { %v3403_v12 = vpack.c.bf16 %v3400_v11, %v3399_v59 }
 0x304   :  { %v3405_v25 = vunpack.c.l.bf16 %v3403_v12  ;;  %v3406_v26 = vunpack.c.h.bf16 %v3403_v12 }
 0x305   :  { %v3293_v40 = vpop.f32.mrf.mxu3 }
 0x306   :  { %v3419_v34 = vmul.f32 %v3411_v5, %v3405_v25  ;;  %v3420_v51 = vmul.f32 %v3412_v29, %v3406_v26 }
 0x308   :  { %v3423_v43 = vadd.f32 %v3420_v51, %v3419_v34 }
 0x30d   :  { %v3343_v32 = vpop.f32.mrf.mxu3 }
 0x30e   :  { %v3382_v13 = vpop.f32.mrf.mxu2  ;;  %v3344_v61 = vadd.f32 %v3343_v32, %v3331_v0 }
 0x30f   :  { %v3383_v54 = vadd.f32 %v3382_v13, %v3370_v19 }
 0x310   :  { %v3401_v30 = vmax.f32 %v3344_v61, 0.0 }
 0x315   :  { %v3345_v15 = vpop.f32.mrf.mxu3 }
 0x316   :  { %v3384_v49 = vpop.f32.mrf.mxu2 }
 0x32d   :  { %v3395_v23 = vpop.f32.mrf.mxu3 }
 0x32e   :  { %v3396_v28 = vadd.f32 %v3395_v23, %v3383_v54 }
 0x330   :  { %v3402_v31 = vmax.f32 %v3396_v28, 0.0 }
 0x332   :  { %v3404_v63 = vpack.c.bf16 %v3402_v31, %v3401_v30 }
 0x334   :  { %v3407_v36 = vunpack.c.l.bf16 %v3404_v63  ;;  %v3408_v35 = vunpack.c.h.bf16 %v3404_v63 }
 0x335   :  { %v3397_v37 = vpop.f32.mrf.mxu3 }
 0x336   :  { %v3421_v38 = vmul.f32 %v3413_v33, %v3407_v36  ;;  %v3422_v44 = vmul.f32 %v3414_v27, %v3408_v35 }
 0x338   :  { %v3424_v41 = vadd.f32 %v3423_v43, %v3421_v38 }
 0x33a   :  { %v3425_v45 = vadd.f32 %v3424_v41, %v3422_v44 }
 0x33c   :  { %3426 = vadd.xlane.f32.xlu0 %v3425_v45 }
 0x3af   :  { %v3427_v47 = vpop.xlane.xlu0 %3426 }
 0x3b0   :  { %v3432_v48 = vadd.f32 %v5555_v46, %v3427_v47 }
 0x3b2   :  { %v5127_v20 = vmul.f32 -1.442695, %v3432_v48 }
 0x3b4   :  { %5556 = vpow2.f32 %v5127_v20 }
 0x3ba   :  { %v5557_v24 = vpop.eup %5556 }
 0x3bb   :  { %v3436_v17 = vadd.f32 1.0, %v5557_v24 }
 0x3bd   :  { %5558 = vrcp.f32 %v3436_v17  ;;  %v3448_v56 = vand.u32 2147483648, %v3436_v17  ;;  %v3446_v55 = vand.u32 2147483647, %v3436_v17  ;;  %vm3442_vm2 = vweird.f32 %v3436_v17 }
 0x3bf   :  { %v3449_v60 = vor.u32 1.1754944e-38, %v3448_v56  ;;  %vm3447_vm5 = vcmp.eq.f32.partialorder %v3446_v55, 8.507059e+37 }
 0x3c3   :  { %v5559_v50 = vpop.eup %5558 }
 0x3c4   :  { %v3438_v52 = vmul.f32 %v5559_v50, %v3436_v17  ;;  %vm3443_vm1 = vweird.f32 %v5559_v50 }
 0x3c5   :  { %vm3444_vm3 = vmor %vm3442_vm2, %vm3443_vm1 }
 0x3c6   :  { %v3439_v14 = vsub.f32 1.0, %v3438_v52 }
 0x3c8   :  { %v3440_v53 = vmul.f32 %v5559_v50, %v3439_v14 }
 0x3ca   :  { %v3441_v57 = vadd.f32 %v5559_v50, %v3440_v53 }
 0x3cc   :  { %v3445_v22 = vsel %vm3444_vm3, %v5559_v50, %v3441_v57 }
 0x3cd   :  { %v3450_v62 = vsel %vm3447_vm5, %v3449_v60, %v3445_v22 }
 0x3ce   :  { %3453 = vst.msk [vmem:[%s6012_s11] sm:$0xff] %vm3452_vm4, %v3450_v62 }
 0x3cf   :  { %3458 = vsyncpa [#allocation5], 1 }
 0x3d0   :  { %3459 = vsyncpa [#allocation7], 1 }
 0x3d1   :  { %3460 = vsyncpa [#allocation10], 1 }
 0x3d2   :  { %3461 = vsyncpa [#allocation13], 1 }
 0x3d3   :  { %3462 = vsyncpa [#allocation16], 1 }

</bundles_post_ra>
